<compile_context>
chip_gen: v5e
topology: v5e:2x2
jax: 0.10.0
libtpu: 0.0.40
codegen_flags: <defaults>
</compile_context>

<pallas_src>
import jax
import jax.numpy as jnp
from jax.experimental import pallas as pl
from jax.experimental.pallas import tpu as pltpu


C_IN = 3
C_OUT = 32
ROWS_14 = 4 * C_OUT                   # 128: conv1..conv4 rows
ROWS_POOL = ROWS_14                   # 128..159: maxpool(conv4)
ROWS_5 = ROWS_14 + C_OUT              # 160..191: conv5
ROWS_TOTAL = ROWS_14 + 2 * C_OUT      # 192

# per-branch (dh, dw) taps, in the exact order they are packed into w14
BRANCH_TAPS = (
    ((0, 0),),                            # conv1 kernel (1,1)
    ((0, 0), (0, 1)),                     # conv2 kernel (1,2)
    ((0, 0), (0, 1), (0, 2), (0, 3)),     # conv3 kernel (1,4)
    ((0, 0), (0, 1), (1, 0), (1, 1)),     # conv4 kernel (2,2)
)
TAP_BASE = (0, 1, 3, 7)
N_TAPS = 11
OFFS_5 = ((0, 0), (0, 1), (1, 0), (1, 1))  # conv5 / max-pool taps


# ------------------------------ fused kernel --------------------------------

def _make_fused_kernel(H, W, B_TILE):
    Wp = W + 3                        # padded row width (covers dw up to 3)
    P = H * Wp                        # positions computed for conv1..conv4
    P_pool = P - (Wp + 1)             # positions computed for the max-pool
    P5 = P_pool - (Wp + 1)            # positions computed for conv5
    pool_shifts = tuple(dh * Wp + dw for dh, dw in OFFS_5)   # (0,1,Wp,Wp+1)

    def kernel(x_ref, w14_ref, b14_ref, w5_ref, b5_ref, o_ref, c5_ref):
        # Static per-image loop; B_TILE is a small compile-time constant.
        for img in range(B_TILE):
            # ---- conv1..conv4, one 32-row branch at a time (+bias, ReLU) --
            r4 = None
            for br in range(4):
                acc = jnp.zeros((C_OUT, P), jnp.float32)
                for t, (dh, dw) in enumerate(BRANCH_TAPS[br]):
                    s = dh * Wp + dw
                    for c in range(C_IN):
                        w_col = w14_ref[TAP_BASE[br] + t, c, :, :]    # (32,1)
                        x_row = x_ref[img, c:c + 1, s:s + P]          # (1,P)
                        acc = acc + w_col * x_row                     # VPU FMA
                r = jnp.maximum(
                    acc + b14_ref[br * C_OUT:(br + 1) * C_OUT, :], 0.0)
                o_ref[img, br * C_OUT:(br + 1) * C_OUT, :] = r
                if br == 3:
                    r4 = r

            # ---- MaxPool2d((2,2), stride=1) on conv4, kept in registers ---
            pooled = r4[:, 0:P_pool]
            for s in pool_shifts[1:]:
                pooled = jnp.maximum(pooled, r4[:, s:s + P_pool])
            o_ref[img, ROWS_POOL:ROWS_POOL + C_OUT, 0:P_pool] = pooled
            # cols P_pool:P of the pool rows stay unwritten (never read).

            # ---- conv5 (2x2, 32->32) as ONE K=128 MXU dot ------------------
            for i, s in enumerate(pool_shifts):
                c5_ref[i * C_OUT:(i + 1) * C_OUT, :] = pooled[:, s:s + P5]
            r5 = jnp.dot(w5_ref[:, :], c5_ref[:, :],
                         preferred_element_type=jnp.float32)
            r5 = jnp.maximum(r5 + b5_ref[:, :], 0.0)
            o_ref[img, ROWS_5:ROWS_TOTAL, 0:P5] = r5
            # cols P5:P of the conv5 rows stay unwritten (never read).

    return kernel


# ------------------------------- host glue ----------------------------------

def _pack_params(params):
    """Pack conv1..conv4 -> (11, 3, 32, 1); conv5 -> (32, 128)."""
    taps = []
    for w in (params["w1"], params["w2"], params["w3"], params["w4"]):
        kh, kw = int(w.shape[0]), int(w.shape[1])
        for dh in range(kh):
            for dw in range(kw):
                taps.append(w[dh, dw].astype(jnp.float32))       # (cin, cout)
    w14 = jnp.stack(taps, axis=0)[..., None]                     # (11,3,32,1)
    b14 = jnp.concatenate(
        [params["b1"], params["b2"], params["b3"], params["b4"]]
    ).reshape(ROWS_14, 1).astype(jnp.float32)
    # w5m[co, 32*i + ci] = w5[dh_i, dw_i, ci, co]
    w5m = jnp.concatenate([params["w5"][dh, dw].T for dh, dw in OFFS_5],
                          axis=1).astype(jnp.float32)            # (32, 128)
    b5 = params["b5"].reshape(C_OUT, 1).astype(jnp.float32)
    return w14, b14, w5m, b5


def iscx_forward(x_nchw, params):
    N, C, H, W = x_nchw.shape
    assert C == C_IN
    Wp = W + 3
    P = H * Wp
    P_pool = P - (Wp + 1)
    P5 = P_pool - (Wp + 1)
    Lx = (H + 2) * Wp

    # Batch tile: amortize per-grid-step overhead; keep grid >= 2 (v7x 2 TCs).
    B_TILE = 8
    while B_TILE > 1 and N < 2 * B_TILE:
        B_TILE //= 2
    N_pad = ((N + B_TILE - 1) // B_TILE) * B_TILE

    w14, b14, w5m, b5 = _pack_params(params)
    # zero-pad (batch to N_pad, spatially) and flatten: every conv tap becomes
    # a static lane offset of a single VMEM-resident per-image buffer.
    x_flat = jnp.pad(x_nchw.astype(jnp.float32),
                     ((0, N_pad - N), (0, 0), (0, 2), (0, 3))
                     ).reshape(N_pad, C, Lx)

    out = pl.pallas_call(
        _make_fused_kernel(H, W, B_TILE),
        out_shape=jax.ShapeDtypeStruct((N_pad, ROWS_TOTAL, P), jnp.float32),
        grid=(N_pad // B_TILE,),
        in_specs=[
            pl.BlockSpec((B_TILE, C_IN, Lx), lambda g: (g, 0, 0)),
            pl.BlockSpec((N_TAPS, C_IN, C_OUT, 1), lambda g: (0, 0, 0, 0)),
            pl.BlockSpec((ROWS_14, 1), lambda g: (0, 0)),
            pl.BlockSpec((C_OUT, 4 * C_OUT), lambda g: (0, 0)),
            pl.BlockSpec((C_OUT, 1), lambda g: (0, 0)),
        ],
        out_specs=pl.BlockSpec((B_TILE, ROWS_TOTAL, P), lambda g: (g, 0, 0)),
        scratch_shapes=[pltpu.VMEM((4 * C_OUT, P5), jnp.float32)],
        compiler_params=pltpu.CompilerParams(
            dimension_semantics=("parallel",)),
    )(x_flat, w14, b14, w5m, b5)

    out = out[:N]

    # Extract the valid (h, w) window of each branch (already channel-major,
    # i.e. NCHW-flatten order) and concatenate -- cheap slices + one concat.
    def take(row0, hh, ww):
        blk = out[:, row0:row0 + C_OUT, :].reshape(N, C_OUT, H, Wp)
        return blk[:, :, :hh, :ww].reshape(N, -1)

    f1 = take(0 * C_OUT, H, W)            # conv1: kernel (1,1)
    f2 = take(1 * C_OUT, H, W - 1)        # conv2: kernel (1,2)
    f3 = take(2 * C_OUT, H, W - 3)        # conv3: kernel (1,4)
    f4 = take(ROWS_POOL, H - 2, W - 2)    # maxpool(conv4)
    f5 = take(ROWS_5, H - 3, W - 3)       # conv5 on the pooled map
    return jnp.concatenate([f1, f2, f3, f4, f5], axis=1)


# ---------------------------- pure-JAX reference ----------------------------

def iscx_reference(x, params):
    def conv(x, w, b):
        y = jax.lax.conv_general_dilated(
            x, w, window_strides=(1, 1), padding="VALID",
            dimension_numbers=("NCHW", "HWIO", "NCHW"))
        return jax.nn.relu(y + b[None, :, None, None])

    o1 = conv(x, params["w1"], params["b1"])
    o2 = conv(x, params["w2"], params["b2"])
    o3 = conv(x, params["w3"], params["b3"])
    o4 = conv(x, params["w4"], params["b4"])
    pooled = jax.lax.reduce_window(o4, -jnp.inf, jax.lax.max,
                                   (1, 1, 2, 2), (1, 1, 1, 1), "VALID")
    o5 = conv(pooled, params["w5"], params["b5"])

    def flat(y):
        return y.reshape(y.shape[0], -1)

    return jnp.concatenate(
        [flat(o1), flat(o2), flat(o3), flat(pooled), flat(o5)], axis=1)


# --------------------------------- main --------------------------------------

if __name__ == "__main__":
    key = jax.random.PRNGKey(0)
    ks = jax.random.split(key, 12)

    # Conv weights stored HWIO (kh, kw, cin, cout); biases (cout,)
    params = {
        "w1": 0.1 * jax.random.normal(ks[0], (1, 1, 3, 32), jnp.float32),
        "b1": 0.1 * jax.random.normal(ks[1], (32,), jnp.float32),
        "w2": 0.1 * jax.random.normal(ks[2], (1, 2, 3, 32), jnp.float32),
        "b2": 0.1 * jax.random.normal(ks[3], (32,), jnp.float32),
        "w3": 0.1 * jax.random.normal(ks[4], (1, 4, 3, 32), jnp.float32),
        "b3": 0.1 * jax.random.normal(ks[5], (32,), jnp.float32),
        "w4": 0.1 * jax.random.normal(ks[6], (2, 2, 3, 32), jnp.float32),
        "b4": 0.1 * jax.random.normal(ks[7], (32,), jnp.float32),
        "w5": 0.1 * jax.random.normal(ks[8], (2, 2, 32, 32), jnp.float32),
        "b5": 0.1 * jax.random.normal(ks[9], (32,), jnp.float32),
    }

    fwd = jax.jit(iscx_forward)

    # PyTorch layout NCHW: batch=2, channels=3, 16x16 -> B_TILE=1, grid=(2,)
    x = jax.random.normal(ks[10], (2, 3, 16, 16), jnp.float32)
    out = jax.block_until_ready(fwd(x, params))
    ref = jax.block_until_ready(iscx_reference(x, params))
    assert out.shape == ref.shape, (out.shape, ref.shape)
    err = float(jnp.max(jnp.abs(out - ref)))
    assert jnp.allclose(out, ref, atol=1e-4, rtol=1e-4), err

    # Batched path: batch=16 -> B_TILE=8, grid=(2,)  (exercises the tiling)
    x16 = jax.random.normal(ks[11], (16, 3, 16, 16), jnp.float32)
    out16 = jax.block_until_ready(fwd(x16, params))
    ref16 = jax.block_until_ready(iscx_reference(x16, params))
    err16 = float(jnp.max(jnp.abs(out16 - ref16)))
    assert jnp.allclose(out16, ref16, atol=1e-4, rtol=1e-4), err16

    print("KERNEL_OK")
</pallas_src>

<mosaic_0001>
module attributes {stable_mosaic.version = 11 : i64} {
  func.func @kernel(%arg0: i32, %arg1: memref<1x3x342xf32, #tpu.memory_space<vmem>>, %arg2: memref<11x3x32x1xf32, #tpu.memory_space<vmem>>, %arg3: memref<128x1xf32, #tpu.memory_space<vmem>>, %arg4: memref<32x128xf32, #tpu.memory_space<vmem>>, %arg5: memref<32x1xf32, #tpu.memory_space<vmem>>, %arg6: memref<1x192x304xf32, #tpu.memory_space<vmem>>, %arg7: memref<128x264xf32, #tpu.memory_space<vmem>>) attributes {dimension_semantics = [#tpu.dimension_semantics<parallel>], iteration_bounds = array<i64: 2>, scalar_prefetch = 0 : i64, scratch_operands = 1 : i64, tpu.core_type = #tpu.core_type<tc>, window_params = [{transform_indices = @transform_0, window_bounds = array<i64: 1, 3, 342>}, {pipeline_mode = #tpu.pipeline_mode<synchronous>, transform_indices = @transform_1, window_bounds = array<i64: 11, 3, 32, 1>}, {pipeline_mode = #tpu.pipeline_mode<synchronous>, transform_indices = @transform_2, window_bounds = array<i64: 128, 1>}, {pipeline_mode = #tpu.pipeline_mode<synchronous>, transform_indices = @transform_3, window_bounds = array<i64: 32, 128>}, {pipeline_mode = #tpu.pipeline_mode<synchronous>, transform_indices = @transform_4, window_bounds = array<i64: 32, 1>}, {transform_indices = @transform_5, window_bounds = array<i64: 1, 192, 304>}]} {
    %cst = arith.constant 0.000000e+00 : f32
    %0 = vector.broadcast %cst : f32 to vector<32x304xf32>
    %c0 = arith.constant 0 : index
    %c0_0 = arith.constant 0 : index
    %c0_1 = arith.constant 0 : index
    %c0_2 = arith.constant 0 : index
    %1 = vector.load %arg2[%c0, %c0_0, %c0_1, %c0_2] : memref<11x3x32x1xf32, #tpu.memory_space<vmem>>, vector<1x1x32x1xf32>
    %2 = vector.shape_cast %1 : vector<1x1x32x1xf32> to vector<32x1xf32>
    %c0_3 = arith.constant 0 : index
    %c0_4 = arith.constant 0 : index
    %c0_5 = arith.constant 0 : index
    %3 = vector.load %arg1[%c0_3, %c0_4, %c0_5] : memref<1x3x342xf32, #tpu.memory_space<vmem>>, vector<1x1x304xf32>
    %4 = vector.shape_cast %3 : vector<1x1x304xf32> to vector<1x304xf32>
    %5 = vector.broadcast %2 : vector<32x1xf32> to vector<32x304xf32>
    %6 = vector.broadcast %4 : vector<1x304xf32> to vector<32x304xf32>
    %7 = arith.mulf %5, %6 : vector<32x304xf32>
    %8 = arith.addf %0, %7 : vector<32x304xf32>
    %c0_6 = arith.constant 0 : index
    %c1 = arith.constant 1 : index
    %c0_7 = arith.constant 0 : index
    %c0_8 = arith.constant 0 : index
    %9 = vector.load %arg2[%c0_6, %c1, %c0_7, %c0_8] : memref<11x3x32x1xf32, #tpu.memory_space<vmem>>, vector<1x1x32x1xf32>
    %10 = vector.shape_cast %9 : vector<1x1x32x1xf32> to vector<32x1xf32>
    %c0_9 = arith.constant 0 : index
    %c1_10 = arith.constant 1 : index
    %c0_11 = arith.constant 0 : index
    %11 = vector.load %arg1[%c0_9, %c1_10, %c0_11] : memref<1x3x342xf32, #tpu.memory_space<vmem>>, vector<1x1x304xf32>
    %12 = vector.shape_cast %11 : vector<1x1x304xf32> to vector<1x304xf32>
    %13 = vector.broadcast %10 : vector<32x1xf32> to vector<32x304xf32>
    %14 = vector.broadcast %12 : vector<1x304xf32> to vector<32x304xf32>
    %15 = arith.mulf %13, %14 : vector<32x304xf32>
    %16 = arith.addf %8, %15 : vector<32x304xf32>
    %c0_12 = arith.constant 0 : index
    %c2 = arith.constant 2 : index
    %c0_13 = arith.constant 0 : index
    %c0_14 = arith.constant 0 : index
    %17 = vector.load %arg2[%c0_12, %c2, %c0_13, %c0_14] : memref<11x3x32x1xf32, #tpu.memory_space<vmem>>, vector<1x1x32x1xf32>
    %18 = vector.shape_cast %17 : vector<1x1x32x1xf32> to vector<32x1xf32>
    %c0_15 = arith.constant 0 : index
    %c2_16 = arith.constant 2 : index
    %c0_17 = arith.constant 0 : index
    %19 = vector.load %arg1[%c0_15, %c2_16, %c0_17] : memref<1x3x342xf32, #tpu.memory_space<vmem>>, vector<1x1x304xf32>
    %20 = vector.shape_cast %19 : vector<1x1x304xf32> to vector<1x304xf32>
    %21 = vector.broadcast %18 : vector<32x1xf32> to vector<32x304xf32>
    %22 = vector.broadcast %20 : vector<1x304xf32> to vector<32x304xf32>
    %23 = arith.mulf %21, %22 : vector<32x304xf32>
    %24 = arith.addf %16, %23 : vector<32x304xf32>
    %c0_18 = arith.constant 0 : index
    %c0_19 = arith.constant 0 : index
    %25 = vector.load %arg3[%c0_18, %c0_19] : memref<128x1xf32, #tpu.memory_space<vmem>>, vector<32x1xf32>
    %26 = vector.broadcast %25 : vector<32x1xf32> to vector<32x304xf32>
    %27 = arith.addf %24, %26 : vector<32x304xf32>
    %cst_20 = arith.constant 0.000000e+00 : f32
    %28 = vector.broadcast %cst_20 : f32 to vector<32x304xf32>
    %29 = arith.maximumf %27, %28 : vector<32x304xf32>
    %c0_21 = arith.constant 0 : index
    %c0_22 = arith.constant 0 : index
    %c0_23 = arith.constant 0 : index
    %30 = vector.load %arg6[%c0_21, %c0_22, %c0_23] : memref<1x192x304xf32, #tpu.memory_space<vmem>>, vector<1x32x304xf32>
    %31 = vector.shape_cast %30 : vector<1x32x304xf32> to vector<32x304xf32>
    %32 = vector.shape_cast %29 : vector<32x304xf32> to vector<1x32x304xf32>
    tpu.vector_store %arg6[%c0_21, %c0_22, %c0_23], %32 {strides = array<i32>} : memref<1x192x304xf32, #tpu.memory_space<vmem>>, vector<1x32x304xf32>,
    %cst_24 = arith.constant 0.000000e+00 : f32
    %33 = vector.broadcast %cst_24 : f32 to vector<32x304xf32>
    %c1_25 = arith.constant 1 : index
    %c0_26 = arith.constant 0 : index
    %c0_27 = arith.constant 0 : index
    %c0_28 = arith.constant 0 : index
    %34 = vector.load %arg2[%c1_25, %c0_26, %c0_27, %c0_28] : memref<11x3x32x1xf32, #tpu.memory_space<vmem>>, vector<1x1x32x1xf32>
    %35 = vector.shape_cast %34 : vector<1x1x32x1xf32> to vector<32x1xf32>
    %c0_29 = arith.constant 0 : index
    %c0_30 = arith.constant 0 : index
    %c0_31 = arith.constant 0 : index
    %36 = vector.load %arg1[%c0_29, %c0_30, %c0_31] : memref<1x3x342xf32, #tpu.memory_space<vmem>>, vector<1x1x304xf32>
    %37 = vector.shape_cast %36 : vector<1x1x304xf32> to vector<1x304xf32>
    %38 = vector.broadcast %35 : vector<32x1xf32> to vector<32x304xf32>
    %39 = vector.broadcast %37 : vector<1x304xf32> to vector<32x304xf32>
    %40 = arith.mulf %38, %39 : vector<32x304xf32>
    %41 = arith.addf %33, %40 : vector<32x304xf32>
    %c1_32 = arith.constant 1 : index
    %c1_33 = arith.constant 1 : index
    %c0_34 = arith.constant 0 : index
    %c0_35 = arith.constant 0 : index
    %42 = vector.load %arg2[%c1_32, %c1_33, %c0_34, %c0_35] : memref<11x3x32x1xf32, #tpu.memory_space<vmem>>, vector<1x1x32x1xf32>
    %43 = vector.shape_cast %42 : vector<1x1x32x1xf32> to vector<32x1xf32>
    %c0_36 = arith.constant 0 : index
    %c1_37 = arith.constant 1 : index
    %c0_38 = arith.constant 0 : index
    %44 = vector.load %arg1[%c0_36, %c1_37, %c0_38] : memref<1x3x342xf32, #tpu.memory_space<vmem>>, vector<1x1x304xf32>
    %45 = vector.shape_cast %44 : vector<1x1x304xf32> to vector<1x304xf32>
    %46 = vector.broadcast %43 : vector<32x1xf32> to vector<32x304xf32>
    %47 = vector.broadcast %45 : vector<1x304xf32> to vector<32x304xf32>
    %48 = arith.mulf %46, %47 : vector<32x304xf32>
    %49 = arith.addf %41, %48 : vector<32x304xf32>
    %c1_39 = arith.constant 1 : index
    %c2_40 = arith.constant 2 : index
    %c0_41 = arith.constant 0 : index
    %c0_42 = arith.constant 0 : index
    %50 = vector.load %arg2[%c1_39, %c2_40, %c0_41, %c0_42] : memref<11x3x32x1xf32, #tpu.memory_space<vmem>>, vector<1x1x32x1xf32>
    %51 = vector.shape_cast %50 : vector<1x1x32x1xf32> to vector<32x1xf32>
    %c0_43 = arith.constant 0 : index
    %c2_44 = arith.constant 2 : index
    %c0_45 = arith.constant 0 : index
    %52 = vector.load %arg1[%c0_43, %c2_44, %c0_45] : memref<1x3x342xf32, #tpu.memory_space<vmem>>, vector<1x1x304xf32>
    %53 = vector.shape_cast %52 : vector<1x1x304xf32> to vector<1x304xf32>
    %54 = vector.broadcast %51 : vector<32x1xf32> to vector<32x304xf32>
    %55 = vector.broadcast %53 : vector<1x304xf32> to vector<32x304xf32>
    %56 = arith.mulf %54, %55 : vector<32x304xf32>
    %57 = arith.addf %49, %56 : vector<32x304xf32>
    %c2_46 = arith.constant 2 : index
    %c0_47 = arith.constant 0 : index
    %c0_48 = arith.constant 0 : index
    %c0_49 = arith.constant 0 : index
    %58 = vector.load %arg2[%c2_46, %c0_47, %c0_48, %c0_49] : memref<11x3x32x1xf32, #tpu.memory_space<vmem>>, vector<1x1x32x1xf32>
    %59 = vector.shape_cast %58 : vector<1x1x32x1xf32> to vector<32x1xf32>
    %c0_50 = arith.constant 0 : index
    %c0_51 = arith.constant 0 : index
    %c1_52 = arith.constant 1 : index
    %60 = vector.load %arg1[%c0_50, %c0_51, %c1_52] : memref<1x3x342xf32, #tpu.memory_space<vmem>>, vector<1x1x304xf32>
    %61 = vector.shape_cast %60 : vector<1x1x304xf32> to vector<1x304xf32>
    %62 = vector.broadcast %59 : vector<32x1xf32> to vector<32x304xf32>
    %63 = vector.broadcast %61 : vector<1x304xf32> to vector<32x304xf32>
    %64 = arith.mulf %62, %63 : vector<32x304xf32>
    %65 = arith.addf %57, %64 : vector<32x304xf32>
    %c2_53 = arith.constant 2 : index
    %c1_54 = arith.constant 1 : index
    %c0_55 = arith.constant 0 : index
    %c0_56 = arith.constant 0 : index
    %66 = vector.load %arg2[%c2_53, %c1_54, %c0_55, %c0_56] : memref<11x3x32x1xf32, #tpu.memory_space<vmem>>, vector<1x1x32x1xf32>
    %67 = vector.shape_cast %66 : vector<1x1x32x1xf32> to vector<32x1xf32>
    %c0_57 = arith.constant 0 : index
    %c1_58 = arith.constant 1 : index
    %c1_59 = arith.constant 1 : index
    %68 = vector.load %arg1[%c0_57, %c1_58, %c1_59] : memref<1x3x342xf32, #tpu.memory_space<vmem>>, vector<1x1x304xf32>
    %69 = vector.shape_cast %68 : vector<1x1x304xf32> to vector<1x304xf32>
    %70 = vector.broadcast %67 : vector<32x1xf32> to vector<32x304xf32>
    %71 = vector.broadcast %69 : vector<1x304xf32> to vector<32x304xf32>
    %72 = arith.mulf %70, %71 : vector<32x304xf32>
    %73 = arith.addf %65, %72 : vector<32x304xf32>
    %c2_60 = arith.constant 2 : index
    %c2_61 = arith.constant 2 : index
    %c0_62 = arith.constant 0 : index
    %c0_63 = arith.constant 0 : index
    %74 = vector.load %arg2[%c2_60, %c2_61, %c0_62, %c0_63] : memref<11x3x32x1xf32, #tpu.memory_space<vmem>>, vector<1x1x32x1xf32>
    %75 = vector.shape_cast %74 : vector<1x1x32x1xf32> to vector<32x1xf32>
    %c0_64 = arith.constant 0 : index
    %c2_65 = arith.constant 2 : index
    %c1_66 = arith.constant 1 : index
    %76 = vector.load %arg1[%c0_64, %c2_65, %c1_66] : memref<1x3x342xf32, #tpu.memory_space<vmem>>, vector<1x1x304xf32>
    %77 = vector.shape_cast %76 : vector<1x1x304xf32> to vector<1x304xf32>
    %78 = vector.broadcast %75 : vector<32x1xf32> to vector<32x304xf32>
    %79 = vector.broadcast %77 : vector<1x304xf32> to vector<32x304xf32>
    %80 = arith.mulf %78, %79 : vector<32x304xf32>
    %81 = arith.addf %73, %80 : vector<32x304xf32>
    %c32 = arith.constant 32 : index
    %c0_67 = arith.constant 0 : index
    %82 = vector.load %arg3[%c32, %c0_67] : memref<128x1xf32, #tpu.memory_space<vmem>>, vector<32x1xf32>
    %83 = vector.broadcast %82 : vector<32x1xf32> to vector<32x304xf32>
    %84 = arith.addf %81, %83 : vector<32x304xf32>
    %cst_68 = arith.constant 0.000000e+00 : f32
    %85 = vector.broadcast %cst_68 : f32 to vector<32x304xf32>
    %86 = arith.maximumf %84, %85 : vector<32x304xf32>
    %c0_69 = arith.constant 0 : index
    %c32_70 = arith.constant 32 : index
    %c0_71 = arith.constant 0 : index
    %87 = vector.load %arg6[%c0_69, %c32_70, %c0_71] : memref<1x192x304xf32, #tpu.memory_space<vmem>>, vector<1x32x304xf32>
    %88 = vector.shape_cast %87 : vector<1x32x304xf32> to vector<32x304xf32>
    %89 = vector.shape_cast %86 : vector<32x304xf32> to vector<1x32x304xf32>
    tpu.vector_store %arg6[%c0_69, %c32_70, %c0_71], %89 {strides = array<i32>} : memref<1x192x304xf32, #tpu.memory_space<vmem>>, vector<1x32x304xf32>,
    %cst_72 = arith.constant 0.000000e+00 : f32
    %90 = vector.broadcast %cst_72 : f32 to vector<32x304xf32>
    %c3 = arith.constant 3 : index
    %c0_73 = arith.constant 0 : index
    %c0_74 = arith.constant 0 : index
    %c0_75 = arith.constant 0 : index
    %91 = vector.load %arg2[%c3, %c0_73, %c0_74, %c0_75] : memref<11x3x32x1xf32, #tpu.memory_space<vmem>>, vector<1x1x32x1xf32>
    %92 = vector.shape_cast %91 : vector<1x1x32x1xf32> to vector<32x1xf32>
    %c0_76 = arith.constant 0 : index
    %c0_77 = arith.constant 0 : index
    %c0_78 = arith.constant 0 : index
    %93 = vector.load %arg1[%c0_76, %c0_77, %c0_78] : memref<1x3x342xf32, #tpu.memory_space<vmem>>, vector<1x1x304xf32>
    %94 = vector.shape_cast %93 : vector<1x1x304xf32> to vector<1x304xf32>
    %95 = vector.broadcast %92 : vector<32x1xf32> to vector<32x304xf32>
    %96 = vector.broadcast %94 : vector<1x304xf32> to vector<32x304xf32>
    %97 = arith.mulf %95, %96 : vector<32x304xf32>
    %98 = arith.addf %90, %97 : vector<32x304xf32>
    %c3_79 = arith.constant 3 : index
    %c1_80 = arith.constant 1 : index
    %c0_81 = arith.constant 0 : index
    %c0_82 = arith.constant 0 : index
    %99 = vector.load %arg2[%c3_79, %c1_80, %c0_81, %c0_82] : memref<11x3x32x1xf32, #tpu.memory_space<vmem>>, vector<1x1x32x1xf32>
    %100 = vector.shape_cast %99 : vector<1x1x32x1xf32> to vector<32x1xf32>
    %c0_83 = arith.constant 0 : index
    %c1_84 = arith.constant 1 : index
    %c0_85 = arith.constant 0 : index
    %101 = vector.load %arg1[%c0_83, %c1_84, %c0_85] : memref<1x3x342xf32, #tpu.memory_space<vmem>>, vector<1x1x304xf32>
    %102 = vector.shape_cast %101 : vector<1x1x304xf32> to vector<1x304xf32>
    %103 = vector.broadcast %100 : vector<32x1xf32> to vector<32x304xf32>
    %104 = vector.broadcast %102 : vector<1x304xf32> to vector<32x304xf32>
    %105 = arith.mulf %103, %104 : vector<32x304xf32>
    %106 = arith.addf %98, %105 : vector<32x304xf32>
    %c3_86 = arith.constant 3 : index
    %c2_87 = arith.constant 2 : index
    %c0_88 = arith.constant 0 : index
    %c0_89 = arith.constant 0 : index
    %107 = vector.load %arg2[%c3_86, %c2_87, %c0_88, %c0_89] : memref<11x3x32x1xf32, #tpu.memory_space<vmem>>, vector<1x1x32x1xf32>
    %108 = vector.shape_cast %107 : vector<1x1x32x1xf32> to vector<32x1xf32>
    %c0_90 = arith.constant 0 : index
    %c2_91 = arith.constant 2 : index
    %c0_92 = arith.constant 0 : index
    %109 = vector.load %arg1[%c0_90, %c2_91, %c0_92] : memref<1x3x342xf32, #tpu.memory_space<vmem>>, vector<1x1x304xf32>
    %110 = vector.shape_cast %109 : vector<1x1x304xf32> to vector<1x304xf32>
    %111 = vector.broadcast %108 : vector<32x1xf32> to vector<32x304xf32>
    %112 = vector.broadcast %110 : vector<1x304xf32> to vector<32x304xf32>
    %113 = arith.mulf %111, %112 : vector<32x304xf32>
    %114 = arith.addf %106, %113 : vector<32x304xf32>
    %c4 = arith.constant 4 : index
    %c0_93 = arith.constant 0 : index
    %c0_94 = arith.constant 0 : index
    %c0_95 = arith.constant 0 : index
    %115 = vector.load %arg2[%c4, %c0_93, %c0_94, %c0_95] : memref<11x3x32x1xf32, #tpu.memory_space<vmem>>, vector<1x1x32x1xf32>
    %116 = vector.shape_cast %115 : vector<1x1x32x1xf32> to vector<32x1xf32>
    %c0_96 = arith.constant 0 : index
    %c0_97 = arith.constant 0 : index
    %c1_98 = arith.constant 1 : index
    %117 = vector.load %arg1[%c0_96, %c0_97, %c1_98] : memref<1x3x342xf32, #tpu.memory_space<vmem>>, vector<1x1x304xf32>
    %118 = vector.shape_cast %117 : vector<1x1x304xf32> to vector<1x304xf32>
    %119 = vector.broadcast %116 : vector<32x1xf32> to vector<32x304xf32>
    %120 = vector.broadcast %118 : vector<1x304xf32> to vector<32x304xf32>
    %121 = arith.mulf %119, %120 : vector<32x304xf32>
    %122 = arith.addf %114, %121 : vector<32x304xf32>
    %c4_99 = arith.constant 4 : index
    %c1_100 = arith.constant 1 : index
    %c0_101 = arith.constant 0 : index
    %c0_102 = arith.constant 0 : index
    %123 = vector.load %arg2[%c4_99, %c1_100, %c0_101, %c0_102] : memref<11x3x32x1xf32, #tpu.memory_space<vmem>>, vector<1x1x32x1xf32>
    %124 = vector.shape_cast %123 : vector<1x1x32x1xf32> to vector<32x1xf32>
    %c0_103 = arith.constant 0 : index
    %c1_104 = arith.constant 1 : index
    %c1_105 = arith.constant 1 : index
    %125 = vector.load %arg1[%c0_103, %c1_104, %c1_105] : memref<1x3x342xf32, #tpu.memory_space<vmem>>, vector<1x1x304xf32>
    %126 = vector.shape_cast %125 : vector<1x1x304xf32> to vector<1x304xf32>
    %127 = vector.broadcast %124 : vector<32x1xf32> to vector<32x304xf32>
    %128 = vector.broadcast %126 : vector<1x304xf32> to vector<32x304xf32>
    %129 = arith.mulf %127, %128 : vector<32x304xf32>
    %130 = arith.addf %122, %129 : vector<32x304xf32>
    %c4_106 = arith.constant 4 : index
    %c2_107 = arith.constant 2 : index
    %c0_108 = arith.constant 0 : index
    %c0_109 = arith.constant 0 : index
    %131 = vector.load %arg2[%c4_106, %c2_107, %c0_108, %c0_109] : memref<11x3x32x1xf32, #tpu.memory_space<vmem>>, vector<1x1x32x1xf32>
    %132 = vector.shape_cast %131 : vector<1x1x32x1xf32> to vector<32x1xf32>
    %c0_110 = arith.constant 0 : index
    %c2_111 = arith.constant 2 : index
    %c1_112 = arith.constant 1 : index
    %133 = vector.load %arg1[%c0_110, %c2_111, %c1_112] : memref<1x3x342xf32, #tpu.memory_space<vmem>>, vector<1x1x304xf32>
    %134 = vector.shape_cast %133 : vector<1x1x304xf32> to vector<1x304xf32>
    %135 = vector.broadcast %132 : vector<32x1xf32> to vector<32x304xf32>
    %136 = vector.broadcast %134 : vector<1x304xf32> to vector<32x304xf32>
    %137 = arith.mulf %135, %136 : vector<32x304xf32>
    %138 = arith.addf %130, %137 : vector<32x304xf32>
    %c5 = arith.constant 5 : index
    %c0_113 = arith.constant 0 : index
    %c0_114 = arith.constant 0 : index
    %c0_115 = arith.constant 0 : index
    %139 = vector.load %arg2[%c5, %c0_113, %c0_114, %c0_115] : memref<11x3x32x1xf32, #tpu.memory_space<vmem>>, vector<1x1x32x1xf32>
    %140 = vector.shape_cast %139 : vector<1x1x32x1xf32> to vector<32x1xf32>
    %c0_116 = arith.constant 0 : index
    %c0_117 = arith.constant 0 : index
    %c2_118 = arith.constant 2 : index
    %141 = vector.load %arg1[%c0_116, %c0_117, %c2_118] : memref<1x3x342xf32, #tpu.memory_space<vmem>>, vector<1x1x304xf32>
    %142 = vector.shape_cast %141 : vector<1x1x304xf32> to vector<1x304xf32>
    %143 = vector.broadcast %140 : vector<32x1xf32> to vector<32x304xf32>
    %144 = vector.broadcast %142 : vector<1x304xf32> to vector<32x304xf32>
    %145 = arith.mulf %143, %144 : vector<32x304xf32>
    %146 = arith.addf %138, %145 : vector<32x304xf32>
    %c5_119 = arith.constant 5 : index
    %c1_120 = arith.constant 1 : index
    %c0_121 = arith.constant 0 : index
    %c0_122 = arith.constant 0 : index
    %147 = vector.load %arg2[%c5_119, %c1_120, %c0_121, %c0_122] : memref<11x3x32x1xf32, #tpu.memory_space<vmem>>, vector<1x1x32x1xf32>
    %148 = vector.shape_cast %147 : vector<1x1x32x1xf32> to vector<32x1xf32>
    %c0_123 = arith.constant 0 : index
    %c1_124 = arith.constant 1 : index
    %c2_125 = arith.constant 2 : index
    %149 = vector.load %arg1[%c0_123, %c1_124, %c2_125] : memref<1x3x342xf32, #tpu.memory_space<vmem>>, vector<1x1x304xf32>
    %150 = vector.shape_cast %149 : vector<1x1x304xf32> to vector<1x304xf32>
    %151 = vector.broadcast %148 : vector<32x1xf32> to vector<32x304xf32>
    %152 = vector.broadcast %150 : vector<1x304xf32> to vector<32x304xf32>
    %153 = arith.mulf %151, %152 : vector<32x304xf32>
    %154 = arith.addf %146, %153 : vector<32x304xf32>
    %c5_126 = arith.constant 5 : index
    %c2_127 = arith.constant 2 : index
    %c0_128 = arith.constant 0 : index
    %c0_129 = arith.constant 0 : index
    %155 = vector.load %arg2[%c5_126, %c2_127, %c0_128, %c0_129] : memref<11x3x32x1xf32, #tpu.memory_space<vmem>>, vector<1x1x32x1xf32>
    %156 = vector.shape_cast %155 : vector<1x1x32x1xf32> to vector<32x1xf32>
    %c0_130 = arith.constant 0 : index
    %c2_131 = arith.constant 2 : index
    %c2_132 = arith.constant 2 : index
    %157 = vector.load %arg1[%c0_130, %c2_131, %c2_132] : memref<1x3x342xf32, #tpu.memory_space<vmem>>, vector<1x1x304xf32>
    %158 = vector.shape_cast %157 : vector<1x1x304xf32> to vector<1x304xf32>
    %159 = vector.broadcast %156 : vector<32x1xf32> to vector<32x304xf32>
    %160 = vector.broadcast %158 : vector<1x304xf32> to vector<32x304xf32>
    %161 = arith.mulf %159, %160 : vector<32x304xf32>
    %162 = arith.addf %154, %161 : vector<32x304xf32>
    %c6 = arith.constant 6 : index
    %c0_133 = arith.constant 0 : index
    %c0_134 = arith.constant 0 : index
    %c0_135 = arith.constant 0 : index
    %163 = vector.load %arg2[%c6, %c0_133, %c0_134, %c0_135] : memref<11x3x32x1xf32, #tpu.memory_space<vmem>>, vector<1x1x32x1xf32>
    %164 = vector.shape_cast %163 : vector<1x1x32x1xf32> to vector<32x1xf32>
    %c0_136 = arith.constant 0 : index
    %c0_137 = arith.constant 0 : index
    %c3_138 = arith.constant 3 : index
    %165 = vector.load %arg1[%c0_136, %c0_137, %c3_138] : memref<1x3x342xf32, #tpu.memory_space<vmem>>, vector<1x1x304xf32>
    %166 = vector.shape_cast %165 : vector<1x1x304xf32> to vector<1x304xf32>
    %167 = vector.broadcast %164 : vector<32x1xf32> to vector<32x304xf32>
    %168 = vector.broadcast %166 : vector<1x304xf32> to vector<32x304xf32>
    %169 = arith.mulf %167, %168 : vector<32x304xf32>
    %170 = arith.addf %162, %169 : vector<32x304xf32>
    %c6_139 = arith.constant 6 : index
    %c1_140 = arith.constant 1 : index
    %c0_141 = arith.constant 0 : index
    %c0_142 = arith.constant 0 : index
    %171 = vector.load %arg2[%c6_139, %c1_140, %c0_141, %c0_142] : memref<11x3x32x1xf32, #tpu.memory_space<vmem>>, vector<1x1x32x1xf32>
    %172 = vector.shape_cast %171 : vector<1x1x32x1xf32> to vector<32x1xf32>
    %c0_143 = arith.constant 0 : index
    %c1_144 = arith.constant 1 : index
    %c3_145 = arith.constant 3 : index
    %173 = vector.load %arg1[%c0_143, %c1_144, %c3_145] : memref<1x3x342xf32, #tpu.memory_space<vmem>>, vector<1x1x304xf32>
    %174 = vector.shape_cast %173 : vector<1x1x304xf32> to vector<1x304xf32>
    %175 = vector.broadcast %172 : vector<32x1xf32> to vector<32x304xf32>
    %176 = vector.broadcast %174 : vector<1x304xf32> to vector<32x304xf32>
    %177 = arith.mulf %175, %176 : vector<32x304xf32>
    %178 = arith.addf %170, %177 : vector<32x304xf32>
    %c6_146 = arith.constant 6 : index
    %c2_147 = arith.constant 2 : index
    %c0_148 = arith.constant 0 : index
    %c0_149 = arith.constant 0 : index
    %179 = vector.load %arg2[%c6_146, %c2_147, %c0_148, %c0_149] : memref<11x3x32x1xf32, #tpu.memory_space<vmem>>, vector<1x1x32x1xf32>
    %180 = vector.shape_cast %179 : vector<1x1x32x1xf32> to vector<32x1xf32>
    %c0_150 = arith.constant 0 : index
    %c2_151 = arith.constant 2 : index
    %c3_152 = arith.constant 3 : index
    %181 = vector.load %arg1[%c0_150, %c2_151, %c3_152] : memref<1x3x342xf32, #tpu.memory_space<vmem>>, vector<1x1x304xf32>
    %182 = vector.shape_cast %181 : vector<1x1x304xf32> to vector<1x304xf32>
    %183 = vector.broadcast %180 : vector<32x1xf32> to vector<32x304xf32>
    %184 = vector.broadcast %182 : vector<1x304xf32> to vector<32x304xf32>
    %185 = arith.mulf %183, %184 : vector<32x304xf32>
    %186 = arith.addf %178, %185 : vector<32x304xf32>
    %c64 = arith.constant 64 : index
    %c0_153 = arith.constant 0 : index
    %187 = vector.load %arg3[%c64, %c0_153] : memref<128x1xf32, #tpu.memory_space<vmem>>, vector<32x1xf32>
    %188 = vector.broadcast %187 : vector<32x1xf32> to vector<32x304xf32>
    %189 = arith.addf %186, %188 : vector<32x304xf32>
    %cst_154 = arith.constant 0.000000e+00 : f32
    %190 = vector.broadcast %cst_154 : f32 to vector<32x304xf32>
    %191 = arith.maximumf %189, %190 : vector<32x304xf32>
    %c0_155 = arith.constant 0 : index
    %c64_156 = arith.constant 64 : index
    %c0_157 = arith.constant 0 : index
    %192 = vector.load %arg6[%c0_155, %c64_156, %c0_157] : memref<1x192x304xf32, #tpu.memory_space<vmem>>, vector<1x32x304xf32>
    %193 = vector.shape_cast %192 : vector<1x32x304xf32> to vector<32x304xf32>
    %194 = vector.shape_cast %191 : vector<32x304xf32> to vector<1x32x304xf32>
    tpu.vector_store %arg6[%c0_155, %c64_156, %c0_157], %194 {strides = array<i32>} : memref<1x192x304xf32, #tpu.memory_space<vmem>>, vector<1x32x304xf32>,
    %cst_158 = arith.constant 0.000000e+00 : f32
    %195 = vector.broadcast %cst_158 : f32 to vector<32x304xf32>
    %c7 = arith.constant 7 : index
    %c0_159 = arith.constant 0 : index
    %c0_160 = arith.constant 0 : index
    %c0_161 = arith.constant 0 : index
    %196 = vector.load %arg2[%c7, %c0_159, %c0_160, %c0_161] : memref<11x3x32x1xf32, #tpu.memory_space<vmem>>, vector<1x1x32x1xf32>
    %197 = vector.shape_cast %196 : vector<1x1x32x1xf32> to vector<32x1xf32>
    %c0_162 = arith.constant 0 : index
    %c0_163 = arith.constant 0 : index
    %c0_164 = arith.constant 0 : index
    %198 = vector.load %arg1[%c0_162, %c0_163, %c0_164] : memref<1x3x342xf32, #tpu.memory_space<vmem>>, vector<1x1x304xf32>
    %199 = vector.shape_cast %198 : vector<1x1x304xf32> to vector<1x304xf32>
    %200 = vector.broadcast %197 : vector<32x1xf32> to vector<32x304xf32>
    %201 = vector.broadcast %199 : vector<1x304xf32> to vector<32x304xf32>
    %202 = arith.mulf %200, %201 : vector<32x304xf32>
    %203 = arith.addf %195, %202 : vector<32x304xf32>
    %c7_165 = arith.constant 7 : index
    %c1_166 = arith.constant 1 : index
    %c0_167 = arith.constant 0 : index
    %c0_168 = arith.constant 0 : index
    %204 = vector.load %arg2[%c7_165, %c1_166, %c0_167, %c0_168] : memref<11x3x32x1xf32, #tpu.memory_space<vmem>>, vector<1x1x32x1xf32>
    %205 = vector.shape_cast %204 : vector<1x1x32x1xf32> to vector<32x1xf32>
    %c0_169 = arith.constant 0 : index
    %c1_170 = arith.constant 1 : index
    %c0_171 = arith.constant 0 : index
    %206 = vector.load %arg1[%c0_169, %c1_170, %c0_171] : memref<1x3x342xf32, #tpu.memory_space<vmem>>, vector<1x1x304xf32>
    %207 = vector.shape_cast %206 : vector<1x1x304xf32> to vector<1x304xf32>
    %208 = vector.broadcast %205 : vector<32x1xf32> to vector<32x304xf32>
    %209 = vector.broadcast %207 : vector<1x304xf32> to vector<32x304xf32>
    %210 = arith.mulf %208, %209 : vector<32x304xf32>
    %211 = arith.addf %203, %210 : vector<32x304xf32>
    %c7_172 = arith.constant 7 : index
    %c2_173 = arith.constant 2 : index
    %c0_174 = arith.constant 0 : index
    %c0_175 = arith.constant 0 : index
    %212 = vector.load %arg2[%c7_172, %c2_173, %c0_174, %c0_175] : memref<11x3x32x1xf32, #tpu.memory_space<vmem>>, vector<1x1x32x1xf32>
    %213 = vector.shape_cast %212 : vector<1x1x32x1xf32> to vector<32x1xf32>
    %c0_176 = arith.constant 0 : index
    %c2_177 = arith.constant 2 : index
    %c0_178 = arith.constant 0 : index
    %214 = vector.load %arg1[%c0_176, %c2_177, %c0_178] : memref<1x3x342xf32, #tpu.memory_space<vmem>>, vector<1x1x304xf32>
    %215 = vector.shape_cast %214 : vector<1x1x304xf32> to vector<1x304xf32>
    %216 = vector.broadcast %213 : vector<32x1xf32> to vector<32x304xf32>
    %217 = vector.broadcast %215 : vector<1x304xf32> to vector<32x304xf32>
    %218 = arith.mulf %216, %217 : vector<32x304xf32>
    %219 = arith.addf %211, %218 : vector<32x304xf32>
    %c8 = arith.constant 8 : index
    %c0_179 = arith.constant 0 : index
    %c0_180 = arith.constant 0 : index
    %c0_181 = arith.constant 0 : index
    %220 = vector.load %arg2[%c8, %c0_179, %c0_180, %c0_181] : memref<11x3x32x1xf32, #tpu.memory_space<vmem>>, vector<1x1x32x1xf32>
    %221 = vector.shape_cast %220 : vector<1x1x32x1xf32> to vector<32x1xf32>
    %c0_182 = arith.constant 0 : index
    %c0_183 = arith.constant 0 : index
    %c1_184 = arith.constant 1 : index
    %222 = vector.load %arg1[%c0_182, %c0_183, %c1_184] : memref<1x3x342xf32, #tpu.memory_space<vmem>>, vector<1x1x304xf32>
    %223 = vector.shape_cast %222 : vector<1x1x304xf32> to vector<1x304xf32>
    %224 = vector.broadcast %221 : vector<32x1xf32> to vector<32x304xf32>
    %225 = vector.broadcast %223 : vector<1x304xf32> to vector<32x304xf32>
    %226 = arith.mulf %224, %225 : vector<32x304xf32>
    %227 = arith.addf %219, %226 : vector<32x304xf32>
    %c8_185 = arith.constant 8 : index
    %c1_186 = arith.constant 1 : index
    %c0_187 = arith.constant 0 : index
    %c0_188 = arith.constant 0 : index
    %228 = vector.load %arg2[%c8_185, %c1_186, %c0_187, %c0_188] : memref<11x3x32x1xf32, #tpu.memory_space<vmem>>, vector<1x1x32x1xf32>
    %229 = vector.shape_cast %228 : vector<1x1x32x1xf32> to vector<32x1xf32>
    %c0_189 = arith.constant 0 : index
    %c1_190 = arith.constant 1 : index
    %c1_191 = arith.constant 1 : index
    %230 = vector.load %arg1[%c0_189, %c1_190, %c1_191] : memref<1x3x342xf32, #tpu.memory_space<vmem>>, vector<1x1x304xf32>
    %231 = vector.shape_cast %230 : vector<1x1x304xf32> to vector<1x304xf32>
    %232 = vector.broadcast %229 : vector<32x1xf32> to vector<32x304xf32>
    %233 = vector.broadcast %231 : vector<1x304xf32> to vector<32x304xf32>
    %234 = arith.mulf %232, %233 : vector<32x304xf32>
    %235 = arith.addf %227, %234 : vector<32x304xf32>
    %c8_192 = arith.constant 8 : index
    %c2_193 = arith.constant 2 : index
    %c0_194 = arith.constant 0 : index
    %c0_195 = arith.constant 0 : index
    %236 = vector.load %arg2[%c8_192, %c2_193, %c0_194, %c0_195] : memref<11x3x32x1xf32, #tpu.memory_space<vmem>>, vector<1x1x32x1xf32>
    %237 = vector.shape_cast %236 : vector<1x1x32x1xf32> to vector<32x1xf32>
    %c0_196 = arith.constant 0 : index
    %c2_197 = arith.constant 2 : index
    %c1_198 = arith.constant 1 : index
    %238 = vector.load %arg1[%c0_196, %c2_197, %c1_198] : memref<1x3x342xf32, #tpu.memory_space<vmem>>, vector<1x1x304xf32>
    %239 = vector.shape_cast %238 : vector<1x1x304xf32> to vector<1x304xf32>
    %240 = vector.broadcast %237 : vector<32x1xf32> to vector<32x304xf32>
    %241 = vector.broadcast %239 : vector<1x304xf32> to vector<32x304xf32>
    %242 = arith.mulf %240, %241 : vector<32x304xf32>
    %243 = arith.addf %235, %242 : vector<32x304xf32>
    %c9 = arith.constant 9 : index
    %c0_199 = arith.constant 0 : index
    %c0_200 = arith.constant 0 : index
    %c0_201 = arith.constant 0 : index
    %244 = vector.load %arg2[%c9, %c0_199, %c0_200, %c0_201] : memref<11x3x32x1xf32, #tpu.memory_space<vmem>>, vector<1x1x32x1xf32>
    %245 = vector.shape_cast %244 : vector<1x1x32x1xf32> to vector<32x1xf32>
    %c0_202 = arith.constant 0 : index
    %c0_203 = arith.constant 0 : index
    %c19 = arith.constant 19 : index
    %246 = vector.load %arg1[%c0_202, %c0_203, %c19] : memref<1x3x342xf32, #tpu.memory_space<vmem>>, vector<1x1x304xf32>
    %247 = vector.shape_cast %246 : vector<1x1x304xf32> to vector<1x304xf32>
    %248 = vector.broadcast %245 : vector<32x1xf32> to vector<32x304xf32>
    %249 = vector.broadcast %247 : vector<1x304xf32> to vector<32x304xf32>
    %250 = arith.mulf %248, %249 : vector<32x304xf32>
    %251 = arith.addf %243, %250 : vector<32x304xf32>
    %c9_204 = arith.constant 9 : index
    %c1_205 = arith.constant 1 : index
    %c0_206 = arith.constant 0 : index
    %c0_207 = arith.constant 0 : index
    %252 = vector.load %arg2[%c9_204, %c1_205, %c0_206, %c0_207] : memref<11x3x32x1xf32, #tpu.memory_space<vmem>>, vector<1x1x32x1xf32>
    %253 = vector.shape_cast %252 : vector<1x1x32x1xf32> to vector<32x1xf32>
    %c0_208 = arith.constant 0 : index
    %c1_209 = arith.constant 1 : index
    %c19_210 = arith.constant 19 : index
    %254 = vector.load %arg1[%c0_208, %c1_209, %c19_210] : memref<1x3x342xf32, #tpu.memory_space<vmem>>, vector<1x1x304xf32>
    %255 = vector.shape_cast %254 : vector<1x1x304xf32> to vector<1x304xf32>
    %256 = vector.broadcast %253 : vector<32x1xf32> to vector<32x304xf32>
    %257 = vector.broadcast %255 : vector<1x304xf32> to vector<32x304xf32>
    %258 = arith.mulf %256, %257 : vector<32x304xf32>
    %259 = arith.addf %251, %258 : vector<32x304xf32>
    %c9_211 = arith.constant 9 : index
    %c2_212 = arith.constant 2 : index
    %c0_213 = arith.constant 0 : index
    %c0_214 = arith.constant 0 : index
    %260 = vector.load %arg2[%c9_211, %c2_212, %c0_213, %c0_214] : memref<11x3x32x1xf32, #tpu.memory_space<vmem>>, vector<1x1x32x1xf32>
    %261 = vector.shape_cast %260 : vector<1x1x32x1xf32> to vector<32x1xf32>
    %c0_215 = arith.constant 0 : index
    %c2_216 = arith.constant 2 : index
    %c19_217 = arith.constant 19 : index
    %262 = vector.load %arg1[%c0_215, %c2_216, %c19_217] : memref<1x3x342xf32, #tpu.memory_space<vmem>>, vector<1x1x304xf32>
    %263 = vector.shape_cast %262 : vector<1x1x304xf32> to vector<1x304xf32>
    %264 = vector.broadcast %261 : vector<32x1xf32> to vector<32x304xf32>
    %265 = vector.broadcast %263 : vector<1x304xf32> to vector<32x304xf32>
    %266 = arith.mulf %264, %265 : vector<32x304xf32>
    %267 = arith.addf %259, %266 : vector<32x304xf32>
    %c10 = arith.constant 10 : index
    %c0_218 = arith.constant 0 : index
    %c0_219 = arith.constant 0 : index
    %c0_220 = arith.constant 0 : index
    %268 = vector.load %arg2[%c10, %c0_218, %c0_219, %c0_220] : memref<11x3x32x1xf32, #tpu.memory_space<vmem>>, vector<1x1x32x1xf32>
    %269 = vector.shape_cast %268 : vector<1x1x32x1xf32> to vector<32x1xf32>
    %c0_221 = arith.constant 0 : index
    %c0_222 = arith.constant 0 : index
    %c20 = arith.constant 20 : index
    %270 = vector.load %arg1[%c0_221, %c0_222, %c20] : memref<1x3x342xf32, #tpu.memory_space<vmem>>, vector<1x1x304xf32>
    %271 = vector.shape_cast %270 : vector<1x1x304xf32> to vector<1x304xf32>
    %272 = vector.broadcast %269 : vector<32x1xf32> to vector<32x304xf32>
    %273 = vector.broadcast %271 : vector<1x304xf32> to vector<32x304xf32>
    %274 = arith.mulf %272, %273 : vector<32x304xf32>
    %275 = arith.addf %267, %274 : vector<32x304xf32>
    %c10_223 = arith.constant 10 : index
    %c1_224 = arith.constant 1 : index
    %c0_225 = arith.constant 0 : index
    %c0_226 = arith.constant 0 : index
    %276 = vector.load %arg2[%c10_223, %c1_224, %c0_225, %c0_226] : memref<11x3x32x1xf32, #tpu.memory_space<vmem>>, vector<1x1x32x1xf32>
    %277 = vector.shape_cast %276 : vector<1x1x32x1xf32> to vector<32x1xf32>
    %c0_227 = arith.constant 0 : index
    %c1_228 = arith.constant 1 : index
    %c20_229 = arith.constant 20 : index
    %278 = vector.load %arg1[%c0_227, %c1_228, %c20_229] : memref<1x3x342xf32, #tpu.memory_space<vmem>>, vector<1x1x304xf32>
    %279 = vector.shape_cast %278 : vector<1x1x304xf32> to vector<1x304xf32>
    %280 = vector.broadcast %277 : vector<32x1xf32> to vector<32x304xf32>
    %281 = vector.broadcast %279 : vector<1x304xf32> to vector<32x304xf32>
    %282 = arith.mulf %280, %281 : vector<32x304xf32>
    %283 = arith.addf %275, %282 : vector<32x304xf32>
    %c10_230 = arith.constant 10 : index
    %c2_231 = arith.constant 2 : index
    %c0_232 = arith.constant 0 : index
    %c0_233 = arith.constant 0 : index
    %284 = vector.load %arg2[%c10_230, %c2_231, %c0_232, %c0_233] : memref<11x3x32x1xf32, #tpu.memory_space<vmem>>, vector<1x1x32x1xf32>
    %285 = vector.shape_cast %284 : vector<1x1x32x1xf32> to vector<32x1xf32>
    %c0_234 = arith.constant 0 : index
    %c2_235 = arith.constant 2 : index
    %c20_236 = arith.constant 20 : index
    %286 = vector.load %arg1[%c0_234, %c2_235, %c20_236] : memref<1x3x342xf32, #tpu.memory_space<vmem>>, vector<1x1x304xf32>
    %287 = vector.shape_cast %286 : vector<1x1x304xf32> to vector<1x304xf32>
    %288 = vector.broadcast %285 : vector<32x1xf32> to vector<32x304xf32>
    %289 = vector.broadcast %287 : vector<1x304xf32> to vector<32x304xf32>
    %290 = arith.mulf %288, %289 : vector<32x304xf32>
    %291 = arith.addf %283, %290 : vector<32x304xf32>
    %c96 = arith.constant 96 : index
    %c0_237 = arith.constant 0 : index
    %292 = vector.load %arg3[%c96, %c0_237] : memref<128x1xf32, #tpu.memory_space<vmem>>, vector<32x1xf32>
    %293 = vector.broadcast %292 : vector<32x1xf32> to vector<32x304xf32>
    %294 = arith.addf %291, %293 : vector<32x304xf32>
    %cst_238 = arith.constant 0.000000e+00 : f32
    %295 = vector.broadcast %cst_238 : f32 to vector<32x304xf32>
    %296 = arith.maximumf %294, %295 : vector<32x304xf32>
    %c0_239 = arith.constant 0 : index
    %c96_240 = arith.constant 96 : index
    %c0_241 = arith.constant 0 : index
    %297 = vector.load %arg6[%c0_239, %c96_240, %c0_241] : memref<1x192x304xf32, #tpu.memory_space<vmem>>, vector<1x32x304xf32>
    %298 = vector.shape_cast %297 : vector<1x32x304xf32> to vector<32x304xf32>
    %299 = vector.shape_cast %296 : vector<32x304xf32> to vector<1x32x304xf32>
    tpu.vector_store %arg6[%c0_239, %c96_240, %c0_241], %299 {strides = array<i32>} : memref<1x192x304xf32, #tpu.memory_space<vmem>>, vector<1x32x304xf32>,
    %300 = vector.extract_strided_slice %296 {offsets = [0, 0], sizes = [32, 284], strides = [1, 1]} : vector<32x304xf32> to vector<32x284xf32>
    %301 = vector.extract_strided_slice %296 {offsets = [0, 1], sizes = [32, 284], strides = [1, 1]} : vector<32x304xf32> to vector<32x284xf32>
    %302 = arith.maximumf %300, %301 : vector<32x284xf32>
    %303 = vector.extract_strided_slice %296 {offsets = [0, 19], sizes = [32, 284], strides = [1, 1]} : vector<32x304xf32> to vector<32x284xf32>
    %304 = arith.maximumf %302, %303 : vector<32x284xf32>
    %305 = vector.extract_strided_slice %296 {offsets = [0, 20], sizes = [32, 284], strides = [1, 1]} : vector<32x304xf32> to vector<32x284xf32>
    %306 = arith.maximumf %304, %305 : vector<32x284xf32>
    %c0_242 = arith.constant 0 : index
    %c128 = arith.constant 128 : index
    %c0_243 = arith.constant 0 : index
    %307 = vector.load %arg6[%c0_242, %c128, %c0_243] : memref<1x192x304xf32, #tpu.memory_space<vmem>>, vector<1x32x284xf32>
    %308 = vector.shape_cast %307 : vector<1x32x284xf32> to vector<32x284xf32>
    %309 = vector.shape_cast %306 : vector<32x284xf32> to vector<1x32x284xf32>
    tpu.vector_store %arg6[%c0_242, %c128, %c0_243], %309 {strides = array<i32>} : memref<1x192x304xf32, #tpu.memory_space<vmem>>, vector<1x32x284xf32>,
    %310 = vector.extract_strided_slice %306 {offsets = [0, 0], sizes = [32, 264], strides = [1, 1]} : vector<32x284xf32> to vector<32x264xf32>
    %c0_244 = arith.constant 0 : index
    %c0_245 = arith.constant 0 : index
    %311 = vector.load %arg7[%c0_244, %c0_245] : memref<128x264xf32, #tpu.memory_space<vmem>>, vector<32x264xf32>
    tpu.vector_store %arg7[%c0_244, %c0_245], %310 {strides = array<i32>} : memref<128x264xf32, #tpu.memory_space<vmem>>, vector<32x264xf32>,
    %312 = vector.extract_strided_slice %306 {offsets = [0, 1], sizes = [32, 264], strides = [1, 1]} : vector<32x284xf32> to vector<32x264xf32>
    %c32_246 = arith.constant 32 : index
    %c0_247 = arith.constant 0 : index
    %313 = vector.load %arg7[%c32_246, %c0_247] : memref<128x264xf32, #tpu.memory_space<vmem>>, vector<32x264xf32>
    tpu.vector_store %arg7[%c32_246, %c0_247], %312 {strides = array<i32>} : memref<128x264xf32, #tpu.memory_space<vmem>>, vector<32x264xf32>,
    %314 = vector.extract_strided_slice %306 {offsets = [0, 19], sizes = [32, 264], strides = [1, 1]} : vector<32x284xf32> to vector<32x264xf32>
    %c64_248 = arith.constant 64 : index
    %c0_249 = arith.constant 0 : index
    %315 = vector.load %arg7[%c64_248, %c0_249] : memref<128x264xf32, #tpu.memory_space<vmem>>, vector<32x264xf32>
    tpu.vector_store %arg7[%c64_248, %c0_249], %314 {strides = array<i32>} : memref<128x264xf32, #tpu.memory_space<vmem>>, vector<32x264xf32>,
    %316 = vector.extract_strided_slice %306 {offsets = [0, 20], sizes = [32, 264], strides = [1, 1]} : vector<32x284xf32> to vector<32x264xf32>
    %c96_250 = arith.constant 96 : index
    %c0_251 = arith.constant 0 : index
    %317 = vector.load %arg7[%c96_250, %c0_251] : memref<128x264xf32, #tpu.memory_space<vmem>>, vector<32x264xf32>
    tpu.vector_store %arg7[%c96_250, %c0_251], %316 {strides = array<i32>} : memref<128x264xf32, #tpu.memory_space<vmem>>, vector<32x264xf32>,
    %c0_252 = arith.constant 0 : index
    %c0_253 = arith.constant 0 : index
    %318 = vector.load %arg4[%c0_252, %c0_253] : memref<32x128xf32, #tpu.memory_space<vmem>>, vector<32x128xf32>
    %c0_254 = arith.constant 0 : index
    %c0_255 = arith.constant 0 : index
    %319 = vector.load %arg7[%c0_254, %c0_255] : memref<128x264xf32, #tpu.memory_space<vmem>>, vector<128x264xf32>
    %cst_256 = arith.constant dense<0.000000e+00> : vector<32x264xf32>
    %320 = tpu.matmul %318, %319, %cst_256 {dimension_numbers = #tpu.dot_dimension_numbers<[1], [0], [0], [1], [0, 0, 1, 1], [], []>} : vector<32x128xf32>, vector<128x264xf32>, vector<32x264xf32> -> vector<32x264xf32>
    %c0_257 = arith.constant 0 : index
    %c0_258 = arith.constant 0 : index
    %321 = vector.load %arg5[%c0_257, %c0_258] : memref<32x1xf32, #tpu.memory_space<vmem>>, vector<32x1xf32>
    %322 = vector.broadcast %321 : vector<32x1xf32> to vector<32x264xf32>
    %323 = arith.addf %320, %322 : vector<32x264xf32>
    %cst_259 = arith.constant 0.000000e+00 : f32
    %324 = vector.broadcast %cst_259 : f32 to vector<32x264xf32>
    %325 = arith.maximumf %323, %324 : vector<32x264xf32>
    %c0_260 = arith.constant 0 : index
    %c160 = arith.constant 160 : index
    %c0_261 = arith.constant 0 : index
    %326 = vector.load %arg6[%c0_260, %c160, %c0_261] : memref<1x192x304xf32, #tpu.memory_space<vmem>>, vector<1x32x264xf32>
    %327 = vector.shape_cast %326 : vector<1x32x264xf32> to vector<32x264xf32>
    %328 = vector.shape_cast %325 : vector<32x264xf32> to vector<1x32x264xf32>
    tpu.vector_store %arg6[%c0_260, %c160, %c0_261], %328 {strides = array<i32>} : memref<1x192x304xf32, #tpu.memory_space<vmem>>, vector<1x32x264xf32>,
    return
  }
  func.func @transform_0(%arg0: i32) -> (i32, i32, i32) {
    %c0_i32 = arith.constant 0 : i32
    %c0_i32_0 = arith.constant 0 : i32
    %c0_i32_1 = arith.constant 0 : i32
    return %arg0, %c0_i32, %c0_i32_0 : i32, i32, i32
  }
  func.func @transform_1(%arg0: i32) -> (i32, i32, i32, i32) {
    %c0_i32 = arith.constant 0 : i32
    %c0_i32_0 = arith.constant 0 : i32
    %c0_i32_1 = arith.constant 0 : i32
    %c0_i32_2 = arith.constant 0 : i32
    %c0_i32_3 = arith.constant 0 : i32
    return %c0_i32, %c0_i32_0, %c0_i32_1, %c0_i32_2 : i32, i32, i32, i32
  }
  func.func @transform_2(%arg0: i32) -> (i32, i32) {
    %c0_i32 = arith.constant 0 : i32
    %c0_i32_0 = arith.constant 0 : i32
    %c0_i32_1 = arith.constant 0 : i32
    return %c0_i32, %c0_i32_0 : i32, i32
  }
  func.func @transform_3(%arg0: i32) -> (i32, i32) {
    %c0_i32 = arith.constant 0 : i32
    %c0_i32_0 = arith.constant 0 : i32
    %c0_i32_1 = arith.constant 0 : i32
    return %c0_i32, %c0_i32_0 : i32, i32
  }
  func.func @transform_4(%arg0: i32) -> (i32, i32) {
    %c0_i32 = arith.constant 0 : i32
    %c0_i32_0 = arith.constant 0 : i32
    %c0_i32_1 = arith.constant 0 : i32
    return %c0_i32, %c0_i32_0 : i32, i32
  }
  func.func @transform_5(%arg0: i32) -> (i32, i32, i32) {
    %c0_i32 = arith.constant 0 : i32
    %c0_i32_0 = arith.constant 0 : i32
    %c0_i32_1 = arith.constant 0 : i32
    return %arg0, %c0_i32, %c0_i32_0 : i32, i32, i32
  }
}

</mosaic_0001>

<bundles_post_ra>
// kernel: iscx_forward.1
= control target key start
LH: loop header
LB: loop body
LE: loop exit
PB: predicated region body
PF: predicated region fallthrough
CT: control target
= control target key end

     0   :  { %s4213_s18 = smov 0   ;;  %s7037_s0 = inlined_call_operand.vmem [shape: f32[2,3,342], index: 0, kind: input, shape index: {}]   ;;  %s7038_s1 = inlined_call_operand.vmem [shape: f32[11,3,32,1], index: 1, kind: input, shape index: {}]   ;;  %s7039_s2 = inlined_call_operand.vmem [shape: f32[128,1], index: 2, kind: input, shape index: {}]   ;;  %s7040_s3 = inlined_call_operand.vmem [shape: f32[32,128], index: 3, kind: input, shape index: {}]   ;;  %s7041_s4 = inlined_call_operand.vmem [shape: f32[32,1], index: 4, kind: input, shape index: {}]   ;;  %s7042_s5 = inlined_call_operand.vmem [shape: f32[2,192,304], index: 5, kind: output, shape index: {}]  }
   0x1 LB: > { %s3989_s19 = sadd.s32 4294967295, %s4175_s18   ;;  %p3993_p0 = scmp.ge.s32.totalorder %s4175_s18, 1  ;;  %s4175_s18 = sphi %s4213_s18, %s15_s18  }
   0x2   : > { %p187_p1 = scmp.lt.s32.totalorder %s4175_s18, 3 }
   0x4   : > { %p188_p2 = pnand %p3993_p0, %p187_p1 }
   0x6   : > { %191 = sbr.rel (%p188_p2) target bundleno = 3767 (0xeb7), region = 40 }
   0xb   : > { %v3996_v0 = vld [vmem:[%s7038_s1 + $0x20] sm:$0xff]  ;;  %v227_v1 = vld [vmem:[%s7038_s1 + $0x10] sm:$0xff]  ;;  %v4177_v3 = vmov 0   ;;  %v3997_v4 = vld [vmem:[%s7038_s1 + $0x28] sm:$0xff]  ;;  %p215_p3 = scmp.lt.s32.totalorder %s3989_s19, 1  ;;  %vm447_vm0 = vcmask 392192  }
   0xc   : > { %v225_v2 = vld [vmem:[%s7038_s1] sm:$0xff]  ;;  %4168 = vset.pattern.permute.xlu2 %v4177_v3  ;;  %4167 = vset.pattern.permute.xlu1 %v4177_v3  ;;  %v228_v5 = vld [vmem:[%s7038_s1 + $0x18] sm:$0xff]  ;;  %v226_v6 = vld [vmem:[%s7038_s1 + $0x8] sm:$0xff]  ;;  %s4178_s24 = smov 127   ;;  %vm702_vm1 = vcmask 1039360   ;;  %vm1564_vm2 = vcmask 1031168  }
   0xd   : > { %4166 = vset.pattern.permute.xlu0 %v4177_v3  ;;  %290 = vperm.xlu2 %4168, %v3996_v0   ;;  %v4001_v7 = vld [vmem:[%s7038_s1 + $0x40] sm:$0xff]  ;;  %v3999_v8 = vld [vmem:[%s7038_s1 + $0x38] sm:$0xff]  ;;  %v3998_v9 = vld [vmem:[%s7038_s1 + $0x30] sm:$0xff]  ;;  %s7359_s19 = smov (!%p215_p3, %s3989_s19), 1  ;;  %vm1880_vm3 = vcmask 1022976   ;;  %s4181_s16 = smov 109  }
   0xe   : > { %242 = vperm.xlu1 %4167, %v227_v1   ;;  %232 = vperm.xlu0 %4166, %v225_v2   ;;  %v4004_v10 = vld [vmem:[%s7038_s1 + $0x58] sm:$0xff]  ;;  %v4003_v11 = vld [vmem:[%s7038_s1 + $0x50] sm:$0xff]  ;;  %v4002_v12 = vld [vmem:[%s7038_s1 + $0x48] sm:$0xff]  ;;  %s4150_s15 = smul.u32 12, %s7359_s19  ;;  %vm2742_vm4 = vcmask 891904   ;;  %s4182_s22 = smov 108  }
   0xf   : > { %v399_v13 = vld [vmem:[%s7039_s2 + $0x10] sm:$0xff]  ;;  %v398_v14 = vld [vmem:[%s7039_s2 + $0x8] sm:$0xff]  ;;  %v397_v15 = vld [vmem:[%s7039_s2] sm:$0xff]  ;;  %s4151_s21 = smul.u32 576, %s7359_s19  ;;  %vm3058_vm5 = vcmask 883712   ;;  %vm3543_vm6 = vcmask 228352  }
  0x10   : > { %v4007_v16 = vld [vmem:[%s7038_s1 + $0x68] sm:$0xff]  ;;  %v4006_v17 = vld [vmem:[%s7038_s1 + $0x60] sm:$0xff]  ;;  %v400_v18 = vld [vmem:[%s7039_s2 + $0x18] sm:$0xff]  ;;  %s4332_s20 = scalar_lea.vmem %s7037_s0, %s4150_s15  ;;  %s4179_s15 = smov 126   ;;  %vm3556_vm7 = vcmask 64512  }
  0x11   : > { %v4010_v19 = vld [vmem:[%s7038_s1 + $0x80] sm:$0xff]  ;;  %v4009_v20 = vld [vmem:[%s7038_s1 + $0x78] sm:$0xff]  ;;  %v4008_v21 = vld [vmem:[%s7038_s1 + $0x70] sm:$0xff]  ;;  %s4380_s23 = scalar_lea.vmem %s7042_s5, %s4151_s21 }
  0x12   : > { %v4013_v22 = vld [vmem:[%s7038_s1 + $0x98] sm:$0xff]  ;;  %v4012_v23 = vld [vmem:[%s7038_s1 + $0x90] sm:$0xff]  ;;  %v4011_v24 = vld [vmem:[%s7038_s1 + $0x88] sm:$0xff] }
  0x13   : > { %v4017_v25 = vld [vmem:[%s7038_s1 + $0xb0] sm:$0xff]  ;;  %v4016_v26 = vld [vmem:[%s7038_s1 + $0xa8] sm:$0xff]  ;;  %v4015_v27 = vld [vmem:[%s7038_s1 + $0xa0] sm:$0xff] }
  0x14   : > { %v4021_v28 = vld [vmem:[%s7038_s1 + $0xc8] sm:$0xff]  ;;  %v4020_v29 = vld [vmem:[%s7038_s1 + $0xc0] sm:$0xff]  ;;  %v4018_v30 = vld [vmem:[%s7038_s1 + $0xb8] sm:$0xff] }
  0x15   : > { %295 = vperm.xlu2 %4168, %v3997_v4   ;;  %v4024_v31 = vld [vmem:[%s7038_s1 + $0xe0] sm:$0xff]  ;;  %v4023_v32 = vld [vmem:[%s7038_s1 + $0xd8] sm:$0xff]  ;;  %v4022_v33 = vld [vmem:[%s7038_s1 + $0xd0] sm:$0xff] }
  0x16   : > { %247 = vperm.xlu1 %4167, %v228_v5   ;;  %237 = vperm.xlu0 %4166, %v226_v6   ;;  %v4000_v41 = vld [vmem:[%s4332_s20 + $0x1] ss:$4 sm:$0x7]  ;;  %v4005_v42 = vld [vmem:[%s4332_s20 + $0x2] ss:$4 sm:$0x7] }
  0x17   : > { %v229_v43 = vld [vmem:[%s4332_s20] ss:$4 sm:$0x7]  ;;  %v309_v44 = vperm.slane %v4000_v41, 0  ;;  %v4337_v45 = vperm.slane %v4000_v41, 1  ;;  %v4339_v46 = vperm.slane %v4000_v41, 2 }
  0x18   : > { %v4343_v49 = vperm.slane %v4005_v42, 0  ;;  %v4345_v50 = vperm.slane %v4005_v42, 1  ;;  %v251_v52 = vperm.slane %v229_v43, 0  ;;  %v4349_v53 = vperm.slane %v4005_v42, 2 }
  0x19   : > { %v4351_v54 = vperm.slane %v229_v43, 1  ;;  %v4353_v55 = vperm.slane %v229_v43, 2 }
  0x1d   : > { %348 = vperm.xlu2 %4168, %v4001_v7  }
  0x1e   : > { %305 = vperm.xlu1 %4167, %v3999_v8   ;;  %300 = vperm.xlu0 %4166, %v3998_v9  }
  0x25   : > { %363 = vperm.xlu2 %4168, %v4004_v10  }
  0x26   : > { %358 = vperm.xlu1 %4167, %v4003_v11   ;;  %353 = vperm.xlu0 %4166, %v4002_v12  }
  0x2d   : > { %413 = vperm.xlu2 %4168, %v399_v13  }
  0x2e   : > { %408 = vperm.xlu1 %4167, %v398_v14   ;;  %403 = vperm.xlu0 %4166, %v397_v15  }
  0x35   : > { %471 = vperm.xlu2 %4168, %v4007_v16  }
  0x36   : > { %466 = vperm.xlu1 %4167, %v4006_v17   ;;  %418 = vperm.xlu0 %4166, %v400_v18  }
  0x3d   : > { %523 = vperm.xlu2 %4168, %v4010_v19  }
  0x3e   : > { %481 = vperm.xlu1 %4167, %v4009_v20   ;;  %476 = vperm.xlu0 %4166, %v4008_v21  }
  0x45   : > { %538 = vperm.xlu2 %4168, %v4013_v22  }
  0x46   : > { %533 = vperm.xlu1 %4167, %v4012_v23   ;;  %528 = vperm.xlu0 %4166, %v4011_v24  }
  0x4d   : > { %590 = vperm.xlu2 %4168, %v4017_v25  }
  0x4e   : > { %585 = vperm.xlu1 %4167, %v4016_v26   ;;  %580 = vperm.xlu0 %4166, %v4015_v27  }
  0x55   : > { %641 = vperm.xlu2 %4168, %v4021_v28  }
  0x56   : > { %636 = vperm.xlu1 %4167, %v4020_v29   ;;  %595 = vperm.xlu0 %4166, %v4018_v30  }
  0x5d   : > { %742 = vperm.xlu2 %4168, %v4024_v31  }
  0x5e   : > { %651 = vperm.xlu1 %4167, %v4023_v32   ;;  %646 = vperm.xlu0 %4166, %v4022_v33  }
  0x67   : > { %v291_v34 = vpop.permute.xlu2 %290 }
  0x68   : > { %v315_v56 = vmul.f32 %v309_v44, %v291_v34  ;;  %v316_v57 = vmul.f32 %v4337_v45, %v291_v34  ;;  %v317_v58 = vmul.f32 %v4339_v46, %v291_v34 }
  0x6f   : > { %v296_v35 = vpop.permute.xlu2 %295 }
  0x70   : > { %v318_v60 = vmul.f32 %v309_v44, %v296_v35  ;;  %v319_v61 = vmul.f32 %v4337_v45, %v296_v35  ;;  %v320_v0 = vmul.f32 %v4339_v46, %v296_v35 }
  0x77   : > { %v349_v38 = vpop.permute.xlu2 %348 }
  0x78   : > { %v373_v1 = vmul.f32 %v4343_v49, %v349_v38  ;;  %v374_v2 = vmul.f32 %v4345_v50, %v349_v38  ;;  %v375_v4 = vmul.f32 %v4349_v53, %v349_v38 }
  0x7f   : > { %v4347_v51 = vpop.permute.xlu2 %363 }
  0x80   : > { %v243_v36 = vpop.permute.xlu1 %242  ;;  %v233_v37 = vpop.permute.xlu0 %232 }
  0x81   : > { %v257_v59 = vmul.f32 %v251_v52, %v233_v37  ;;  %v263_v5 = vmul.f32 %v251_v52, %v243_v36  ;;  %v264_v6 = vmul.f32 %v4351_v54, %v243_v36  ;;  %v258_v7 = vmul.f32 %v4351_v54, %v233_v37 }
  0x82   : > { %v265_v8 = vmul.f32 %v4353_v55, %v243_v36  ;;  %v259_v9 = vmul.f32 %v4353_v55, %v233_v37 }
  0x83   : > { %v327_v10 = vadd.f32 %v315_v56, %v257_v59  ;;  %v328_v22 = vadd.f32 %v316_v57, %v258_v7 }
  0x84   : > { %v329_v30 = vadd.f32 %v317_v58, %v259_v9 }
  0x85   : > { %v385_v33 = vadd.f32 %v373_v1, %v327_v10  ;;  %v386_v42 = vadd.f32 %v374_v2, %v328_v22  ;;  %v383_v10 = vmul.f32 %v4345_v50, %v4347_v51 }
  0x87   : > { %v414_v25 = vpop.permute.xlu2 %413 }
  0x88   : > { %v4327_v39 = vpop.permute.xlu1 %247  ;;  %v238_v40 = vpop.permute.xlu0 %237 }
  0x89   : > { %v260_v11 = vmul.f32 %v251_v52, %v238_v40  ;;  %v261_v12 = vmul.f32 %v4351_v54, %v238_v40  ;;  %v262_v13 = vmul.f32 %v4353_v55, %v238_v40  ;;  %v266_v58 = vmul.f32 %v251_v52, %v4327_v39 }
  0x8a   : > { %v268_v52 = vmul.f32 %v4353_v55, %v4327_v39 }
  0x8b   : > { %v330_v31 = vadd.f32 %v318_v60, %v260_v11  ;;  %v331_v32 = vadd.f32 %v319_v61, %v261_v12  ;;  %v332_v34 = vadd.f32 %v320_v0, %v262_v13  ;;  %v384_v11 = vmul.f32 %v4349_v53, %v4347_v51 }
  0x90   : > { %v4341_v47 = vpop.permute.xlu1 %305  ;;  %v301_v48 = vpop.permute.xlu0 %300 }
  0x91   : > { %v321_v62 = vmul.f32 %v309_v44, %v301_v48  ;;  %v322_v63 = vmul.f32 %v4337_v45, %v301_v48  ;;  %v323_v3 = vmul.f32 %v4339_v46, %v301_v48  ;;  %v324_v38 = vmul.f32 %v309_v44, %v4341_v47 }
  0x92   : > { %v325_v59 = vmul.f32 %v4337_v45, %v4341_v47  ;;  %v326_v60 = vmul.f32 %v4339_v46, %v4341_v47  ;;  %v387_v44 = vadd.f32 %v375_v4, %v329_v30 }
  0x93   : > { %v333_v14 = vadd.f32 %v321_v62, %v263_v5  ;;  %v334_v15 = vadd.f32 %v322_v63, %v264_v6  ;;  %v335_v18 = vadd.f32 %v323_v3, %v265_v8  ;;  %v267_v3 = vmul.f32 %v4351_v54, %v4327_v39  ;;  %v4398_v39 = vpop.permute.xlu2 %471 }
  0x94   : > { %v336_v46 = vadd.f32 %v324_v38, %v266_v58  ;;  %v338_v8 = vadd.f32 %v326_v60, %v268_v52  ;;  %v382_v54 = vmul.f32 %v4343_v49, %v4347_v51 }
  0x95   : > { %v337_v7 = vadd.f32 %v325_v59, %v267_v3 }
  0x96   : > { %v394_v13 = vadd.f32 %v382_v54, %v336_v46 }
  0x98   : > { %v359_v16 = vpop.permute.xlu1 %358  ;;  %v354_v17 = vpop.permute.xlu0 %353 }
  0x99   : > { %v379_v19 = vmul.f32 %v4343_v49, %v359_v16  ;;  %v380_v20 = vmul.f32 %v4345_v50, %v359_v16  ;;  %v381_v21 = vmul.f32 %v4349_v53, %v359_v16  ;;  %v376_v23 = vmul.f32 %v4343_v49, %v354_v17 }
  0x9a   : > { %v377_v24 = vmul.f32 %v4345_v50, %v354_v17  ;;  %v378_v29 = vmul.f32 %v4349_v53, %v354_v17  ;;  %v396_v16 = vadd.f32 %v384_v11, %v338_v8 }
  0x9b   : > { %v391_v26 = vadd.f32 %v379_v19, %v333_v14  ;;  %v392_v27 = vadd.f32 %v380_v20, %v334_v15  ;;  %v393_v28 = vadd.f32 %v381_v21, %v335_v18  ;;  %v388_v40 = vadd.f32 %v376_v23, %v330_v31  ;;  %v4416_v20 = vpop.permute.xlu2 %523 }
  0x9c   : > { %v389_v41 = vadd.f32 %v377_v24, %v331_v32  ;;  %v390_v57 = vadd.f32 %v378_v29, %v332_v34  ;;  %v395_v15 = vadd.f32 %v383_v10, %v337_v7 }
  0x9d   : > { %v427_v35 = vadd.f32 %v414_v25, %v391_v26  ;;  %v428_v36 = vadd.f32 %v414_v25, %v392_v27  ;;  %v429_v37 = vadd.f32 %v414_v25, %v393_v28  ;;  %v463_v28 = vld [vmem:[%s4332_s20] ss:$4 sm:$0x7] }
  0x9e   : > { %v4437_v30 = vperm.slane %v463_v28, 2  ;;  %v4439_v31 = vperm.slane %v463_v28, 0  ;;  %v4441_v32 = vperm.slane %v463_v28, 1 }
  0x9f   : > { %v439_v43 = vmax.f32 %v427_v35, 0.0  ;;  %v440_v48 = vmax.f32 %v428_v36, 0.0  ;;  %v441_v56 = vmax.f32 %v429_v37, 0.0 }
  0xa0   : > { %v409_v61 = vpop.permute.xlu1 %408  ;;  %v404_v62 = vpop.permute.xlu0 %403 }
  0xa1   : > { %452 = vst [vmem:[%s4380_s23 + $0x30] sm:$0xff] %v439_v43  ;;  %v424_v63 = vadd.f32 %v409_v61, %v388_v40  ;;  %v425_v0 = vadd.f32 %v409_v61, %v389_v41  ;;  %v426_v1 = vadd.f32 %v409_v61, %v390_v57  ;;  %v421_v2 = vadd.f32 %v404_v62, %v385_v33 }
  0xa2   : > { %453 = vst [vmem:[%s4380_s23 + $0x38] sm:$0xff] %v440_v48  ;;  %v422_v45 = vadd.f32 %v404_v62, %v386_v42  ;;  %v423_v5 = vadd.f32 %v404_v62, %v387_v44  ;;  %v4026_v62 = vld [vmem:[%s7038_s1 + $0xf0] sm:$0xff]  ;;  %v4025_v44 = vld [vmem:[%s7038_s1 + $0xe8] sm:$0xff] }
  0xa3   : > { %454 = vst.msk [vmem:[%s4380_s23 + $0x40] sm:$0xff] %vm447_vm0, %v441_v56  ;;  %v436_v47 = vmax.f32 %v424_v63, 0.0  ;;  %v437_v4 = vmax.f32 %v425_v0, 0.0  ;;  %v438_v6 = vmax.f32 %v426_v1, 0.0  ;;  %v433_v9 = vmax.f32 %v421_v2, 0.0  ;;  %v4428_v25 = vpop.permute.xlu2 %538  ;;  %v4027_v63 = vld [vmem:[%s7038_s1 + $0xf8] sm:$0xff] }
  0xa4   : > { %v434_v55 = vmax.f32 %v422_v45, 0.0  ;;  %v435_v12 = vmax.f32 %v423_v5, 0.0  ;;  %v4014_v0 = vld [vmem:[%s4332_s20 + $0x1] ss:$4 sm:$0x7] }
  0xa5   : > { %449 = vst [vmem:[%s4380_s23 + $0x18] sm:$0xff] %v436_v47  ;;  %v4479_v2 = vperm.slane %v4014_v0, 1  ;;  %v4481_v3 = vperm.slane %v4014_v0, 0  ;;  %v4483_v52 = vperm.slane %v4014_v0, 2 }
  0xa6   : > { %450 = vst [vmem:[%s4380_s23 + $0x20] sm:$0xff] %v437_v4 }
  0xa7   : > { %451 = vst.msk [vmem:[%s4380_s23 + $0x28] sm:$0xff] %vm447_vm0, %v438_v6 }
  0xa8   : > { %445 = vst [vmem:[%s4380_s23] sm:$0xff] %v433_v9  ;;  %v4409_v49 = vpop.permute.xlu1 %466  ;;  %v419_v14 = vpop.permute.xlu0 %418 }
  0xa9   : > { %446 = vst [vmem:[%s4380_s23 + $0x8] sm:$0xff] %v434_v55  ;;  %v430_v17 = vadd.f32 %v419_v14, %v394_v13  ;;  %v431_v50 = vadd.f32 %v419_v14, %v395_v15  ;;  %v432_v51 = vadd.f32 %v419_v14, %v396_v16 }
  0xaa   : > { %448 = vst.msk [vmem:[%s4380_s23 + $0x10] sm:$0xff] %vm447_vm0, %v435_v12 }
  0xab   : > { %v442_v53 = vmax.f32 %v430_v17, 0.0  ;;  %v443_v18 = vmax.f32 %v431_v50, 0.0  ;;  %v444_v19 = vmax.f32 %v432_v51, 0.0  ;;  %v4435_v29 = vpop.permute.xlu2 %590 }
  0xad   : > { %455 = vst [vmem:[%s4380_s23 + $0x48] sm:$0xff] %v442_v53 }
  0xae   : > { %456 = vst [vmem:[%s4380_s23 + $0x50] sm:$0xff] %v443_v18 }
  0xaf   : > { %457 = vst.msk [vmem:[%s4380_s23 + $0x58] sm:$0xff] %vm447_vm0, %v444_v19 }
  0xb0   : > { %v4420_v21 = vpop.permute.xlu1 %481  ;;  %v4422_v22 = vpop.permute.xlu0 %476 }
  0xb3   : > { %v642_v38 = vpop.permute.xlu2 %641 }
  0xb4   : > { %v659_v40 = vmul.f32 %v642_v38, %v4437_v30  ;;  %v658_v41 = vmul.f32 %v642_v38, %v4441_v32  ;;  %v657_v42 = vmul.f32 %v642_v38, %v4439_v31  ;;  %v4030_v38 = vld [vmem:[%s7038_s1 + $0x110] sm:$0xff] }
  0xb8   : > { %v4424_v23 = vpop.permute.xlu1 %533  ;;  %v4426_v24 = vpop.permute.xlu0 %528 }
  0xbb   : > { %v743_v1 = vpop.permute.xlu2 %742 }
  0xbc   : > { %v761_v45 = vmul.f32 %v743_v1, %v4479_v2  ;;  %v760_v5 = vmul.f32 %v743_v1, %v4481_v3  ;;  %v762_v46 = vmul.f32 %v743_v1, %v4483_v52 }
  0xc0   : > { %v4430_v26 = vpop.permute.xlu1 %585  ;;  %v4432_v27 = vpop.permute.xlu0 %580 }
  0xc8   : > { %v637_v33 = vpop.permute.xlu1 %636  ;;  %v4447_v37 = vpop.permute.xlu0 %595 }
  0xc9   : > { %v656_v34 = vmul.f32 %v637_v33, %v4437_v30  ;;  %v655_v35 = vmul.f32 %v637_v33, %v4441_v32  ;;  %v654_v36 = vmul.f32 %v637_v33, %v4439_v31 }
  0xcb   : > { %682 = vrot.lane.b32.xlu1 %v656_v34, %s4178_s24  ;;  %680 = vrot.lane.b32.xlu0 %v655_v35, %s4178_s24  ;;  %v4029_v35 = vld [vmem:[%s7038_s1 + $0x108] sm:$0xff] }
  0xcc   : > { %678 = vrot.lane.b32.xlu2 %v654_v36, %s4178_s24  ;;  %v4028_v36 = vld [vmem:[%s7038_s1 + $0x100] sm:$0xff] }
  0xd0   : > { %v647_v43 = vpop.permute.xlu0 %646  ;;  %v652_v58 = vpop.permute.xlu1 %651 }
  0xd1   : > { %v662_v48 = vmul.f32 %v647_v43, %v4437_v30  ;;  %v661_v56 = vmul.f32 %v647_v43, %v4441_v32  ;;  %v660_v57 = vmul.f32 %v647_v43, %v4439_v31  ;;  %v665_v59 = vmul.f32 %v652_v58, %v4437_v30 }
  0xd2   : > { %v664_v60 = vmul.f32 %v652_v58, %v4441_v32  ;;  %v663_v61 = vmul.f32 %v652_v58, %v4439_v31 }
  0xd3   : > { %688 = vrot.lane.b32.xlu1 %v659_v40, %s4178_s24  ;;  %686 = vrot.lane.b32.xlu0 %v658_v41, %s4178_s24  ;;  %v4031_v40 = vld [vmem:[%s7038_s1 + $0x118] sm:$0xff] }
  0xd4   : > { %684 = vrot.lane.b32.xlu2 %v657_v42, %s4178_s24 }
  0xdb   : > { %694 = vrot.lane.b32.xlu1 %v662_v48, %s4178_s24  ;;  %692 = vrot.lane.b32.xlu0 %v661_v56, %s4178_s24 }
  0xdc   : > { %690 = vrot.lane.b32.xlu2 %v660_v57, %s4178_s24 }
  0xe3   : > { %700 = vrot.lane.b32.xlu1 %v665_v59, %s4178_s24  ;;  %698 = vrot.lane.b32.xlu0 %v664_v60, %s4178_s24 }
  0xe4   : > { %696 = vrot.lane.b32.xlu2 %v663_v61, %s4178_s24 }
  0xeb   : > { %752 = vperm.xlu1 %4167, %v4026_v62   ;;  %747 = vperm.xlu0 %4166, %v4025_v44   ;;  %v4019_v62 = vld [vmem:[%s4332_s20 + $0x2] ss:$4 sm:$0x7] }
  0xec   : > { %757 = vperm.xlu2 %4168, %v4027_v63   ;;  %v4568_v63 = vperm.slane %v4019_v62, 0  ;;  %v4570_v0 = vperm.slane %v4019_v62, 1  ;;  %v4572_v1 = vperm.slane %v4019_v62, 2  ;;  %v945_v62 = vld [vmem:[%s7039_s2 + $0x20] sm:$0xff] }
  0xf3   : > { %786 = vrot.lane.b32.xlu1 %v761_v45, %s4178_s24  ;;  %784 = vrot.lane.b32.xlu0 %v760_v5, %s4178_s24 }
  0xf4   : > { %788 = vrot.lane.b32.xlu2 %v762_v46, %s4178_s24 }
 0x126   : > { %v4495_v6 = vpop.permute.xlu2 %678 }
 0x12e   : > { %v4501_v9 = vpop.permute.xlu2 %684 }
 0x136   : > { %v4509_v11 = vpop.permute.xlu2 %690 }
 0x13d   : > { %v4491_v47 = vpop.permute.xlu1 %682  ;;  %v4493_v4 = vpop.permute.xlu0 %680 }
 0x13e   : > { %v4518_v17 = vpop.permute.xlu2 %696 }
 0x145   : > { %v4497_v7 = vpop.permute.xlu1 %688  ;;  %v4499_v8 = vpop.permute.xlu0 %686 }
 0x146   : > { %v758_v19 = vpop.permute.xlu2 %757 }
 0x147   : > { %v770_v28 = vmul.f32 %v758_v19, %v4479_v2  ;;  %v769_v33 = vmul.f32 %v758_v19, %v4481_v3  ;;  %v771_v34 = vmul.f32 %v758_v19, %v4483_v52 }
 0x14d   : > { %v4503_v54 = vpop.permute.xlu0 %692  ;;  %v4505_v55 = vpop.permute.xlu1 %694 }
 0x14e   : > { %v4549_v43 = vpop.permute.xlu2 %788 }
 0x155   : > { %v4507_v10 = vpop.permute.xlu0 %698  ;;  %v4511_v12 = vpop.permute.xlu1 %700 }
 0x15d   : > { %v748_v13 = vpop.permute.xlu0 %747  ;;  %v753_v50 = vpop.permute.xlu1 %752 }
 0x15e   : > { %v764_v14 = vmul.f32 %v748_v13, %v4479_v2  ;;  %v763_v15 = vmul.f32 %v748_v13, %v4481_v3  ;;  %v765_v16 = vmul.f32 %v748_v13, %v4483_v52  ;;  %v767_v51 = vmul.f32 %v753_v50, %v4479_v2 }
 0x15f   : > { %v766_v53 = vmul.f32 %v753_v50, %v4481_v3  ;;  %v768_v18 = vmul.f32 %v753_v50, %v4483_v52 }
 0x160   : > { %792 = vrot.lane.b32.xlu1 %v764_v14, %s4178_s24  ;;  %790 = vrot.lane.b32.xlu0 %v763_v15, %s4178_s24 }
 0x161   : > { %794 = vrot.lane.b32.xlu2 %v765_v16, %s4178_s24 }
 0x165   : > { %v4545_v41 = vpop.permute.xlu1 %786  ;;  %v4547_v42 = vpop.permute.xlu0 %784 }
 0x168   : > { %798 = vrot.lane.b32.xlu1 %v767_v51, %s4178_s24  ;;  %796 = vrot.lane.b32.xlu0 %v766_v53, %s4178_s24 }
 0x169   : > { %800 = vrot.lane.b32.xlu2 %v768_v18, %s4178_s24 }
 0x170   : > { %804 = vrot.lane.b32.xlu1 %v770_v28, %s4178_s24  ;;  %802 = vrot.lane.b32.xlu0 %v769_v33, %s4178_s24 }
 0x171   : > { %806 = vrot.lane.b32.xlu2 %v771_v34, %s4178_s24 }
 0x178   : > { %852 = vperm.xlu1 %4167, %v4029_v35   ;;  %847 = vperm.xlu0 %4166, %v4028_v36  }
 0x179   : > { %857 = vperm.xlu2 %4168, %v4030_v38   ;;  %v947_v38 = vld [vmem:[%s7039_s2 + $0x30] sm:$0xff] }
 0x180   : > { %862 = vperm.xlu0 %4166, %v4031_v40   ;;  %v946_v40 = vld [vmem:[%s7039_s2 + $0x28] sm:$0xff] }
 0x1bb   : > { %v4555_v57 = vpop.permute.xlu2 %794 }
 0x1c3   : > { %v4563_v61 = vpop.permute.xlu2 %800 }
 0x1cb   : > { %v4579_v14 = vpop.permute.xlu2 %806 }
 0x1d2   : > { %v4551_v48 = vpop.permute.xlu1 %792  ;;  %v4553_v56 = vpop.permute.xlu0 %790 }
 0x1d3   : > { %v858_v53 = vpop.permute.xlu2 %857 }
 0x1d4   : > { %v873_v18 = vmul.f32 %v858_v53, %v4572_v1  ;;  %v872_v19 = vmul.f32 %v858_v53, %v4570_v0  ;;  %v871_v28 = vmul.f32 %v858_v53, %v4568_v63  ;;  %v4037_v53 = vld [vmem:[%s7038_s1 + $0x148] sm:$0xff] }
 0x1da   : > { %v4557_v58 = vpop.permute.xlu0 %796  ;;  %v4559_v59 = vpop.permute.xlu1 %798 }
 0x1e2   : > { %v4561_v60 = vpop.permute.xlu0 %802  ;;  %v4566_v44 = vpop.permute.xlu1 %804 }
 0x1e3   : > { %7120 = vst [vmem:[#allocation3_spill] sm:$0xff] %v4561_v60 }
 0x1e4   : > { %7121 = vst [vmem:[#allocation4_spill] sm:$0xff] %v4566_v44 }
 0x1ea   : > { %v848_v45 = vpop.permute.xlu0 %847  ;;  %v853_v15 = vpop.permute.xlu1 %852 }
 0x1eb   : > { %v867_v5 = vmul.f32 %v848_v45, %v4572_v1  ;;  %v866_v46 = vmul.f32 %v848_v45, %v4570_v0  ;;  %v865_v13 = vmul.f32 %v848_v45, %v4568_v63  ;;  %v870_v16 = vmul.f32 %v853_v15, %v4572_v1  ;;  %v4033_v45 = vld [vmem:[%s7038_s1 + $0x128] sm:$0xff] }
 0x1ec   : > { %v869_v50 = vmul.f32 %v853_v15, %v4570_v0  ;;  %v868_v51 = vmul.f32 %v853_v15, %v4568_v63  ;;  %v4035_v15 = vld [vmem:[%s7038_s1 + $0x138] sm:$0xff] }
 0x1ed   : > { %893 = vrot.lane.b32.xlu0 %v867_v5, %s4178_s24  ;;  %891 = vrot.lane.b32.xlu2 %v866_v46, %s4178_s24  ;;  %v4032_v5 = vld [vmem:[%s7038_s1 + $0x120] sm:$0xff]  ;;  %v948_v46 = vld [vmem:[%s7039_s2 + $0x38] sm:$0xff] }
 0x1ee   : > { %889 = vrot.lane.b32.xlu1 %v865_v13, %s4178_s24  ;;  %v4036_v13 = vld [vmem:[%s7038_s1 + $0x140] sm:$0xff] }
 0x1f2   : > { %v863_v33 = vpop.permute.xlu0 %862 }
 0x1f3   : > { %v876_v34 = vmul.f32 %v863_v33, %v4572_v1  ;;  %v875_v35 = vmul.f32 %v863_v33, %v4570_v0  ;;  %v874_v36 = vmul.f32 %v863_v33, %v4568_v63  ;;  %v4047_v33 = vld [vmem:[%s7038_s1 + $0x188] sm:$0xff] }
 0x1f5   : > { %899 = vrot.lane.b32.xlu0 %v870_v16, %s4178_s24  ;;  %897 = vrot.lane.b32.xlu2 %v869_v50, %s4178_s24  ;;  %v4034_v16 = vld [vmem:[%s7038_s1 + $0x130] sm:$0xff]  ;;  %v4039_v50 = vld [vmem:[%s7038_s1 + $0x158] sm:$0xff] }
 0x1f6   : > { %895 = vrot.lane.b32.xlu1 %v868_v51, %s4178_s24  ;;  %v4038_v51 = vld [vmem:[%s7038_s1 + $0x150] sm:$0xff] }
 0x1fd   : > { %905 = vrot.lane.b32.xlu0 %v873_v18, %s4178_s24  ;;  %903 = vrot.lane.b32.xlu2 %v872_v19, %s4178_s24  ;;  %v4043_v18 = vld [vmem:[%s7038_s1 + $0x170] sm:$0xff]  ;;  %v4042_v19 = vld [vmem:[%s7038_s1 + $0x168] sm:$0xff] }
 0x1fe   : > { %901 = vrot.lane.b32.xlu1 %v871_v28, %s4178_s24  ;;  %v4041_v28 = vld [vmem:[%s7038_s1 + $0x160] sm:$0xff] }
 0x205   : > { %911 = vrot.lane.b32.xlu0 %v876_v34, %s4178_s24  ;;  %909 = vrot.lane.b32.xlu2 %v875_v35, %s4178_s24  ;;  %v4046_v34 = vld [vmem:[%s7038_s1 + $0x180] sm:$0xff]  ;;  %v4044_v35 = vld [vmem:[%s7038_s1 + $0x178] sm:$0xff] }
 0x206   : > { %907 = vrot.lane.b32.xlu1 %v874_v36, %s4178_s24  ;;  %v4049_v36 = vld [vmem:[%s7038_s1 + $0x198] sm:$0xff] }
 0x20d   : > { %961 = vperm.xlu0 %4166, %v947_v38   ;;  %956 = vperm.xlu2 %4168, %v946_v40   ;;  %v4048_v38 = vld [vmem:[%s7038_s1 + $0x190] sm:$0xff] }
 0x20e   : > { %951 = vperm.xlu1 %4167, %v945_v62  }
 0x215   : > { %1018 = vperm.xlu0 %4166, %v4033_v45   ;;  %1013 = vperm.xlu2 %4168, %v4032_v5   ;;  %v553_v5 = vmul.f32 %v4483_v52, %v4426_v24 }
 0x216   : > { %966 = vperm.xlu1 %4167, %v948_v46   ;;  %v552_v46 = vmul.f32 %v4479_v2, %v4426_v24 }
 0x21d   : > { %1070 = vperm.xlu0 %4166, %v4036_v13   ;;  %1028 = vperm.xlu2 %4168, %v4035_v15   ;;  %v496_v13 = vmul.f32 %v4437_v30, %v4398_v39  ;;  %v551_v15 = vmul.f32 %v4481_v3, %v4426_v24 }
 0x21e   : > { %1023 = vperm.xlu1 %4167, %v4034_v16   ;;  %v610_v16 = vmul.f32 %v4572_v1, %v4430_v26 }
 0x21f   : > { %v565_v24 = vadd.f32 %v553_v5, %v496_v13 }
 0x225   : > { %1085 = vperm.xlu0 %4166, %v4039_v50   ;;  %1080 = vperm.xlu2 %4168, %v4038_v51   ;;  %v495_v50 = vmul.f32 %v4441_v32, %v4398_v39  ;;  %v609_v51 = vmul.f32 %v4570_v0, %v4430_v26 }
 0x226   : > { %1075 = vperm.xlu1 %4167, %v4037_v53  }
 0x22d   : > { %1137 = vperm.xlu0 %4166, %v4043_v18   ;;  %1132 = vperm.xlu2 %4168, %v4042_v19   ;;  %v494_v19 = vmul.f32 %v4439_v31, %v4398_v39 }
 0x22e   : > { %1127 = vperm.xlu1 %4167, %v4041_v28   ;;  %v608_v28 = vmul.f32 %v4568_v63, %v4430_v26  ;;  %v811_v26 = vsel %vm702_vm1, %v4551_v48, %v4555_v57 }
 0x235   : > { %1188 = vperm.xlu0 %4166, %v4047_v33   ;;  %1183 = vperm.xlu2 %4168, %v4046_v34   ;;  %v564_v34 = vadd.f32 %v552_v46, %v495_v50  ;;  %v810_v46 = vsel %vm702_vm1, %v4553_v56, %v4551_v48  ;;  %v548_v48 = vmul.f32 %v4481_v3, %v4416_v20 }
 0x236   : > { %1142 = vperm.xlu1 %4167, %v4044_v35   ;;  %v563_v35 = vadd.f32 %v551_v15, %v494_v19  ;;  %v549_v56 = vmul.f32 %v4479_v2, %v4416_v20 }
 0x237   : > { %v621_v60 = vadd.f32 %v609_v51, %v564_v34 }
 0x238   : > { %v620_v44 = vadd.f32 %v608_v28, %v563_v35 }
 0x23d   : > { %1198 = vperm.xlu2 %4168, %v4049_v36   ;;  %v622_v36 = vadd.f32 %v610_v16, %v565_v24 }
 0x23e   : > { %1193 = vperm.xlu1 %4167, %v4048_v38   ;;  %v706_v38 = vsel %vm702_vm1, %v4499_v8, %v4497_v7 }
 0x23f   : > { %v728_v39 = vadd.f32 %v4497_v7, %v622_v36  ;;  %v727_v5 = vadd.f32 %v706_v38, %v621_v60  ;;  %v556_v36 = vmul.f32 %v4483_v52, %v4424_v23 }
 0x241   : > { %v833_v15 = vadd.f32 %v4555_v57, %v728_v39  ;;  %v832_v16 = vadd.f32 %v811_v26, %v727_v5  ;;  %v557_v39 = vmul.f32 %v4481_v3, %v4428_v25  ;;  %v558_v26 = vmul.f32 %v4479_v2, %v4428_v25 }
 0x242   : > { %v555_v5 = vmul.f32 %v4479_v2, %v4424_v23  ;;  %v500_v2 = vmul.f32 %v4439_v31, %v4420_v21 }
 0x247   : > { %v4660_v40 = vpop.permute.xlu2 %891 }
 0x24f   : > { %v898_v62 = vpop.permute.xlu2 %897 }
 0x257   : > { %v4662_v45 = vpop.permute.xlu2 %903 }
 0x25f   : > { %v4678_v53 = vpop.permute.xlu0 %893  ;;  %v4680_v18 = vpop.permute.xlu2 %909 }
 0x260   : > { %7122 = vst [vmem:[#allocation5_spill] sm:$0xff] %v4680_v18  ;;  %v4686_v33 = vpop.permute.xlu1 %889  ;;  %v705_v18 = vsel %vm702_vm1, %v4501_v9, %v4499_v8 }
 0x261   : > { %v726_v13 = vadd.f32 %v705_v18, %v620_v44  ;;  %v550_v18 = vmul.f32 %v4483_v52, %v4416_v20  ;;  %v559_v20 = vmul.f32 %v4483_v52, %v4428_v25  ;;  %v493_v25 = vmul.f32 %v4437_v30, %v4409_v49 }
 0x262   : > { %v498_v52 = vmul.f32 %v4441_v32, %v4422_v22 }
 0x263   : > { %v831_v19 = vadd.f32 %v810_v46, %v726_v13  ;;  %v491_v13 = vmul.f32 %v4439_v31, %v4409_v49 }
 0x267   : > { %v900_v50 = vpop.permute.xlu0 %899  ;;  %v957_v51 = vpop.permute.xlu2 %956 }
 0x268   : > { %v896_v8 = vpop.permute.xlu1 %895  ;;  %v916_v7 = vsel %vm702_vm1, %v898_v62, %v900_v50  ;;  %v938_v9 = vadd.f32 %v900_v50, %v833_v15  ;;  %v497_v15 = vmul.f32 %v4439_v31, %v4422_v22  ;;  %v605_v31 = vmul.f32 %v4568_v63, %v4432_v27 }
 0x269   : > { %v915_v28 = vsel %vm702_vm1, %v896_v8, %v898_v62  ;;  %v937_v24 = vadd.f32 %v916_v7, %v832_v16  ;;  %v554_v62 = vmul.f32 %v4481_v3, %v4424_v23  ;;  %v499_v3 = vmul.f32 %v4437_v30, %v4422_v22 }
 0x26a   : > { %v936_v60 = vadd.f32 %v915_v28, %v831_v19  ;;  %v974_v34 = vadd.f32 %v957_v51, %v938_v9  ;;  %v492_v23 = vmul.f32 %v4441_v32, %v4409_v49  ;;  %v501_v19 = vmul.f32 %v4441_v32, %v4420_v21 }
 0x26b   : > { %v973_v35 = vadd.f32 %v957_v51, %v937_v24  ;;  %v502_v8 = vmul.f32 %v4437_v30, %v4420_v21  ;;  %v566_v7 = vadd.f32 %v554_v62, %v497_v15  ;;  %v568_v9 = vadd.f32 %v556_v36, %v499_v3 }
 0x26c   : > { %v972_v57 = vadd.f32 %v957_v51, %v936_v60  ;;  %v986_v44 = vmax.f32 %v974_v34, 0.0  ;;  %v611_v28 = vmul.f32 %v4568_v63, %v4435_v29  ;;  %v567_v49 = vadd.f32 %v555_v5, %v498_v52 }
 0x26d   : > { %v985_v38 = vmax.f32 %v973_v35, 0.0  ;;  %v607_v22 = vmul.f32 %v4572_v1, %v4432_v27  ;;  %v612_v24 = vmul.f32 %v4570_v0, %v4435_v29  ;;  %v613_v32 = vmul.f32 %v4572_v1, %v4435_v29 }
 0x26e   : > { %v984_v46 = vmax.f32 %v972_v57, 0.0  ;;  %998 = vst.msk [vmem:[%s4380_s23 + $0x88] sm:$0xff] %vm447_vm0, %v986_v44  ;;  %v560_v60 = vadd.f32 %v548_v48, %v491_v13  ;;  %v606_v21 = vmul.f32 %v4570_v0, %v4432_v27  ;;  %v561_v30 = vadd.f32 %v549_v56, %v492_v23 }
 0x26f   : > { %997 = vst [vmem:[%s4380_s23 + $0x80] sm:$0xff] %v985_v38  ;;  %v4731_v16 = vpop.permute.xlu0 %905  ;;  %v4733_v50 = vpop.permute.xlu2 %1013  ;;  %v569_v34 = vadd.f32 %v557_v39, %v500_v2  ;;  %v616_v35 = vmul.f32 %v4572_v1, %v4447_v37  ;;  %v562_v57 = vadd.f32 %v550_v18, %v493_v25  ;;  %v570_v44 = vadd.f32 %v558_v26, %v501_v19 }
 0x270   : > { %996 = vst [vmem:[%s4380_s23 + $0x78] sm:$0xff] %v984_v46  ;;  %v902_v51 = vpop.permute.xlu1 %901  ;;  %v625_v62 = vadd.f32 %v613_v32, %v568_v9  ;;  %v623_v36 = vadd.f32 %v611_v28, %v566_v7  ;;  %v571_v38 = vadd.f32 %v559_v20, %v502_v8  ;;  %v617_v46 = vadd.f32 %v605_v31, %v560_v60 }
 0x271   : > { %v619_v5 = vadd.f32 %v607_v22, %v562_v57  ;;  %v703_v29 = vsel %vm702_vm1, %v4495_v6, %v4493_v4  ;;  %v624_v48 = vadd.f32 %v612_v24, %v567_v49  ;;  %v614_v27 = vmul.f32 %v4568_v63, %v4447_v37 }
 0x272   : > { %v618_v56 = vadd.f32 %v606_v21, %v561_v30  ;;  %v707_v1 = vsel %vm702_vm1, %v4509_v11, %v4503_v54  ;;  %v708_v18 = vsel %vm702_vm1, %v4503_v54, %v4505_v55  ;;  %v615_v6 = vmul.f32 %v4570_v0, %v4447_v37  ;;  %v7123_v30 = vld [vmem:[#allocation4_spill] sm:$0xff] }
 0x273   : > { %v725_v20 = vadd.f32 %v4491_v47, %v619_v5  ;;  %v704_v63 = vsel %vm702_vm1, %v4493_v4, %v4491_v47  ;;  %v628_v13 = vadd.f32 %v616_v35, %v571_v38  ;;  %v723_v11 = vadd.f32 %v703_v29, %v617_v46 }
 0x274   : > { %v731_v3 = vadd.f32 %v4505_v55, %v625_v62  ;;  %v813_v54 = vsel %vm702_vm1, %v4559_v59, %v4563_v61  ;;  %v812_v23 = vsel %vm702_vm1, %v4557_v58, %v4559_v59  ;;  %v729_v37 = vadd.f32 %v707_v1, %v623_v36 }
 0x275   : > { %v730_v0 = vadd.f32 %v708_v18, %v624_v48  ;;  %v809_v25 = vsel %vm702_vm1, %v4545_v41, %v4549_v43  ;;  %v808_v47 = vsel %vm702_vm1, %v4547_v42, %v4545_v41  ;;  %v724_v4 = vadd.f32 %v704_v63, %v618_v56  ;;  %v7125_v48 = vld [vmem:[#allocation5_spill] sm:$0xff] }
 0x276   : > { %v836_v55 = vadd.f32 %v4563_v61, %v731_v3  ;;  %v918_v2 = vsel %vm702_vm1, %v4662_v45, %v4731_v16  ;;  %v917_v58 = vsel %vm702_vm1, %v902_v51, %v4662_v45  ;;  %v834_v52 = vadd.f32 %v812_v23, %v729_v37 }
 0x277   : > { %v4773_v39 = vpop.permute.xlu0 %911  ;;  %v4775_v26 = vpop.permute.xlu2 %1028  ;;  %v835_v59 = vadd.f32 %v813_v54, %v730_v0  ;;  %v913_v19 = vsel %vm702_vm1, %v4686_v33, %v4660_v40  ;;  %v914_v41 = vsel %vm702_vm1, %v4660_v40, %v4678_v53  ;;  %v830_v42 = vadd.f32 %v4549_v43, %v725_v20  ;;  %v1010_v0 = vld [vmem:[%s4332_s20] ss:$4 sm:$0x7] }
 0x278   : > { %v908_v15 = vpop.permute.xlu1 %907  ;;  %v626_v61 = vadd.f32 %v614_v27, %v569_v34  ;;  %v829_v8 = vadd.f32 %v809_v25, %v724_v4  ;;  %v828_v7 = vadd.f32 %v808_v47, %v723_v11  ;;  %v627_v9 = vadd.f32 %v615_v6, %v570_v44 }
 0x279   : > { %v940_v28 = vadd.f32 %v918_v2, %v835_v59  ;;  %v941_v49 = vadd.f32 %v4731_v16, %v836_v55  ;;  %v939_v45 = vadd.f32 %v917_v58, %v834_v52  ;;  %v709_v51 = vsel %vm702_vm1, %v4518_v17, %v4507_v10 }
 0x27a   : > { %v933_v31 = vadd.f32 %v913_v19, %v828_v7  ;;  %v934_v33 = vadd.f32 %v914_v41, %v829_v8  ;;  %v935_v22 = vadd.f32 %v4678_v53, %v830_v42  ;;  %v710_v43 = vsel %vm702_vm1, %v4507_v10, %v4511_v12  ;;  %v7124_v53 = vld [vmem:[#allocation3_spill] sm:$0xff] }
 0x27b   : > { %v815_v17 = vsel %vm702_vm1, %v7123_v30, %v4579_v14  ;;  %v814_v44 = vsel %vm702_vm1, %v7124_v53, %v7123_v30  ;;  %v734_v38 = vadd.f32 %v4511_v12, %v628_v13  ;;  %v732_v5 = vadd.f32 %v709_v51, %v626_v61  ;;  %v4052_v30 = vld [vmem:[%s7038_s1 + $0x1b0] sm:$0xff] }
 0x27c   : > { %v733_v46 = vadd.f32 %v710_v43, %v627_v9  ;;  %v920_v27 = vsel %vm702_vm1, %v7125_v48, %v4773_v39  ;;  %v919_v56 = vsel %vm702_vm1, %v908_v15, %v7125_v48  ;;  %v4850_v55 = vperm.slane %v1010_v0, 1  ;;  %v4040_v48 = vld [vmem:[%s4332_s20 + $0x1] ss:$4 sm:$0x7] }
 0x27d   : > { %v839_v18 = vadd.f32 %v4579_v14, %v734_v38  ;;  %v837_v20 = vadd.f32 %v814_v44, %v732_v5  ;;  %v4856_v59 = vperm.slane %v1010_v0, 0 }
 0x27e   : > { %v838_v6 = vadd.f32 %v815_v17, %v733_v46  ;;  %v4051_v17 = vld [vmem:[%s7038_s1 + $0x1a8] sm:$0xff] }
 0x27f   : > { %v962_v24 = vpop.permute.xlu0 %961  ;;  %v4814_v40 = vpop.permute.xlu2 %1080  ;;  %v944_v13 = vadd.f32 %v4773_v39, %v839_v18  ;;  %v942_v11 = vadd.f32 %v919_v56, %v837_v20  ;;  %v4847_v39 = vperm.slane %v1010_v0, 2  ;;  %v4929_v56 = vperm.slane %v4040_v48, 0 }
 0x280   : > { %v975_v32 = vadd.f32 %v962_v24, %v939_v45  ;;  %v976_v60 = vadd.f32 %v962_v24, %v940_v28  ;;  %v977_v21 = vadd.f32 %v962_v24, %v941_v49  ;;  %v952_v16 = vpop.permute.xlu1 %951  ;;  %v943_v63 = vadd.f32 %v920_v27, %v838_v6 }
 0x281   : > { %v969_v34 = vadd.f32 %v952_v16, %v933_v31  ;;  %v970_v35 = vadd.f32 %v952_v16, %v934_v33  ;;  %v971_v57 = vadd.f32 %v952_v16, %v935_v22  ;;  %v4933_v18 = vperm.slane %v4040_v48, 2 }
 0x282   : > { %v987_v62 = vmax.f32 %v975_v32, 0.0  ;;  %v988_v10 = vmax.f32 %v976_v60, 0.0  ;;  %v989_v36 = vmax.f32 %v977_v21, 0.0 }
 0x283   : > { %v981_v29 = vmax.f32 %v969_v34, 0.0  ;;  %v982_v1 = vmax.f32 %v970_v35, 0.0  ;;  %v983_v12 = vmax.f32 %v971_v57, 0.0  ;;  %v4050_v34 = vld [vmem:[%s7038_s1 + $0x1a0] sm:$0xff]  ;;  %v4053_v35 = vld [vmem:[%s7038_s1 + $0x1b8] sm:$0xff] }
 0x284   : > { %999 = vst [vmem:[%s4380_s23 + $0x90] sm:$0xff] %v987_v62 }
 0x285   : > { %1000 = vst [vmem:[%s4380_s23 + $0x98] sm:$0xff] %v988_v10 }
 0x286   : > { %1001 = vst.msk [vmem:[%s4380_s23 + $0xa0] sm:$0xff] %vm447_vm0, %v989_v36 }
 0x287   : > { %993 = vst [vmem:[%s4380_s23 + $0x60] sm:$0xff] %v981_v29  ;;  %v4838_v15 = vpop.permute.xlu0 %1018  ;;  %v4840_v3 = vpop.permute.xlu2 %1132 }
 0x288   : > { %994 = vst [vmem:[%s4380_s23 + $0x68] sm:$0xff] %v982_v1  ;;  %v967_v14 = vpop.permute.xlu1 %966  ;;  %v4931_v1 = vperm.slane %v4040_v48, 1 }
 0x289   : > { %995 = vst.msk [vmem:[%s4380_s23 + $0x70] sm:$0xff] %vm447_vm0, %v983_v12  ;;  %v978_v54 = vadd.f32 %v967_v14, %v942_v11  ;;  %v979_v23 = vadd.f32 %v967_v14, %v943_v63  ;;  %v980_v37 = vadd.f32 %v967_v14, %v944_v13 }
 0x28b   : > { %v990_v25 = vmax.f32 %v978_v54, 0.0  ;;  %v991_v47 = vmax.f32 %v979_v23, 0.0  ;;  %v992_v4 = vmax.f32 %v980_v37, 0.0 }
 0x28d   : > { %1002 = vst [vmem:[%s4380_s23 + $0xa8] sm:$0xff] %v990_v25 }
 0x28e   : > { %1003 = vst [vmem:[%s4380_s23 + $0xb0] sm:$0xff] %v991_v47 }
 0x28f   : > { %1004 = vst.msk [vmem:[%s4380_s23 + $0xb8] sm:$0xff] %vm447_vm0, %v992_v4  ;;  %v4854_v2 = vpop.permute.xlu0 %1070  ;;  %v1184_v58 = vpop.permute.xlu2 %1183 }
 0x290   : > { %v4858_v52 = vpop.permute.xlu1 %1023  ;;  %v1203_v19 = vmul.f32 %v1184_v58, %v4847_v39  ;;  %v1202_v41 = vmul.f32 %v1184_v58, %v4850_v55  ;;  %v1201_v42 = vmul.f32 %v1184_v58, %v4856_v59 }
 0x292   : > { %1229 = vrot.lane.b32.xlu2 %v1203_v19, %s4178_s24  ;;  %1227 = vrot.lane.b32.xlu1 %v1202_v41, %s4178_s24 }
 0x293   : > { %1225 = vrot.lane.b32.xlu0 %v1201_v42, %s4178_s24  ;;  %v4056_v42 = vld [vmem:[%s7038_s1 + $0x1d0] sm:$0xff] }
 0x297   : > { %v4866_v61 = vpop.permute.xlu0 %1085  ;;  %v1199_v32 = vpop.permute.xlu2 %1198 }
 0x298   : > { %v4868_v8 = vpop.permute.xlu1 %1075  ;;  %v1212_v60 = vmul.f32 %v1199_v32, %v4847_v39  ;;  %v1211_v21 = vmul.f32 %v1199_v32, %v4850_v55  ;;  %v1210_v16 = vmul.f32 %v1199_v32, %v4856_v59 }
 0x29f   : > { %v4870_v7 = vpop.permute.xlu0 %1137 }
 0x2a0   : > { %v4872_v9 = vpop.permute.xlu1 %1127 }
 0x2a7   : > { %v1189_v28 = vpop.permute.xlu0 %1188 }
 0x2a8   : > { %v4874_v49 = vpop.permute.xlu1 %1142  ;;  %v1206_v45 = vmul.f32 %v1189_v28, %v4847_v39  ;;  %v1205_v51 = vmul.f32 %v1189_v28, %v4850_v55  ;;  %v1204_v31 = vmul.f32 %v1189_v28, %v4856_v59  ;;  %v4055_v28 = vld [vmem:[%s7038_s1 + $0x1c8] sm:$0xff] }
 0x2aa   : > { %1235 = vrot.lane.b32.xlu2 %v1206_v45, %s4178_s24  ;;  %1233 = vrot.lane.b32.xlu1 %v1205_v51, %s4178_s24  ;;  %v4054_v45 = vld [vmem:[%s7038_s1 + $0x1c0] sm:$0xff]  ;;  %v4057_v51 = vld [vmem:[%s7038_s1 + $0x1d8] sm:$0xff] }
 0x2ab   : > { %1231 = vrot.lane.b32.xlu0 %v1204_v31, %s4178_s24 }
 0x2b0   : > { %v1194_v33 = vpop.permute.xlu1 %1193 }
 0x2b1   : > { %v1209_v22 = vmul.f32 %v1194_v33, %v4847_v39  ;;  %v1208_v24 = vmul.f32 %v1194_v33, %v4850_v55  ;;  %v1207_v43 = vmul.f32 %v1194_v33, %v4856_v59 }
 0x2b3   : > { %1241 = vrot.lane.b32.xlu2 %v1209_v22, %s4178_s24  ;;  %1239 = vrot.lane.b32.xlu1 %v1208_v24, %s4178_s24 }
 0x2b4   : > { %1237 = vrot.lane.b32.xlu0 %v1207_v43, %s4178_s24 }
 0x2bb   : > { %1247 = vrot.lane.b32.xlu2 %v1212_v60, %s4178_s24  ;;  %1245 = vrot.lane.b32.xlu1 %v1211_v21, %s4178_s24 }
 0x2bc   : > { %1243 = vrot.lane.b32.xlu0 %v1210_v16, %s4178_s24 }
 0x2c3   : > { %1298 = vperm.xlu2 %4168, %v4052_v30   ;;  %1293 = vperm.xlu1 %4167, %v4051_v17   ;;  %v4045_v17 = vld [vmem:[%s4332_s20 + $0x2] ss:$4 sm:$0x7] }
 0x2c4   : > { %1288 = vperm.xlu0 %4166, %v4050_v34   ;;  %v4998_v48 = vperm.slane %v4045_v17, 1 }
 0x2cc   : > { %1303 = vperm.xlu0 %4166, %v4053_v35   ;;  %v4996_v35 = vperm.slane %v4045_v17, 0 }
 0x2ec   : > { %v4912_v62 = vpop.permute.xlu2 %1229 }
 0x304   : > { %v4908_v53 = vpop.permute.xlu1 %1227  ;;  %v4916_v36 = vpop.permute.xlu2 %1235 }
 0x305   : > { %v4906_v57 = vpop.permute.xlu0 %1225 }
 0x30d   : > { %v4924_v29 = vpop.permute.xlu2 %1241 }
 0x315   : > { %v4940_v13 = vpop.permute.xlu2 %1247 }
 0x31c   : > { %v4914_v10 = vpop.permute.xlu1 %1233 }
 0x31d   : > { %v4910_v44 = vpop.permute.xlu0 %1231  ;;  %v1299_v37 = vpop.permute.xlu2 %1298 }
 0x31e   : > { %v1314_v0 = vmul.f32 %v1299_v37, %v4933_v18  ;;  %v1313_v25 = vmul.f32 %v1299_v37, %v4931_v1  ;;  %v1312_v47 = vmul.f32 %v1299_v37, %v4929_v56 }
 0x325   : > { %v4920_v5 = vpop.permute.xlu1 %1239 }
 0x326   : > { %v4918_v38 = vpop.permute.xlu0 %1237 }
 0x32d   : > { %v4927_v27 = vpop.permute.xlu1 %1245 }
 0x32e   : > { %v4922_v46 = vpop.permute.xlu0 %1243 }
 0x335   : > { %v1294_v11 = vpop.permute.xlu1 %1293 }
 0x336   : > { %v1289_v6 = vpop.permute.xlu0 %1288  ;;  %v1311_v14 = vmul.f32 %v1294_v11, %v4933_v18  ;;  %v1310_v54 = vmul.f32 %v1294_v11, %v4931_v1  ;;  %v1309_v23 = vmul.f32 %v1294_v11, %v4929_v56 }
 0x337   : > { %v1308_v20 = vmul.f32 %v1289_v6, %v4933_v18  ;;  %v1307_v12 = vmul.f32 %v1289_v6, %v4931_v1  ;;  %v1306_v63 = vmul.f32 %v1289_v6, %v4929_v56  ;;  %v5000_v6 = vperm.slane %v4045_v17, 2  ;;  %v4058_v17 = vld [vmem:[%s7038_s1 + $0x1e0] sm:$0xff] }
 0x339   : > { %1334 = vrot.lane.b32.xlu0 %v1308_v20, %s4178_s24  ;;  %1332 = vrot.lane.b32.xlu2 %v1307_v12, %s4178_s24 }
 0x33a   : > { %1330 = vrot.lane.b32.xlu1 %v1306_v63, %s4178_s24 }
 0x33e   : > { %v1304_v4 = vpop.permute.xlu0 %1303 }
 0x33f   : > { %v1317_v58 = vmul.f32 %v1304_v4, %v4933_v18  ;;  %v1316_v19 = vmul.f32 %v1304_v4, %v4931_v1  ;;  %v1315_v41 = vmul.f32 %v1304_v4, %v4929_v56 }
 0x341   : > { %1340 = vrot.lane.b32.xlu0 %v1311_v14, %s4178_s24  ;;  %1338 = vrot.lane.b32.xlu2 %v1310_v54, %s4178_s24 }
 0x342   : > { %1336 = vrot.lane.b32.xlu1 %v1309_v23, %s4178_s24 }
 0x349   : > { %1346 = vrot.lane.b32.xlu0 %v1314_v0, %s4178_s24  ;;  %1344 = vrot.lane.b32.xlu2 %v1313_v25, %s4178_s24 }
 0x34a   : > { %1342 = vrot.lane.b32.xlu1 %v1312_v47, %s4178_s24 }
 0x351   : > { %1352 = vrot.lane.b32.xlu0 %v1317_v58, %s4178_s24  ;;  %1350 = vrot.lane.b32.xlu2 %v1316_v19, %s4178_s24 }
 0x352   : > { %1348 = vrot.lane.b32.xlu1 %v1315_v41, %s4178_s24 }
 0x359   : > { %1403 = vperm.xlu0 %4166, %v4056_v42   ;;  %1398 = vperm.xlu2 %4168, %v4055_v28  }
 0x35a   : > { %1393 = vperm.xlu1 %4167, %v4054_v45   ;;  %v4060_v45 = vld [vmem:[%s7038_s1 + $0x1f0] sm:$0xff] }
 0x362   : > { %1408 = vperm.xlu1 %4167, %v4057_v51   ;;  %v4059_v51 = vld [vmem:[%s7038_s1 + $0x1e8] sm:$0xff] }
 0x393   : > { %v4973_v31 = vpop.permute.xlu2 %1332 }
 0x39b   : > { %v4979_v24 = vpop.permute.xlu2 %1338 }
 0x3a3   : > { %v4987_v21 = vpop.permute.xlu2 %1344 }
 0x3a4   : > { %7128 = vst [vmem:[#allocation5_spill] sm:$0xff] %v4987_v21 }
 0x3ab   : > { %v4977_v22 = vpop.permute.xlu0 %1334  ;;  %v4994_v34 = vpop.permute.xlu2 %1350 }
 0x3ac   : > { %v4975_v33 = vpop.permute.xlu1 %1330  ;;  %7131 = vst [vmem:[#allocation8_spill] sm:$0xff] %v4994_v34 }
 0x3b3   : > { %v4983_v32 = vpop.permute.xlu0 %1340  ;;  %v1399_v54 = vpop.permute.xlu2 %1398 }
 0x3b4   : > { %v4981_v43 = vpop.permute.xlu1 %1336  ;;  %v1416_v23 = vmul.f32 %v1399_v54, %v5000_v6  ;;  %v1415_v37 = vmul.f32 %v1399_v54, %v4998_v48  ;;  %v1414_v0 = vmul.f32 %v1399_v54, %v4996_v35 }
 0x3b5   : > { %7126 = vst [vmem:[#allocation4_spill] sm:$0xff] %v4981_v43 }
 0x3bb   : > { %v4991_v30 = vpop.permute.xlu0 %1346 }
 0x3bc   : > { %v4985_v60 = vpop.permute.xlu1 %1342  ;;  %7130 = vst [vmem:[#allocation7_spill] sm:$0xff] %v4991_v30 }
 0x3bd   : > { %7127 = vst [vmem:[#allocation3_spill] sm:$0xff] %v4985_v60  ;;  %v1106_v60 = vmul.f32 %v4933_v18, %v4866_v61 }
 0x3c3   : > { %v5007_v14 = vpop.permute.xlu0 %1352 }
 0x3c4   : > { %v4989_v16 = vpop.permute.xlu1 %1348  ;;  %7132 = vst [vmem:[#allocation9_spill] sm:$0xff] %v5007_v14 }
 0x3c5   : > { %7129 = vst [vmem:[#allocation6_spill] sm:$0xff] %v4989_v16 }
 0x3cb   : > { %v1404_v25 = vpop.permute.xlu0 %1403 }
 0x3cc   : > { %v1394_v20 = vpop.permute.xlu1 %1393  ;;  %v1419_v47 = vmul.f32 %v1404_v25, %v5000_v6  ;;  %v1418_v4 = vmul.f32 %v1404_v25, %v4998_v48  ;;  %v1417_v58 = vmul.f32 %v1404_v25, %v4996_v35 }
 0x3cd   : > { %v1413_v12 = vmul.f32 %v1394_v20, %v5000_v6  ;;  %v1412_v63 = vmul.f32 %v1394_v20, %v4998_v48  ;;  %v1411_v11 = vmul.f32 %v1394_v20, %v4996_v35  ;;  %v4061_v20 = vld [vmem:[%s7038_s1 + $0x1f8] sm:$0xff] }
 0x3cf   : > { %1439 = vrot.lane.b32.xlu1 %v1413_v12, %s4178_s24  ;;  %1437 = vrot.lane.b32.xlu0 %v1412_v63, %s4178_s24 }
 0x3d0   : > { %1435 = vrot.lane.b32.xlu2 %v1411_v11, %s4178_s24 }
 0x3d4   : > { %v1409_v19 = vpop.permute.xlu1 %1408 }
 0x3d5   : > { %v1422_v41 = vmul.f32 %v1409_v19, %v5000_v6  ;;  %v1421_v42 = vmul.f32 %v1409_v19, %v4998_v48  ;;  %v1420_v28 = vmul.f32 %v1409_v19, %v4996_v35 }
 0x3d7   : > { %1445 = vrot.lane.b32.xlu1 %v1416_v23, %s4178_s24  ;;  %1443 = vrot.lane.b32.xlu0 %v1415_v37, %s4178_s24 }
 0x3d8   : > { %1441 = vrot.lane.b32.xlu2 %v1414_v0, %s4178_s24 }
 0x3df   : > { %1451 = vrot.lane.b32.xlu1 %v1419_v47, %s4178_s24  ;;  %1449 = vrot.lane.b32.xlu0 %v1418_v4, %s4178_s24 }
 0x3e0   : > { %1447 = vrot.lane.b32.xlu2 %v1417_v58, %s4178_s24 }
 0x3e7   : > { %1457 = vrot.lane.b32.xlu1 %v1422_v41, %s4178_s24  ;;  %1455 = vrot.lane.b32.xlu0 %v1421_v42, %s4178_s24 }
 0x3e8   : > { %1453 = vrot.lane.b32.xlu2 %v1420_v28, %s4178_s24 }
 0x3ef   : > { %1508 = vperm.xlu1 %4167, %v4060_v45   ;;  %1503 = vperm.xlu0 %4166, %v4059_v51  }
 0x3f0   : > { %1498 = vperm.xlu2 %4168, %v4058_v17  }
 0x3f8   : > { %1513 = vperm.xlu2 %4168, %v4061_v20  }
 0x42a   : > { %v5040_v12 = vpop.permute.xlu2 %1435 }
 0x42b   : > { %7133 = vst [vmem:[#allocation10_spill] sm:$0xff] %v5040_v12  ;;  %v1157_v12 = vmul.f32 %v5000_v6, %v4840_v3 }
 0x432   : > { %v5042_v63 = vpop.permute.xlu2 %1441 }
 0x433   : > { %7134 = vst [vmem:[#allocation11_spill] sm:$0xff] %v5042_v63  ;;  %v1098_v63 = vmul.f32 %v4929_v56, %v4868_v8 }
 0x43a   : > { %v5044_v11 = vpop.permute.xlu2 %1447 }
 0x43b   : > { %7135 = vst [vmem:[#allocation12_spill] sm:$0xff] %v5044_v11 }
 0x441   : > { %v5046_v54 = vpop.permute.xlu0 %1437  ;;  %v5048_v23 = vpop.permute.xlu1 %1439 }
 0x442   : > { %7136 = vst [vmem:[#allocation13_spill] sm:$0xff] %v5046_v54  ;;  %v5050_v37 = vpop.permute.xlu2 %1453  ;;  %v1105_v54 = vmul.f32 %v4931_v1, %v4866_v61 }
 0x443   : > { %7137 = vst [vmem:[#allocation14_spill] sm:$0xff] %v5048_v23  ;;  %v1155_v23 = vmul.f32 %v4996_v35, %v4840_v3 }
 0x444   : > { %7138 = vst [vmem:[#allocation15_spill] sm:$0xff] %v5050_v37 }
 0x449   : > { %v5052_v0 = vpop.permute.xlu1 %1445  ;;  %v5054_v25 = vpop.permute.xlu0 %1443 }
 0x44a   : > { %7139 = vst [vmem:[#allocation16_spill] sm:$0xff] %v5052_v0  ;;  %v1499_v47 = vpop.permute.xlu2 %1498  ;;  %v1043_v0 = vmul.f32 %v4847_v39, %v4838_v15 }
 0x44b   : > { %7140 = vst [vmem:[#allocation17_spill] sm:$0xff] %v5054_v25  ;;  %v1518_v4 = vmul.f32 %v1499_v47, %v4847_v39  ;;  %v1517_v58 = vmul.f32 %v1499_v47, %v4850_v55  ;;  %v1516_v19 = vmul.f32 %v1499_v47, %v4856_v59  ;;  %v1100_v25 = vmul.f32 %v4933_v18, %v4868_v8 }
 0x44d   : > { %1544 = vrot.lane.b32.xlu2 %v1518_v4, %s4179_s15  ;;  %1542 = vrot.lane.b32.xlu1 %v1517_v58, %s4179_s15  ;;  %v1112_v43 = vadd.f32 %v1100_v25, %v1043_v0  ;;  %v1153_v0 = vmul.f32 %v4998_v48, %v4872_v9  ;;  %v1161_v25 = vmul.f32 %v4996_v35, %v4874_v49 }
 0x44e   : > { %1540 = vrot.lane.b32.xlu0 %v1516_v19, %s4179_s15 }
 0x451   : > { %v5062_v41 = vpop.permute.xlu0 %1449  ;;  %v5064_v42 = vpop.permute.xlu1 %1451 }
 0x452   : > { %7141 = vst [vmem:[#allocation18_spill] sm:$0xff] %v5062_v41 }
 0x453   : > { %7142 = vst [vmem:[#allocation19_spill] sm:$0xff] %v5064_v42 }
 0x459   : > { %v5066_v28 = vpop.permute.xlu0 %1455  ;;  %v5068_v45 = vpop.permute.xlu1 %1457 }
 0x45a   : > { %7143 = vst [vmem:[#allocation20_spill] sm:$0xff] %v5066_v28 }
 0x45b   : > { %7144 = vst [vmem:[#allocation21_spill] sm:$0xff] %v5068_v45 }
 0x461   : > { %v1504_v51 = vpop.permute.xlu0 %1503  ;;  %v1509_v4 = vpop.permute.xlu1 %1508 }
 0x462   : > { %v1519_v17 = vmul.f32 %v1504_v51, %v4856_v59  ;;  %v1520_v20 = vmul.f32 %v1504_v51, %v4850_v55  ;;  %v1521_v47 = vmul.f32 %v1504_v51, %v4847_v39  ;;  %v1522_v58 = vmul.f32 %v1509_v4, %v4856_v59  ;;  %v1514_v51 = vpop.permute.xlu2 %1513 }
 0x463   : > { %v1523_v19 = vmul.f32 %v1509_v4, %v4850_v55  ;;  %v1524_v45 = vmul.f32 %v1509_v4, %v4847_v39  ;;  %v4062_v4 = vld [vmem:[%s7038_s1 + $0x200] sm:$0xff] }
 0x464   : > { %1546 = vrot.lane.b32.xlu0 %v1519_v17, %s4179_s15  ;;  %1550 = vrot.lane.b32.xlu2 %v1521_v47, %s4179_s15  ;;  %v1525_v17 = vmul.f32 %v1514_v51, %v4856_v59  ;;  %v1526_v47 = vmul.f32 %v1514_v51, %v4850_v55 }
 0x465   : > { %1548 = vrot.lane.b32.xlu1 %v1520_v20, %s4179_s15  ;;  %v1527_v20 = vmul.f32 %v1514_v51, %v4847_v39 }
 0x46c   : > { %1552 = vrot.lane.b32.xlu0 %v1522_v58, %s4179_s15  ;;  %1556 = vrot.lane.b32.xlu2 %v1524_v45, %s4179_s15  ;;  %v4064_v45 = vld [vmem:[%s7038_s1 + $0x210] sm:$0xff]  ;;  %v4063_v58 = vld [vmem:[%s7038_s1 + $0x208] sm:$0xff] }
 0x46d   : > { %1554 = vrot.lane.b32.xlu1 %v1523_v19, %s4179_s15  ;;  %v4065_v19 = vld [vmem:[%s7038_s1 + $0x218] sm:$0xff] }
 0x474   : > { %1558 = vrot.lane.b32.xlu0 %v1525_v17, %s4179_s15  ;;  %1562 = vrot.lane.b32.xlu2 %v1527_v20, %s4179_s15 }
 0x475   : > { %1560 = vrot.lane.b32.xlu1 %v1526_v47, %s4179_s15 }
 0x47c   : > { %1604 = vperm.xlu0 %4166, %v4062_v4   ;;  %1614 = vperm.xlu2 %4168, %v4064_v45  }
 0x47d   : > { %1609 = vperm.xlu1 %4167, %v4063_v58  }
 0x484   : > { %1619 = vperm.xlu0 %4166, %v4065_v19  }
 0x4a7   : > { %v5104_v47 = vpop.permute.xlu2 %1544 }
 0x4a8   : > { %7147 = vst [vmem:[#allocation24_spill] sm:$0xff] %v5104_v47  ;;  %v1045_v47 = vmul.f32 %v4850_v55, %v4858_v52 }
 0x4be   : > { %v5110_v28 = vpop.permute.xlu2 %1550 }
 0x4bf   : > { %v5102_v17 = vpop.permute.xlu1 %1542  ;;  %7150 = vst [vmem:[#allocation27_spill] sm:$0xff] %v5110_v28 }
 0x4c0   : > { %v5100_v51 = vpop.permute.xlu0 %1540  ;;  %7146 = vst [vmem:[#allocation23_spill] sm:$0xff] %v5102_v17  ;;  %v1042_v17 = vmul.f32 %v4850_v55, %v4838_v15 }
 0x4c1   : > { %7145 = vst [vmem:[#allocation22_spill] sm:$0xff] %v5100_v51 }
 0x4c6   : > { %v5118_v42 = vpop.permute.xlu2 %1556 }
 0x4c7   : > { %7154 = vst [vmem:[#allocation31_spill] sm:$0xff] %v5118_v42 }
 0x4d6   : > { %v5106_v20 = vpop.permute.xlu0 %1546 }
 0x4d7   : > { %7148 = vst [vmem:[#allocation25_spill] sm:$0xff] %v5106_v20  ;;  %v5108_v37 = vpop.permute.xlu1 %1548 }
 0x4d8   : > { %7149 = vst [vmem:[#allocation26_spill] sm:$0xff] %v5108_v37 }
 0x4de   : > { %v5112_v4 = vpop.permute.xlu0 %1552 }
 0x4df   : > { %7151 = vst [vmem:[#allocation28_spill] sm:$0xff] %v5112_v4  ;;  %v5114_v45 = vpop.permute.xlu1 %1554  ;;  %v5127_v4 = vpop.permute.xlu2 %1562 }
 0x4e0   : > { %7152 = vst [vmem:[#allocation29_spill] sm:$0xff] %v5114_v45 }
 0x4e1   : > { %7156 = vst [vmem:[#allocation33_spill] sm:$0xff] %v5127_v4 }
 0x4e6   : > { %v5116_v58 = vpop.permute.xlu0 %1558 }
 0x4e7   : > { %7153 = vst [vmem:[#allocation30_spill] sm:$0xff] %v5116_v58  ;;  %v5120_v19 = vpop.permute.xlu1 %1560 }
 0x4e8   : > { %7155 = vst [vmem:[#allocation32_spill] sm:$0xff] %v5120_v19 }
 0x4ee   : > { %v1605_v11 = vpop.permute.xlu0 %1604 }
 0x4ef   : > { %v1622_v41 = vmul.f32 %v1605_v11, %v4929_v56  ;;  %v1623_v51 = vmul.f32 %v1605_v11, %v4931_v1  ;;  %v1624_v20 = vmul.f32 %v1605_v11, %v4933_v18  ;;  %v1610_v58 = vpop.permute.xlu1 %1609  ;;  %v1615_v11 = vpop.permute.xlu2 %1614 }
 0x4f0   : > { %v1626_v45 = vmul.f32 %v1610_v58, %v4931_v1  ;;  %v1627_v19 = vmul.f32 %v1610_v58, %v4933_v18  ;;  %v1625_v42 = vmul.f32 %v1610_v58, %v4929_v56 }
 0x4f1   : > { %1650 = vrot.lane.b32.xlu0 %v1624_v20, %s4179_s15  ;;  %1648 = vrot.lane.b32.xlu2 %v1623_v51, %s4179_s15  ;;  %v1629_v51 = vmul.f32 %v1615_v11, %v4931_v1  ;;  %v1630_v20 = vmul.f32 %v1615_v11, %v4933_v18 }
 0x4f2   : > { %1646 = vrot.lane.b32.xlu1 %v1622_v41, %s4179_s15  ;;  %v1628_v41 = vmul.f32 %v1615_v11, %v4929_v56  ;;  %v4068_v11 = vld [vmem:[%s7038_s1 + $0x230] sm:$0xff] }
 0x4f6   : > { %v1620_v58 = vpop.permute.xlu0 %1619 }
 0x4f9   : > { %1656 = vrot.lane.b32.xlu0 %v1627_v19, %s4179_s15  ;;  %1654 = vrot.lane.b32.xlu2 %v1626_v45, %s4179_s15  ;;  %v1632_v19 = vmul.f32 %v1620_v58, %v4931_v1  ;;  %v1633_v45 = vmul.f32 %v1620_v58, %v4933_v18 }
 0x4fa   : > { %1652 = vrot.lane.b32.xlu1 %v1625_v42, %s4179_s15  ;;  %v1631_v42 = vmul.f32 %v1620_v58, %v4929_v56 }
 0x501   : > { %1662 = vrot.lane.b32.xlu0 %v1630_v20, %s4179_s15  ;;  %1660 = vrot.lane.b32.xlu2 %v1629_v51, %s4179_s15  ;;  %v4067_v51 = vld [vmem:[%s7038_s1 + $0x228] sm:$0xff]  ;;  %v4066_v20 = vld [vmem:[%s7038_s1 + $0x220] sm:$0xff] }
 0x502   : > { %1658 = vrot.lane.b32.xlu1 %v1628_v41, %s4179_s15  ;;  %v4069_v41 = vld [vmem:[%s7038_s1 + $0x238] sm:$0xff] }
 0x509   : > { %1668 = vrot.lane.b32.xlu0 %v1633_v45, %s4179_s15  ;;  %1666 = vrot.lane.b32.xlu2 %v1632_v19, %s4179_s15 }
 0x50a   : > { %1664 = vrot.lane.b32.xlu1 %v1631_v42, %s4179_s15 }
 0x511   : > { %1719 = vperm.xlu0 %4166, %v4068_v11   ;;  %1714 = vperm.xlu2 %4168, %v4067_v51  }
 0x512   : > { %1709 = vperm.xlu1 %4167, %v4066_v20  }
 0x51a   : > { %1724 = vperm.xlu1 %4167, %v4069_v41  }
 0x54b   : > { %v5160_v58 = vpop.permute.xlu2 %1648 }
 0x54c   : > { %7157 = vst [vmem:[#allocation34_spill] sm:$0xff] %v5160_v58 }
 0x553   : > { %v5166_v42 = vpop.permute.xlu2 %1654 }
 0x554   : > { %7160 = vst [vmem:[#allocation37_spill] sm:$0xff] %v5166_v42 }
 0x55b   : > { %v5174_v51 = vpop.permute.xlu2 %1660 }
 0x55c   : > { %7164 = vst [vmem:[#allocation41_spill] sm:$0xff] %v5174_v51 }
 0x563   : > { %v5164_v45 = vpop.permute.xlu0 %1650  ;;  %v5180_v41 = vpop.permute.xlu2 %1666 }
 0x564   : > { %v5162_v19 = vpop.permute.xlu1 %1646  ;;  %7159 = vst [vmem:[#allocation36_spill] sm:$0xff] %v5164_v45 }
 0x565   : > { %7158 = vst [vmem:[#allocation35_spill] sm:$0xff] %v5162_v19 }
 0x566   : > { %7167 = vst [vmem:[#allocation44_spill] sm:$0xff] %v5180_v41 }
 0x56b   : > { %v5170_v37 = vpop.permute.xlu0 %1656 }
 0x56c   : > { %v5168_v4 = vpop.permute.xlu1 %1652  ;;  %7162 = vst [vmem:[#allocation39_spill] sm:$0xff] %v5170_v37 }
 0x56d   : > { %7161 = vst [vmem:[#allocation38_spill] sm:$0xff] %v5168_v4 }
 0x573   : > { %v5178_v28 = vpop.permute.xlu0 %1662 }
 0x574   : > { %v5172_v11 = vpop.permute.xlu1 %1658  ;;  %7166 = vst [vmem:[#allocation43_spill] sm:$0xff] %v5178_v28 }
 0x575   : > { %7163 = vst [vmem:[#allocation40_spill] sm:$0xff] %v5172_v11 }
 0x57b   : > { %v5187_v11 = vpop.permute.xlu0 %1668 }
 0x57c   : > { %v5176_v20 = vpop.permute.xlu1 %1664  ;;  %7168 = vst [vmem:[#allocation45_spill] sm:$0xff] %v5187_v11 }
 0x57d   : > { %7165 = vst [vmem:[#allocation42_spill] sm:$0xff] %v5176_v20  ;;  %v1715_v20 = vpop.permute.xlu2 %1714 }
 0x57e   : > { %v1731_v51 = vmul.f32 %v1715_v20, %v4998_v48  ;;  %v1732_v41 = vmul.f32 %v1715_v20, %v5000_v6  ;;  %v1730_v28 = vmul.f32 %v1715_v20, %v4996_v35 }
 0x584   : > { %v1710_v58 = vpop.permute.xlu1 %1709 }
 0x585   : > { %v1727_v19 = vmul.f32 %v1710_v58, %v4996_v35  ;;  %v1728_v45 = vmul.f32 %v1710_v58, %v4998_v48  ;;  %v1729_v42 = vmul.f32 %v1710_v58, %v5000_v6  ;;  %v1720_v58 = vpop.permute.xlu0 %1719 }
 0x587   : > { %1755 = vrot.lane.b32.xlu1 %v1729_v42, %s4179_s15  ;;  %1753 = vrot.lane.b32.xlu0 %v1728_v45, %s4179_s15  ;;  %v1734_v45 = vmul.f32 %v1720_v58, %v4998_v48  ;;  %v1735_v42 = vmul.f32 %v1720_v58, %v5000_v6 }
 0x588   : > { %1751 = vrot.lane.b32.xlu2 %v1727_v19, %s4179_s15  ;;  %v1733_v19 = vmul.f32 %v1720_v58, %v4996_v35  ;;  %v4072_v58 = vld [vmem:[%s7038_s1 + $0x250] sm:$0xff] }
 0x58c   : > { %v1725_v20 = vpop.permute.xlu1 %1724 }
 0x58f   : > { %1761 = vrot.lane.b32.xlu1 %v1732_v41, %s4179_s15  ;;  %1759 = vrot.lane.b32.xlu0 %v1731_v51, %s4179_s15  ;;  %v1737_v41 = vmul.f32 %v1725_v20, %v4998_v48  ;;  %v1738_v51 = vmul.f32 %v1725_v20, %v5000_v6 }
 0x590   : > { %1757 = vrot.lane.b32.xlu2 %v1730_v28, %s4179_s15  ;;  %v1736_v28 = vmul.f32 %v1725_v20, %v4996_v35 }
 0x597   : > { %1767 = vrot.lane.b32.xlu1 %v1735_v42, %s4179_s15  ;;  %1765 = vrot.lane.b32.xlu0 %v1734_v45, %s4179_s15  ;;  %v4071_v45 = vld [vmem:[%s7038_s1 + $0x248] sm:$0xff]  ;;  %v4070_v42 = vld [vmem:[%s7038_s1 + $0x240] sm:$0xff] }
 0x598   : > { %1763 = vrot.lane.b32.xlu2 %v1733_v19, %s4179_s15  ;;  %v4073_v19 = vld [vmem:[%s7038_s1 + $0x258] sm:$0xff] }
 0x59f   : > { %1773 = vrot.lane.b32.xlu1 %v1738_v51, %s4179_s15  ;;  %1771 = vrot.lane.b32.xlu0 %v1737_v41, %s4179_s15 }
 0x5a0   : > { %1769 = vrot.lane.b32.xlu2 %v1736_v28, %s4179_s15  ;;  %s4180_s15 = smov 125  }
 0x5a7   : > { %1824 = vperm.xlu1 %4167, %v4072_v58   ;;  %1819 = vperm.xlu0 %4166, %v4071_v45  }
 0x5a8   : > { %1814 = vperm.xlu2 %4168, %v4070_v42  }
 0x5b0   : > { %1829 = vperm.xlu2 %4168, %v4073_v19  }
 0x5e2   : > { %v5220_v20 = vpop.permute.xlu2 %1751 }
 0x5e3   : > { %7169 = vst [vmem:[#allocation46_spill] sm:$0xff] %v5220_v20 }
 0x5ea   : > { %v5222_v41 = vpop.permute.xlu2 %1757 }
 0x5eb   : > { %7170 = vst [vmem:[#allocation47_spill] sm:$0xff] %v5222_v41 }
 0x5f2   : > { %v5224_v51 = vpop.permute.xlu2 %1763 }
 0x5f3   : > { %7171 = vst [vmem:[#allocation48_spill] sm:$0xff] %v5224_v51 }
 0x5f9   : > { %v5226_v28 = vpop.permute.xlu0 %1753  ;;  %v5228_v11 = vpop.permute.xlu1 %1755 }
 0x5fa   : > { %7172 = vst [vmem:[#allocation49_spill] sm:$0xff] %v5226_v28  ;;  %v5230_v4 = vpop.permute.xlu2 %1769 }
 0x5fb   : > { %7173 = vst [vmem:[#allocation50_spill] sm:$0xff] %v5228_v11 }
 0x5fc   : > { %7174 = vst [vmem:[#allocation51_spill] sm:$0xff] %v5230_v4 }
 0x601   : > { %v5232_v58 = vpop.permute.xlu1 %1761  ;;  %v5234_v45 = vpop.permute.xlu0 %1759 }
 0x602   : > { %7175 = vst [vmem:[#allocation52_spill] sm:$0xff] %v5232_v58  ;;  %v1815_v42 = vpop.permute.xlu2 %1814 }
 0x603   : > { %7176 = vst [vmem:[#allocation53_spill] sm:$0xff] %v5234_v45  ;;  %v1832_v37 = vmul.f32 %v1815_v42, %v4856_v59  ;;  %v1833_v19 = vmul.f32 %v1815_v42, %v4850_v55  ;;  %v1834_v20 = vmul.f32 %v1815_v42, %v4847_v39 }
 0x605   : > { %1858 = vrot.lane.b32.xlu1 %v1833_v19, %s4180_s15  ;;  %1856 = vrot.lane.b32.xlu0 %v1832_v37, %s4180_s15 }
 0x606   : > { %1860 = vrot.lane.b32.xlu2 %v1834_v20, %s4180_s15 }
 0x609   : > { %v5242_v51 = vpop.permute.xlu0 %1765  ;;  %v5244_v4 = vpop.permute.xlu1 %1767 }
 0x60a   : > { %7177 = vst [vmem:[#allocation54_spill] sm:$0xff] %v5242_v51 }
 0x60b   : > { %7178 = vst [vmem:[#allocation55_spill] sm:$0xff] %v5244_v4 }
 0x611   : > { %v5246_v58 = vpop.permute.xlu0 %1771  ;;  %v5248_v41 = vpop.permute.xlu1 %1773 }
 0x612   : > { %7179 = vst [vmem:[#allocation56_spill] sm:$0xff] %v5246_v58 }
 0x613   : > { %7180 = vst [vmem:[#allocation57_spill] sm:$0xff] %v5248_v41 }
 0x619   : > { %v1820_v45 = vpop.permute.xlu0 %1819  ;;  %v1825_v37 = vpop.permute.xlu1 %1824 }
 0x61a   : > { %v1835_v11 = vmul.f32 %v1820_v45, %v4856_v59  ;;  %v1836_v42 = vmul.f32 %v1820_v45, %v4850_v55  ;;  %v1837_v28 = vmul.f32 %v1820_v45, %v4847_v39  ;;  %v1838_v20 = vmul.f32 %v1825_v37, %v4856_v59  ;;  %v1830_v45 = vpop.permute.xlu2 %1829 }
 0x61b   : > { %v1839_v19 = vmul.f32 %v1825_v37, %v4850_v55  ;;  %v1840_v41 = vmul.f32 %v1825_v37, %v4847_v39  ;;  %v4074_v37 = vld [vmem:[%s7038_s1 + $0x260] sm:$0xff] }
 0x61c   : > { %1862 = vrot.lane.b32.xlu0 %v1835_v11, %s4180_s15  ;;  %1866 = vrot.lane.b32.xlu2 %v1837_v28, %s4180_s15  ;;  %v1841_v11 = vmul.f32 %v1830_v45, %v4856_v59  ;;  %v1842_v28 = vmul.f32 %v1830_v45, %v4850_v55 }
 0x61d   : > { %1864 = vrot.lane.b32.xlu1 %v1836_v42, %s4180_s15  ;;  %v1843_v42 = vmul.f32 %v1830_v45, %v4847_v39 }
 0x624   : > { %1868 = vrot.lane.b32.xlu0 %v1838_v20, %s4180_s15  ;;  %1872 = vrot.lane.b32.xlu2 %v1840_v41, %s4180_s15  ;;  %v4076_v41 = vld [vmem:[%s7038_s1 + $0x270] sm:$0xff]  ;;  %v4075_v20 = vld [vmem:[%s7038_s1 + $0x268] sm:$0xff] }
 0x625   : > { %1870 = vrot.lane.b32.xlu1 %v1839_v19, %s4180_s15  ;;  %v4077_v19 = vld [vmem:[%s7038_s1 + $0x278] sm:$0xff] }
 0x62c   : > { %1874 = vrot.lane.b32.xlu0 %v1841_v11, %s4180_s15  ;;  %1878 = vrot.lane.b32.xlu2 %v1843_v42, %s4180_s15 }
 0x62d   : > { %1876 = vrot.lane.b32.xlu1 %v1842_v28, %s4180_s15 }
 0x634   : > { %1920 = vperm.xlu0 %4166, %v4074_v37   ;;  %1930 = vperm.xlu2 %4168, %v4076_v41  }
 0x635   : > { %1925 = vperm.xlu1 %4167, %v4075_v20  }
 0x63c   : > { %1935 = vperm.xlu0 %4166, %v4077_v19  }
 0x660   : > { %v5284_v28 = vpop.permute.xlu2 %1860 }
 0x661   : > { %7183 = vst [vmem:[#allocation60_spill] sm:$0xff] %v5284_v28 }
 0x676   : > { %v5290_v4 = vpop.permute.xlu2 %1866 }
 0x677   : > { %v5280_v45 = vpop.permute.xlu0 %1856  ;;  %v5282_v11 = vpop.permute.xlu1 %1858  ;;  %7186 = vst [vmem:[#allocation63_spill] sm:$0xff] %v5290_v4 }
 0x678   : > { %7181 = vst [vmem:[#allocation58_spill] sm:$0xff] %v5280_v45 }
 0x679   : > { %7182 = vst [vmem:[#allocation59_spill] sm:$0xff] %v5282_v11 }
 0x67e   : > { %v5298_v51 = vpop.permute.xlu2 %1872 }
 0x67f   : > { %7190 = vst [vmem:[#allocation67_spill] sm:$0xff] %v5298_v51 }
 0x68e   : > { %v5286_v42 = vpop.permute.xlu0 %1862 }
 0x68f   : > { %7184 = vst [vmem:[#allocation61_spill] sm:$0xff] %v5286_v42  ;;  %v5288_v58 = vpop.permute.xlu1 %1864 }
 0x690   : > { %7185 = vst [vmem:[#allocation62_spill] sm:$0xff] %v5288_v58 }
 0x696   : > { %v5292_v37 = vpop.permute.xlu0 %1868 }
 0x697   : > { %7187 = vst [vmem:[#allocation64_spill] sm:$0xff] %v5292_v37  ;;  %v5294_v41 = vpop.permute.xlu1 %1870  ;;  %v5307_v37 = vpop.permute.xlu2 %1878 }
 0x698   : > { %7188 = vst [vmem:[#allocation65_spill] sm:$0xff] %v5294_v41 }
 0x699   : > { %7192 = vst [vmem:[#allocation69_spill] sm:$0xff] %v5307_v37 }
 0x69e   : > { %v5296_v20 = vpop.permute.xlu0 %1874 }
 0x69f   : > { %7189 = vst [vmem:[#allocation66_spill] sm:$0xff] %v5296_v20  ;;  %v5300_v19 = vpop.permute.xlu1 %1876 }
 0x6a0   : > { %7191 = vst [vmem:[#allocation68_spill] sm:$0xff] %v5300_v19 }
 0x6a6   : > { %v1921_v45 = vpop.permute.xlu0 %1920 }
 0x6a7   : > { %v1938_v11 = vmul.f32 %v1921_v45, %v4929_v56  ;;  %v1939_v28 = vmul.f32 %v1921_v45, %v4931_v1  ;;  %v1940_v42 = vmul.f32 %v1921_v45, %v4933_v18  ;;  %v1926_v41 = vpop.permute.xlu1 %1925  ;;  %v1931_v45 = vpop.permute.xlu2 %1930 }
 0x6a8   : > { %v1942_v51 = vmul.f32 %v1926_v41, %v4931_v1  ;;  %v1943_v58 = vmul.f32 %v1926_v41, %v4933_v18  ;;  %v1941_v4 = vmul.f32 %v1926_v41, %v4929_v56 }
 0x6a9   : > { %1966 = vrot.lane.b32.xlu0 %v1940_v42, %s4180_s15  ;;  %1964 = vrot.lane.b32.xlu2 %v1939_v28, %s4180_s15  ;;  %v1945_v28 = vmul.f32 %v1931_v45, %v4931_v1  ;;  %v1946_v42 = vmul.f32 %v1931_v45, %v4933_v18 }
 0x6aa   : > { %1962 = vrot.lane.b32.xlu1 %v1938_v11, %s4180_s15  ;;  %v1944_v11 = vmul.f32 %v1931_v45, %v4929_v56  ;;  %v4080_v45 = vld [vmem:[%s7038_s1 + $0x290] sm:$0xff] }
 0x6ae   : > { %v1936_v41 = vpop.permute.xlu0 %1935 }
 0x6b1   : > { %1972 = vrot.lane.b32.xlu0 %v1943_v58, %s4180_s15  ;;  %1970 = vrot.lane.b32.xlu2 %v1942_v51, %s4180_s15  ;;  %v1948_v58 = vmul.f32 %v1936_v41, %v4931_v1  ;;  %v1949_v51 = vmul.f32 %v1936_v41, %v4933_v18 }
 0x6b2   : > { %1968 = vrot.lane.b32.xlu1 %v1941_v4, %s4180_s15  ;;  %v1947_v4 = vmul.f32 %v1936_v41, %v4929_v56 }
 0x6b9   : > { %1978 = vrot.lane.b32.xlu0 %v1946_v42, %s4180_s15  ;;  %1976 = vrot.lane.b32.xlu2 %v1945_v28, %s4180_s15  ;;  %v4079_v28 = vld [vmem:[%s7038_s1 + $0x288] sm:$0xff]  ;;  %v4078_v42 = vld [vmem:[%s7038_s1 + $0x280] sm:$0xff] }
 0x6ba   : > { %1974 = vrot.lane.b32.xlu1 %v1944_v11, %s4180_s15  ;;  %v4081_v11 = vld [vmem:[%s7038_s1 + $0x298] sm:$0xff] }
 0x6c1   : > { %1984 = vrot.lane.b32.xlu0 %v1949_v51, %s4180_s15  ;;  %1982 = vrot.lane.b32.xlu2 %v1948_v58, %s4180_s15 }
 0x6c2   : > { %1980 = vrot.lane.b32.xlu1 %v1947_v4, %s4180_s15 }
 0x6c9   : > { %2035 = vperm.xlu0 %4166, %v4080_v45   ;;  %2030 = vperm.xlu2 %4168, %v4079_v28  }
 0x6ca   : > { %2025 = vperm.xlu1 %4167, %v4078_v42  }
 0x6d2   : > { %2040 = vperm.xlu1 %4167, %v4081_v11  }
 0x703   : > { %v5340_v41 = vpop.permute.xlu2 %1964 }
 0x704   : > { %7193 = vst [vmem:[#allocation70_spill] sm:$0xff] %v5340_v41 }
 0x70b   : > { %v5346_v4 = vpop.permute.xlu2 %1970 }
 0x70c   : > { %7196 = vst [vmem:[#allocation73_spill] sm:$0xff] %v5346_v4 }
 0x713   : > { %v5354_v28 = vpop.permute.xlu2 %1976 }
 0x714   : > { %7200 = vst [vmem:[#allocation77_spill] sm:$0xff] %v5354_v28 }
 0x71b   : > { %v5344_v51 = vpop.permute.xlu0 %1966  ;;  %v5360_v11 = vpop.permute.xlu2 %1982 }
 0x71c   : > { %v5342_v58 = vpop.permute.xlu1 %1962  ;;  %7195 = vst [vmem:[#allocation72_spill] sm:$0xff] %v5344_v51 }
 0x71d   : > { %7194 = vst [vmem:[#allocation71_spill] sm:$0xff] %v5342_v58 }
 0x71e   : > { %7203 = vst [vmem:[#allocation80_spill] sm:$0xff] %v5360_v11  ;;  %v1096_v11 = vmul.f32 %v4931_v1, %v4854_v2 }
 0x723   : > { %v5350_v19 = vpop.permute.xlu0 %1972  ;;  %v2031_v28 = vpop.permute.xlu2 %2030 }
 0x724   : > { %v5348_v20 = vpop.permute.xlu1 %1968  ;;  %7198 = vst [vmem:[#allocation75_spill] sm:$0xff] %v5350_v19  ;;  %v2048_v19 = vmul.f32 %v2031_v28, %v5000_v6 }
 0x725   : > { %7197 = vst [vmem:[#allocation74_spill] sm:$0xff] %v5348_v20  ;;  %v2046_v20 = vmul.f32 %v2031_v28, %v4996_v35 }
 0x72b   : > { %v5358_v37 = vpop.permute.xlu0 %1978 }
 0x72c   : > { %v5352_v45 = vpop.permute.xlu1 %1974  ;;  %7202 = vst [vmem:[#allocation79_spill] sm:$0xff] %v5358_v37  ;;  %v2047_v37 = vmul.f32 %v2031_v28, %v4998_v48 }
 0x72d   : > { %7199 = vst [vmem:[#allocation76_spill] sm:$0xff] %v5352_v45 }
 0x733   : > { %v5367_v45 = vpop.permute.xlu0 %1984 }
 0x734   : > { %v5356_v42 = vpop.permute.xlu1 %1980  ;;  %7204 = vst [vmem:[#allocation81_spill] sm:$0xff] %v5367_v45  ;;  %v1097_v45 = vmul.f32 %v4933_v18, %v4854_v2 }
 0x735   : > { %7201 = vst [vmem:[#allocation78_spill] sm:$0xff] %v5356_v42  ;;  %v1103_v42 = vmul.f32 %v4933_v18, %v4814_v40  ;;  %v1152_v18 = vmul.f32 %v4996_v35, %v4872_v9 }
 0x73c   : > { %v2026_v41 = vpop.permute.xlu1 %2025 }
 0x73d   : > { %v2043_v58 = vmul.f32 %v2026_v41, %v4996_v35  ;;  %v2044_v51 = vmul.f32 %v2026_v41, %v4998_v48  ;;  %v2045_v4 = vmul.f32 %v2026_v41, %v5000_v6  ;;  %v2036_v41 = vpop.permute.xlu0 %2035 }
 0x73f   : > { %2071 = vrot.lane.b32.xlu1 %v2045_v4, %s4180_s15  ;;  %2069 = vrot.lane.b32.xlu0 %v2044_v51, %s4180_s15  ;;  %v2050_v51 = vmul.f32 %v2036_v41, %v4998_v48  ;;  %v2051_v4 = vmul.f32 %v2036_v41, %v5000_v6 }
 0x740   : > { %2067 = vrot.lane.b32.xlu2 %v2043_v58, %s4180_s15  ;;  %v2049_v58 = vmul.f32 %v2036_v41, %v4996_v35  ;;  %v2125_v41 = vld [vmem:[%s7039_s2 + $0x50] sm:$0xff] }
 0x744   : > { %v2041_v28 = vpop.permute.xlu1 %2040 }
 0x747   : > { %2077 = vrot.lane.b32.xlu1 %v2048_v19, %s4180_s15  ;;  %2075 = vrot.lane.b32.xlu0 %v2047_v37, %s4180_s15  ;;  %v2053_v19 = vmul.f32 %v2041_v28, %v4998_v48  ;;  %v2054_v37 = vmul.f32 %v2041_v28, %v5000_v6 }
 0x748   : > { %2073 = vrot.lane.b32.xlu2 %v2046_v20, %s4180_s15  ;;  %v2052_v20 = vmul.f32 %v2041_v28, %v4996_v35  ;;  %v4082_v28 = vld [vmem:[%s7038_s1 + $0x2a0] sm:$0xff] }
 0x74f   : > { %2083 = vrot.lane.b32.xlu1 %v2051_v4, %s4180_s15  ;;  %2081 = vrot.lane.b32.xlu0 %v2050_v51, %s4180_s15  ;;  %v2124_v51 = vld [vmem:[%s7039_s2 + $0x48] sm:$0xff]  ;;  %v2123_v4 = vld [vmem:[%s7039_s2 + $0x40] sm:$0xff] }
 0x750   : > { %2079 = vrot.lane.b32.xlu2 %v2049_v58, %s4180_s15  ;;  %v4083_v58 = vld [vmem:[%s7038_s1 + $0x2a8] sm:$0xff] }
 0x757   : > { %2089 = vrot.lane.b32.xlu1 %v2054_v37, %s4180_s15  ;;  %2087 = vrot.lane.b32.xlu0 %v2053_v19, %s4180_s15  ;;  %v2126_v19 = vld [vmem:[%s7039_s2 + $0x58] sm:$0xff]  ;;  %v4086_v37 = vld [vmem:[%s7038_s1 + $0x2c0] sm:$0xff] }
 0x758   : > { %2085 = vrot.lane.b32.xlu2 %v2052_v20, %s4180_s15  ;;  %v4085_v20 = vld [vmem:[%s7038_s1 + $0x2b8] sm:$0xff] }
 0x75f   : > { %2139 = vperm.xlu1 %4167, %v2125_v41   ;;  %2134 = vperm.xlu0 %4166, %v2124_v51   ;;  %v4084_v41 = vld [vmem:[%s7038_s1 + $0x2b0] sm:$0xff]  ;;  %v4089_v51 = vld [vmem:[%s7038_s1 + $0x2d8] sm:$0xff] }
 0x760   : > { %2129 = vperm.xlu2 %4168, %v2123_v4   ;;  %v4088_v4 = vld [vmem:[%s7038_s1 + $0x2d0] sm:$0xff] }
 0x767   : > { %2196 = vperm.xlu1 %4167, %v4083_v58   ;;  %2191 = vperm.xlu0 %4166, %v4082_v28   ;;  %v4087_v58 = vld [vmem:[%s7038_s1 + $0x2c8] sm:$0xff]  ;;  %v4093_v28 = vld [vmem:[%s7038_s1 + $0x2f0] sm:$0xff] }
 0x768   : > { %2144 = vperm.xlu2 %4168, %v2126_v19   ;;  %v4092_v19 = vld [vmem:[%s7038_s1 + $0x2e8] sm:$0xff] }
 0x76f   : > { %2248 = vperm.xlu1 %4167, %v4086_v37   ;;  %2206 = vperm.xlu0 %4166, %v4085_v20   ;;  %v4091_v37 = vld [vmem:[%s7038_s1 + $0x2e0] sm:$0xff]  ;;  %v4097_v20 = vld [vmem:[%s7038_s1 + $0x308] sm:$0xff] }
 0x770   : > { %2201 = vperm.xlu2 %4168, %v4084_v41   ;;  %v4096_v41 = vld [vmem:[%s7038_s1 + $0x300] sm:$0xff] }
 0x777   : > { %2263 = vperm.xlu1 %4167, %v4089_v51   ;;  %2258 = vperm.xlu0 %4166, %v4088_v4   ;;  %v4094_v51 = vld [vmem:[%s7038_s1 + $0x2f8] sm:$0xff] }
 0x778   : > { %2253 = vperm.xlu2 %4168, %v4087_v58   ;;  %v4099_v4 = vld [vmem:[%s7038_s1 + $0x318] sm:$0xff]  ;;  %v4098_v58 = vld [vmem:[%s7038_s1 + $0x310] sm:$0xff] }
 0x77f   : > { %2315 = vperm.xlu1 %4167, %v4093_v28   ;;  %2310 = vperm.xlu0 %4166, %v4092_v19   ;;  %v1038_v28 = vmul.f32 %v4856_v59, %v4733_v50  ;;  %v1039_v19 = vmul.f32 %v4850_v55, %v4733_v50 }
 0x780   : > { %2305 = vperm.xlu2 %4168, %v4091_v37   ;;  %v1040_v37 = vmul.f32 %v4847_v39, %v4733_v50  ;;  %v1095_v50 = vmul.f32 %v4929_v56, %v4854_v2  ;;  %v1099_v2 = vmul.f32 %v4931_v1, %v4868_v8  ;;  %v1104_v8 = vmul.f32 %v4929_v56, %v4866_v61 }
 0x782   : > { %v1109_v16 = vadd.f32 %v1097_v45, %v1040_v37  ;;  %v1107_v34 = vadd.f32 %v1095_v50, %v1038_v28  ;;  %v1111_v30 = vadd.f32 %v1099_v2, %v1042_v17  ;;  %v1357_v50 = vsel %vm702_vm1, %v4979_v24, %v4983_v32 }
 0x787   : > { %2366 = vperm.xlu1 %4167, %v4097_v20   ;;  %2361 = vperm.xlu0 %4166, %v4096_v41   ;;  %v1047_v20 = vmul.f32 %v4856_v59, %v4775_v26  ;;  %v1048_v41 = vmul.f32 %v4850_v55, %v4775_v26  ;;  %v1156_v55 = vmul.f32 %v4998_v48, %v4840_v3 }
 0x788   : > { %2320 = vperm.xlu2 %4168, %v4094_v51   ;;  %v1049_v51 = vmul.f32 %v4847_v39, %v4775_v26  ;;  %v1041_v26 = vmul.f32 %v4856_v59, %v4838_v15  ;;  %v1044_v15 = vmul.f32 %v4856_v59, %v4858_v52  ;;  %v1160_v3 = vmul.f32 %v5000_v6, %v4870_v7 }
 0x789   : > { %v1117_v61 = vadd.f32 %v1105_v54, %v1048_v41  ;;  %v1168_v54 = vadd.f32 %v1156_v55, %v1111_v30  ;;  %v7206_v55 = vld [vmem:[#allocation7_spill] sm:$0xff] }
 0x78a   : > { %v1110_v59 = vadd.f32 %v1098_v63, %v1041_v26  ;;  %v1163_v63 = vmul.f32 %v5000_v6, %v4874_v49  ;;  %v1118_v17 = vadd.f32 %v1106_v60, %v1049_v51 }
 0x78f   : > { %2376 = vperm.xlu0 %4166, %v4099_v4   ;;  %v1101_v4 = vmul.f32 %v4929_v56, %v4814_v40  ;;  %v1154_v56 = vmul.f32 %v5000_v6, %v4872_v9  ;;  %v1250_v9 = vsel %vm702_vm1, %v4908_v53, %v4912_v62 }
 0x790   : > { %2371 = vperm.xlu2 %4168, %v4098_v58   ;;  %v1102_v58 = vmul.f32 %v4931_v1, %v4814_v40  ;;  %v1046_v40 = vmul.f32 %v4847_v39, %v4858_v52  ;;  %v1108_v39 = vadd.f32 %v1096_v11, %v1039_v19  ;;  %v1158_v1 = vmul.f32 %v4996_v35, %v4870_v7 }
 0x791   : > { %v1113_v45 = vadd.f32 %v1101_v4, %v1044_v15  ;;  %v1169_v11 = vadd.f32 %v1157_v12, %v1112_v43  ;;  %v1167_v19 = vadd.f32 %v1155_v23, %v1110_v59  ;;  %v1166_v37 = vadd.f32 %v1154_v56, %v1109_v16 }
 0x792   : > { %v1114_v14 = vadd.f32 %v1102_v58, %v1045_v47  ;;  %v1115_v21 = vadd.f32 %v1103_v42, %v1046_v40  ;;  %v1159_v47 = vmul.f32 %v4998_v48, %v4870_v7  ;;  %v1162_v7 = vmul.f32 %v4998_v48, %v4874_v49 }
 0x793   : > { %v1116_v42 = vadd.f32 %v1104_v8, %v1047_v20  ;;  %v1170_v4 = vadd.f32 %v1158_v1, %v1113_v45  ;;  %v1165_v6 = vadd.f32 %v1153_v0, %v1108_v39  ;;  %v1164_v58 = vadd.f32 %v1152_v18, %v1107_v34  ;;  %v7209_v1 = vld [vmem:[#allocation9_spill] sm:$0xff] }
 0x794   : > { %v1172_v28 = vadd.f32 %v1160_v3, %v1115_v21  ;;  %v1171_v41 = vadd.f32 %v1159_v47, %v1114_v14  ;;  %v1249_v35 = vsel %vm702_vm1, %v4906_v57, %v4908_v53  ;;  %v1175_v49 = vadd.f32 %v1163_v63, %v1118_v17  ;;  %v7208_v3 = vld [vmem:[#allocation3_spill] sm:$0xff]  ;;  %v7210_v47 = vld [vmem:[#allocation8_spill] sm:$0xff]  ;;  %v7212_v0 = vld [vmem:[#allocation13_spill] sm:$0xff] }
 0x795   : > { %v1271_v60 = vadd.f32 %v4912_v62, %v1166_v37  ;;  %v1274_v43 = vadd.f32 %v4916_v36, %v1169_v11  ;;  %v1174_v21 = vadd.f32 %v1162_v7, %v1117_v61  ;;  %v1173_v30 = vadd.f32 %v1161_v25, %v1116_v42  ;;  %v7213_v63 = vld [vmem:[#allocation10_spill] sm:$0xff]  ;;  %v7215_v17 = vld [vmem:[#allocation17_spill] sm:$0xff]  ;;  %v7216_v42 = vld [vmem:[#allocation11_spill] sm:$0xff] }
 0x796   : > { %v1270_v16 = vadd.f32 %v1250_v9, %v1165_v6  ;;  %v1252_v48 = vsel %vm702_vm1, %v4914_v10, %v4916_v36  ;;  %v1251_v34 = vsel %vm702_vm1, %v4910_v44, %v4914_v10  ;;  %v1254_v57 = vsel %vm702_vm1, %v4920_v5, %v4924_v29  ;;  %v7214_v25 = vld [vmem:[#allocation14_spill] sm:$0xff]  ;;  %v7217_v9 = vld [vmem:[#allocation16_spill] sm:$0xff] }
 0x797   : > { %v1269_v62 = vadd.f32 %v1249_v35, %v1164_v58  ;;  %v1253_v14 = vsel %vm702_vm1, %v4918_v38, %v4920_v5  ;;  %v1256_v12 = vsel %vm702_vm1, %v4927_v27, %v4940_v13  ;;  %v1255_v36 = vsel %vm702_vm1, %v4922_v46, %v4927_v27  ;;  %v7218_v58 = vld [vmem:[#allocation24_spill] sm:$0xff]  ;;  %v7219_v35 = vld [vmem:[#allocation23_spill] sm:$0xff] }
 0x798   : > { %v1277_v44 = vadd.f32 %v4924_v29, %v1172_v28  ;;  %v1280_v10 = vadd.f32 %v4940_v13, %v1175_v49  ;;  %v1354_v23 = vsel %vm702_vm1, %v4975_v33, %v4973_v31  ;;  %v1355_v38 = vsel %vm702_vm1, %v4973_v31, %v4977_v22  ;;  %v7205_v13 = vld [vmem:[#allocation4_spill] sm:$0xff]  ;;  %v7207_v31 = vld [vmem:[#allocation5_spill] sm:$0xff] }
 0x799   : > { %v1273_v5 = vadd.f32 %v1252_v48, %v1168_v54  ;;  %v1272_v20 = vadd.f32 %v1251_v34, %v1167_v19  ;;  %v1276_v51 = vadd.f32 %v1254_v57, %v1171_v41  ;;  %v1275_v46 = vadd.f32 %v1253_v14, %v1170_v4  ;;  %v7221_v57 = vld [vmem:[#allocation18_spill] sm:$0xff] }
 0x79a   : > { %v5504_v52 = vpop.permute.xlu2 %2067  ;;  %v1279_v27 = vadd.f32 %v1256_v12, %v1174_v21  ;;  %v1278_v29 = vadd.f32 %v1255_v36, %v1173_v30  ;;  %v1356_v26 = vsel %vm702_vm1, %v7205_v13, %v4979_v24  ;;  %v1374_v40 = vadd.f32 %v1354_v23, %v1269_v62  ;;  %v7222_v62 = vld [vmem:[#allocation12_spill] sm:$0xff]  ;;  %v7223_v12 = vld [vmem:[#allocation34_spill] sm:$0xff]  ;;  %v7224_v36 = vld [vmem:[#allocation35_spill] sm:$0xff] }
 0x79b   : > { %v1375_v33 = vadd.f32 %v1355_v38, %v1270_v16  ;;  %v1376_v2 = vadd.f32 %v4977_v22, %v1271_v60  ;;  %v1359_v15 = vsel %vm702_vm1, %v7207_v31, %v7206_v55  ;;  %v1378_v39 = vadd.f32 %v1357_v50, %v1273_v5  ;;  %v7211_v22 = vld [vmem:[#allocation6_spill] sm:$0xff]  ;;  %v7226_v38 = vld [vmem:[#allocation19_spill] sm:$0xff] }
 0x79c   : > { %v1379_v8 = vadd.f32 %v4983_v32, %v1274_v43  ;;  %v1358_v59 = vsel %vm702_vm1, %v7208_v3, %v7207_v31  ;;  %v1361_v56 = vsel %vm702_vm1, %v7210_v47, %v7209_v1  ;;  %v1377_v24 = vadd.f32 %v1356_v26, %v1272_v20  ;;  %v7220_v60 = vld [vmem:[#allocation22_spill] sm:$0xff] }
 0x79d   : > { %v1382_v45 = vadd.f32 %v7206_v55, %v1277_v44  ;;  %v1360_v61 = vsel %vm702_vm1, %v7211_v22, %v7210_v47  ;;  %v1381_v18 = vadd.f32 %v1359_v15, %v1276_v51  ;;  %v1459_v32 = vsel %vm702_vm1, %v7213_v63, %v7212_v0  ;;  %v7229_v26 = vld [vmem:[#allocation50_spill] sm:$0xff]  ;;  %v7231_v55 = vld [vmem:[#allocation15_spill] sm:$0xff] }
 0x79e   : > { %v1460_v7 = vsel %vm702_vm1, %v7212_v0, %v7214_v25  ;;  %v1461_v11 = vsel %vm702_vm1, %v7216_v42, %v7215_v17  ;;  %v1380_v54 = vadd.f32 %v1358_v59, %v1275_v46  ;;  %v1384_v19 = vadd.f32 %v1361_v56, %v1279_v27  ;;  %v7227_v27 = vld [vmem:[#allocation49_spill] sm:$0xff]  ;;  %v7233_v56 = vld [vmem:[#allocation60_spill] sm:$0xff]  ;;  %v7235_v22 = vld [vmem:[#allocation58_spill] sm:$0xff] }
 0x79f   : > { %v1385_v37 = vadd.f32 %v7209_v1, %v1280_v10  ;;  %v1462_v41 = vsel %vm702_vm1, %v7215_v17, %v7217_v9  ;;  %v1383_v4 = vadd.f32 %v1360_v61, %v1278_v29  ;;  %v1481_v6 = vadd.f32 %v7214_v25, %v1376_v2  ;;  %v7225_v10 = vld [vmem:[#allocation36_spill] sm:$0xff]  ;;  %v7228_v29 = vld [vmem:[#allocation46_spill] sm:$0xff]  ;;  %v7232_v59 = vld [vmem:[#allocation21_spill] sm:$0xff] }
 0x7a0   : > { %v1566_v49 = vsel %vm1564_vm2, %v7219_v35, %v7218_v58  ;;  %v1565_v43 = vsel %vm1564_vm2, %v7220_v60, %v7219_v35  ;;  %v1479_v21 = vadd.f32 %v1459_v32, %v1374_v40  ;;  %v1480_v30 = vadd.f32 %v1460_v7, %v1375_v33  ;;  %v7230_v2 = vld [vmem:[#allocation20_spill] sm:$0xff]  ;;  %v7239_v35 = vld [vmem:[#allocation27_spill] sm:$0xff] }
 0x7a1   : > { %v1484_v16 = vadd.f32 %v7217_v9, %v1379_v8  ;;  %v1482_v48 = vadd.f32 %v1461_v11, %v1377_v24  ;;  %v1483_v34 = vadd.f32 %v1462_v41, %v1378_v39  ;;  %v1463_v14 = vsel %vm702_vm1, %v7222_v62, %v7221_v57  ;;  %v7234_v24 = vld [vmem:[#allocation59_spill] sm:$0xff]  ;;  %v7236_v11 = vld [vmem:[#allocation70_spill] sm:$0xff]  ;;  %v7238_v41 = vld [vmem:[#allocation72_spill] sm:$0xff] }
 0x7a2   : > { %v5539_v53 = vpop.permute.xlu2 %2073  ;;  %v1670_v44 = vsel %vm1564_vm2, %v7224_v36, %v7223_v12  ;;  %v1671_v23 = vsel %vm1564_vm2, %v7223_v12, %v7225_v10  ;;  %v1487_v5 = vadd.f32 %v7226_v38, %v1382_v45  ;;  %v1586_v20 = vadd.f32 %v1566_v49, %v1480_v30 }
 0x7a3   : > { %v1585_v51 = vadd.f32 %v1565_v43, %v1479_v21  ;;  %v1464_v50 = vsel %vm702_vm1, %v7221_v57, %v7226_v38  ;;  %v1587_v46 = vadd.f32 %v7218_v58, %v1481_v6  ;;  %v1775_v13 = vsel %vm1564_vm2, %v7228_v29, %v7227_v27  ;;  %v7241_v57 = vld [vmem:[#allocation25_spill] sm:$0xff]  ;;  %v7245_v38 = vld [vmem:[#allocation28_spill] sm:$0xff] }
 0x7a4   : > { %v1776_v40 = vsel %vm1564_vm2, %v7227_v27, %v7229_v26  ;;  %v1485_v33 = vadd.f32 %v1463_v14, %v1380_v54  ;;  %v1465_v31 = vsel %vm702_vm1, %v7231_v55, %v7230_v2  ;;  %v1691_v39 = vadd.f32 %v1671_v23, %v1586_v20  ;;  %v7237_v54 = vld [vmem:[#allocation71_spill] sm:$0xff]  ;;  %v7243_v14 = vld [vmem:[#allocation29_spill] sm:$0xff] }
 0x7a5   : > { %v1690_v15 = vadd.f32 %v1670_v44, %v1585_v51  ;;  %v1466_v1 = vsel %vm702_vm1, %v7230_v2, %v7232_v59  ;;  %v1692_v47 = vadd.f32 %v7225_v10, %v1587_v46  ;;  %v1882_v45 = vsel %vm1880_vm3, %v7234_v24, %v7233_v56  ;;  %v7244_v10 = vld [vmem:[#allocation33_spill] sm:$0xff]  ;;  %v7246_v51 = vld [vmem:[#allocation32_spill] sm:$0xff]  ;;  %v7247_v46 = vld [vmem:[#allocation30_spill] sm:$0xff] }
 0x7a6   : > { %v1881_v61 = vsel %vm1880_vm3, %v7235_v22, %v7234_v24  ;;  %v1486_v63 = vadd.f32 %v1464_v50, %v1381_v18  ;;  %v1490_v32 = vadd.f32 %v7232_v59, %v1385_v37  ;;  %v1796_v7 = vadd.f32 %v1776_v40, %v1691_v39  ;;  %v7240_v37 = vld [vmem:[#allocation26_spill] sm:$0xff]  ;;  %v7249_v59 = vld [vmem:[#allocation37_spill] sm:$0xff] }
 0x7a7   : > { %v1795_v25 = vadd.f32 %v1775_v13, %v1690_v15  ;;  %v1488_v17 = vadd.f32 %v1465_v31, %v1383_v4  ;;  %v1797_v42 = vadd.f32 %v7229_v26, %v1692_v47  ;;  %v1986_v9 = vsel %vm1880_vm3, %v7237_v54, %v7236_v11  ;;  %v7250_v22 = vld [vmem:[#allocation38_spill] sm:$0xff]  ;;  %v7255_v54 = vld [vmem:[#allocation44_spill] sm:$0xff] }
 0x7a8   : > { %v1987_v6 = vsel %vm1880_vm3, %v7236_v11, %v7238_v41  ;;  %v1489_v58 = vadd.f32 %v1466_v1, %v1384_v19  ;;  %v1590_v49 = vadd.f32 %v7239_v35, %v1484_v16  ;;  %v1902_v60 = vadd.f32 %v1882_v45, %v1796_v7  ;;  %v7242_v19 = vld [vmem:[#allocation31_spill] sm:$0xff] }
 0x7a9   : > { %v1901_v18 = vadd.f32 %v1881_v61, %v1795_v25  ;;  %v1568_v43 = vsel %vm1564_vm2, %v7240_v37, %v7239_v35  ;;  %v1903_v4 = vadd.f32 %v7233_v56, %v1797_v42  ;;  %v1567_v62 = vsel %vm1564_vm2, %v7241_v57, %v7240_v37  ;;  %v7253_v42 = vld [vmem:[#allocation40_spill] sm:$0xff]  ;;  %v7256_v35 = vld [vmem:[#allocation42_spill] sm:$0xff] }
 0x7aa   : > { %v5588_v28 = vpop.permute.xlu2 %2079  ;;  %v1570_v16 = vsel %vm1564_vm2, %v7243_v14, %v7242_v19  ;;  %v2007_v36 = vadd.f32 %v1987_v6, %v1902_v60  ;;  %v1593_v44 = vadd.f32 %v7242_v19, %v1487_v5  ;;  %v1596_v23 = vadd.f32 %v7244_v10, %v1490_v32  ;;  %v7257_v60 = vld [vmem:[#allocation53_spill] sm:$0xff]  ;;  %v7261_v57 = vld [vmem:[#allocation48_spill] sm:$0xff]  ;;  %v7262_v19 = vld [vmem:[#allocation55_spill] sm:$0xff] }
 0x7ab   : > { %v2006_v12 = vadd.f32 %v1986_v9, %v1901_v18  ;;  %v2008_v20 = vadd.f32 %v7238_v41, %v1903_v4  ;;  %v1572_v50 = vsel %vm1564_vm2, %v7246_v51, %v7244_v10  ;;  %v1571_v27 = vsel %vm1564_vm2, %v7247_v46, %v7246_v51  ;;  %v7258_v18 = vld [vmem:[#allocation47_spill] sm:$0xff]  ;;  %v7259_v4 = vld [vmem:[#allocation52_spill] sm:$0xff] }
 0x7ac   : > { %v1589_v40 = vadd.f32 %v1568_v43, %v1483_v34  ;;  %v1588_v2 = vadd.f32 %v1567_v62, %v1482_v48  ;;  %v1592_v55 = vadd.f32 %v1570_v16, %v1486_v63  ;;  %v1595_v24 = vadd.f32 %v1572_v50, %v1489_v58  ;;  %v7251_v34 = vld [vmem:[#allocation43_spill] sm:$0xff] }
 0x7ad   : > { %v1594_v45 = vadd.f32 %v1571_v27, %v1488_v17  ;;  %v1672_v61 = vsel %vm1564_vm2, %v7250_v22, %v7249_v59  ;;  %v7254_v17 = vld [vmem:[#allocation45_spill] sm:$0xff]  ;;  %v1698_v58 = vadd.f32 %v7251_v34, %v1593_v44  ;;  %v1777_v37 = vsel %vm1564_vm2, %v7258_v18, %v7257_v60  ;;  %v7263_v44 = vld [vmem:[#allocation56_spill] sm:$0xff]  ;;  %v7264_v10 = vld [vmem:[#allocation51_spill] sm:$0xff] }
 0x7ae   : > { %v1677_v9 = vsel %vm1564_vm2, %v7255_v54, %v7254_v17  ;;  %v1693_v6 = vadd.f32 %v1672_v61, %v1588_v2  ;;  %v7265_v27 = vld [vmem:[#allocation57_spill] sm:$0xff] }
 0x7af   : > { %v7271_v22 = vld [vmem:[#allocation61_spill] sm:$0xff] }
 0x7b0   : > { %v1798_v46 = vadd.f32 %v1777_v37, %v1693_v6  ;;  %v7278_v37 = vld [vmem:[#allocation73_spill] sm:$0xff] }
 0x7b1   : > { %v2070_v8 = vpop.permute.xlu0 %2069  ;;  %v2072_v3 = vpop.permute.xlu1 %2071 }
 0x7b2   : > { %v5635_v0 = vpop.permute.xlu2 %2085  ;;  %v2091_v21 = vsel %vm1880_vm3, %v5504_v52, %v2070_v8  ;;  %v2092_v30 = vsel %vm1880_vm3, %v2070_v8, %v2072_v3  ;;  %v1569_v52 = vsel %vm1564_vm2, %v7245_v38, %v7243_v14  ;;  %v2113_v31 = vadd.f32 %v2072_v3, %v2008_v20  ;;  %v7248_v8 = vld [vmem:[#allocation39_spill] sm:$0xff]  ;;  %v7252_v3 = vld [vmem:[#allocation41_spill] sm:$0xff] }
 0x7b3   : > { %v2111_v29 = vadd.f32 %v2091_v21, %v2006_v12  ;;  %v2112_v13 = vadd.f32 %v2092_v30, %v2007_v36  ;;  %v1591_v39 = vadd.f32 %v1569_v52, %v1485_v33  ;;  %v1673_v1 = vsel %vm1564_vm2, %v7249_v59, %v7248_v8  ;;  %v7260_v30 = vld [vmem:[#allocation54_spill] sm:$0xff] }
 0x7b4   : > { %v1695_v48 = vadd.f32 %v7248_v8, %v1590_v49  ;;  %v1675_v33 = vsel %vm1564_vm2, %v7252_v3, %v7251_v34  ;;  %v1694_v7 = vadd.f32 %v1673_v1, %v1589_v40  ;;  %v1674_v11 = vsel %vm1564_vm2, %v7253_v42, %v7252_v3  ;;  %v7268_v59 = vld [vmem:[#allocation66_spill] sm:$0xff] }
 0x7b5   : > { %v1676_v49 = vsel %vm1564_vm2, %v7256_v35, %v7255_v54  ;;  %v1697_v43 = vadd.f32 %v1675_v33, %v1592_v55  ;;  %v1778_v21 = vsel %vm1564_vm2, %v7257_v60, %v7259_v4  ;;  %v1779_v62 = vsel %vm1564_vm2, %v7261_v57, %v7260_v30  ;;  %v7274_v33 = vld [vmem:[#allocation64_spill] sm:$0xff] }
 0x7b6   : > { %v1780_v14 = vsel %vm1564_vm2, %v7260_v30, %v7262_v19  ;;  %v1696_v16 = vadd.f32 %v1674_v11, %v1591_v39  ;;  %v1700_v12 = vadd.f32 %v1677_v9, %v1595_v24  ;;  %v1701_v36 = vadd.f32 %v7254_v17, %v1596_v23  ;;  %v7267_v39 = vld [vmem:[#allocation68_spill] sm:$0xff]  ;;  %v7270_v24 = vld [vmem:[#allocation62_spill] sm:$0xff] }
 0x7b7   : > { %v1781_v38 = vsel %vm1564_vm2, %v7264_v10, %v7263_v44  ;;  %v1699_v51 = vadd.f32 %v1676_v49, %v1594_v45  ;;  %v1800_v50 = vadd.f32 %v7259_v4, %v1695_v48  ;;  %v1803_v40 = vadd.f32 %v7262_v19, %v1698_v58  ;;  %v7273_v48 = vld [vmem:[#allocation65_spill] sm:$0xff]  ;;  %v7277_v11 = vld [vmem:[#allocation78_spill] sm:$0xff]  ;;  %v7280_v19 = vld [vmem:[#allocation75_spill] sm:$0xff] }
 0x7b8   : > { %v1801_v23 = vadd.f32 %v1779_v62, %v1696_v16  ;;  %v1802_v2 = vadd.f32 %v1780_v14, %v1697_v43  ;;  %v1806_v55 = vadd.f32 %v7265_v27, %v1701_v36  ;;  %v1887_v1 = vsel %vm1880_vm3, %v7268_v59, %v7267_v39  ;;  %v7279_v43 = vld [vmem:[#allocation74_spill] sm:$0xff]  ;;  %v7282_v10 = vld [vmem:[#allocation77_spill] sm:$0xff] }
 0x7b9   : > { %v5671_v26 = vpop.permute.xlu1 %2077  ;;  %v5673_v5 = vpop.permute.xlu0 %2075  ;;  %v1883_v61 = vsel %vm1880_vm3, %v7271_v22, %v7270_v24  ;;  %v1988_v4 = vsel %vm1880_vm3, %v7279_v43, %v7278_v37  ;;  %v1989_v14 = vsel %vm1880_vm3, %v7278_v37, %v7280_v19 }
 0x7ba   : > { %v2130_v15 = vpop.permute.xlu2 %2129  ;;  %v1904_v35 = vadd.f32 %v1883_v61, %v1798_v46  ;;  %v2094_v59 = vsel %vm1880_vm3, %v5673_v5, %v5671_v26 }
 0x7bb   : > { %v2147_v47 = vadd.f32 %v2130_v15, %v2111_v29  ;;  %v2148_v56 = vadd.f32 %v2130_v15, %v2112_v13  ;;  %v2149_v32 = vadd.f32 %v2130_v15, %v2113_v31  ;;  %v1782_v29 = vsel %vm1564_vm2, %v7263_v44, %v7265_v27  ;;  %v7266_v15 = vld [vmem:[#allocation69_spill] sm:$0xff]  ;;  %v7281_v44 = vld [vmem:[#allocation79_spill] sm:$0xff] }
 0x7bc   : > { %v1799_v13 = vadd.f32 %v1778_v21, %v1694_v7  ;;  %v1804_v31 = vadd.f32 %v1781_v38, %v1699_v51  ;;  %v1888_v8 = vsel %vm1880_vm3, %v7267_v39, %v7266_v15  ;;  %v1912_v3 = vadd.f32 %v7266_v15, %v1806_v55  ;;  %v7276_v7 = vld [vmem:[#allocation80_spill] sm:$0xff] }
 0x7bd   : > { %v2159_v63 = vmax.f32 %v2147_v47, 0.0  ;;  %v2160_v25 = vmax.f32 %v2148_v56, 0.0  ;;  %v2161_v41 = vmax.f32 %v2149_v32, 0.0  ;;  %v1805_v47 = vadd.f32 %v1782_v29, %v1700_v12  ;;  %v7269_v56 = vld [vmem:[#allocation63_spill] sm:$0xff]  ;;  %v7283_v51 = vld [vmem:[#allocation76_spill] sm:$0xff] }
 0x7be   : > { %v1884_v45 = vsel %vm1880_vm3, %v7270_v24, %v7269_v56  ;;  %v7272_v32 = vld [vmem:[#allocation67_spill] sm:$0xff]  ;;  %v1992_v17 = vsel %vm1880_vm3, %v7277_v11, %v7276_v7  ;;  %v1906_v54 = vadd.f32 %v7269_v56, %v1800_v50  ;;  %v1910_v6 = vadd.f32 %v1887_v1, %v1804_v31 }
 0x7bf   : > { %2171 = vst [vmem:[%s4380_s23 + $0xc0] sm:$0xff] %v2159_v63  ;;  %v1886_v34 = vsel %vm1880_vm3, %v7273_v48, %v7272_v32  ;;  %v1885_v63 = vsel %vm1880_vm3, %v7274_v33, %v7273_v48  ;;  %v1909_v9 = vadd.f32 %v7272_v32, %v1803_v40  ;;  %v1905_v58 = vadd.f32 %v1884_v45, %v1799_v13 }
 0x7c0   : > { %2172 = vst [vmem:[%s4380_s23 + $0xc8] sm:$0xff] %v2160_v25  ;;  %v7275_v25 = vld [vmem:[#allocation81_spill] sm:$0xff]  ;;  %v1908_v49 = vadd.f32 %v1886_v34, %v1802_v2  ;;  %v1907_v18 = vadd.f32 %v1885_v63, %v1801_v23  ;;  %v2015_v30 = vadd.f32 %v1992_v17, %v1910_v6  ;;  %v1991_v38 = vsel %vm1880_vm3, %v7282_v10, %v7281_v44 }
 0x7c1   : > { %2173 = vst.msk [vmem:[%s4380_s23 + $0xd0] sm:$0xff] %vm447_vm0, %v2161_v41  ;;  %v2084_v52 = vpop.permute.xlu1 %2083  ;;  %v2082_v20 = vpop.permute.xlu0 %2081  ;;  %v1993_v42 = vsel %vm1880_vm3, %v7276_v7, %v7275_v25  ;;  %v1911_v41 = vadd.f32 %v1888_v8, %v1805_v47  ;;  %v2017_v60 = vadd.f32 %v7275_v25, %v1912_v3  ;;  %v1990_v50 = vsel %vm1880_vm3, %v7283_v51, %v7282_v10 }
 0x7c2   : > { %v2145_v46 = vpop.permute.xlu2 %2144  ;;  %v2009_v13 = vadd.f32 %v1988_v4, %v1904_v35  ;;  %v2014_v40 = vadd.f32 %v7281_v44, %v1909_v9  ;;  %v2095_v2 = vsel %vm1880_vm3, %v5588_v28, %v2082_v20  ;;  %v2096_v55 = vsel %vm1880_vm3, %v2082_v20, %v2084_v52  ;;  %v2188_v4 = vld [vmem:[%s4332_s20] ss:$4 sm:$0x7] }
 0x7c3   : > { %v2016_v21 = vadd.f32 %v1993_v42, %v1911_v41  ;;  %v2013_v39 = vadd.f32 %v1991_v38, %v1908_v49  ;;  %v2012_v8 = vadd.f32 %v1990_v50, %v1907_v18  ;;  %v2010_v47 = vadd.f32 %v1989_v14, %v1905_v58 }
 0x7c4   : > { %v2119_v45 = vadd.f32 %v2084_v52, %v2014_v40 }
 0x7c5   : > { %v2117_v22 = vadd.f32 %v2095_v2, %v2012_v8  ;;  %v2118_v20 = vadd.f32 %v2096_v55, %v2013_v39  ;;  %v2115_v32 = vadd.f32 %v2094_v59, %v2010_v47  ;;  %v4100_v2 = vld [vmem:[%s7038_s1 + $0x320] sm:$0xff]  ;;  %v4102_v55 = vld [vmem:[%s7038_s1 + $0x330] sm:$0xff] }
 0x7c9   : > { %v2090_v57 = vpop.permute.xlu1 %2089  ;;  %v2088_v62 = vpop.permute.xlu0 %2087 }
 0x7ca   : > { %v2122_v16 = vadd.f32 %v2090_v57, %v2017_v60  ;;  %v2097_v12 = vsel %vm1880_vm3, %v5635_v0, %v2088_v62  ;;  %v2098_v36 = vsel %vm1880_vm3, %v2088_v62, %v2090_v57  ;;  %v2093_v0 = vsel %vm1880_vm3, %v5539_v53, %v5673_v5  ;;  %v5792_v6 = vpop.permute.xlu2 %2201 }
 0x7cb   : > { %v2120_v27 = vadd.f32 %v2097_v12, %v2015_v30  ;;  %v2121_v29 = vadd.f32 %v2098_v36, %v2016_v21  ;;  %v2011_v53 = vadd.f32 %v7280_v19, %v1906_v54  ;;  %v2114_v28 = vadd.f32 %v2093_v0, %v2009_v13 }
 0x7cc   : > { %v2158_v23 = vadd.f32 %v2145_v46, %v2122_v16  ;;  %v5811_v30 = vperm.slane %v2188_v4, 0  ;;  %v5813_v57 = vperm.slane %v2188_v4, 1  ;;  %v5815_v62 = vperm.slane %v2188_v4, 2 }
 0x7cd   : > { %v2156_v31 = vadd.f32 %v2145_v46, %v2120_v27  ;;  %v2157_v15 = vadd.f32 %v2145_v46, %v2121_v29  ;;  %v2116_v61 = vadd.f32 %v5671_v26, %v2011_v53 }
 0x7ce   : > { %v2170_v1 = vmax.f32 %v2158_v23, 0.0 }
 0x7cf   : > { %v2168_v56 = vmax.f32 %v2156_v31, 0.0  ;;  %v2169_v24 = vmax.f32 %v2157_v15, 0.0  ;;  %v4101_v31 = vld [vmem:[%s7038_s1 + $0x328] sm:$0xff]  ;;  %v4103_v15 = vld [vmem:[%s7038_s1 + $0x338] sm:$0xff] }
 0x7d0   : > { %2182 = vst.msk [vmem:[%s4380_s23 + $0x118] sm:$0xff] %vm447_vm0, %v2170_v1 }
 0x7d1   : > { %2180 = vst [vmem:[%s4380_s23 + $0x108] sm:$0xff] %v2168_v56  ;;  %v2140_v5 = vpop.permute.xlu1 %2139  ;;  %v2135_v48 = vpop.permute.xlu0 %2134 }
 0x7d2   : > { %2181 = vst [vmem:[%s4380_s23 + $0x110] sm:$0xff] %v2169_v24  ;;  %v2153_v34 = vadd.f32 %v2140_v5, %v2117_v22  ;;  %v2154_v3 = vadd.f32 %v2140_v5, %v2118_v20  ;;  %v2155_v33 = vadd.f32 %v2140_v5, %v2119_v45  ;;  %v2150_v52 = vadd.f32 %v2135_v48, %v2114_v28  ;;  %v5798_v49 = vpop.permute.xlu2 %2253  ;;  %v4090_v22 = vld [vmem:[%s4332_s20 + $0x1] ss:$4 sm:$0x7] }
 0x7d3   : > { %v2151_v63 = vadd.f32 %v2135_v48, %v2115_v32  ;;  %v2152_v25 = vadd.f32 %v2135_v48, %v2116_v61  ;;  %v5878_v61 = vperm.slane %v4090_v22, 0  ;;  %v5880_v32 = vperm.slane %v4090_v22, 1 }
 0x7d4   : > { %v2165_v7 = vmax.f32 %v2153_v34, 0.0  ;;  %v2166_v42 = vmax.f32 %v2154_v3, 0.0  ;;  %v2167_v26 = vmax.f32 %v2155_v33, 0.0  ;;  %v2162_v11 = vmax.f32 %v2150_v52, 0.0 }
 0x7d5   : > { %v2163_v17 = vmax.f32 %v2151_v63, 0.0  ;;  %v2164_v54 = vmax.f32 %v2152_v25, 0.0  ;;  %v5882_v5 = vperm.slane %v4090_v22, 2 }
 0x7d6   : > { %2177 = vst [vmem:[%s4380_s23 + $0xf0] sm:$0xff] %v2165_v7 }
 0x7d7   : > { %2178 = vst [vmem:[%s4380_s23 + $0xf8] sm:$0xff] %v2166_v42 }
 0x7d8   : > { %2179 = vst.msk [vmem:[%s4380_s23 + $0x100] sm:$0xff] %vm447_vm0, %v2167_v26 }
 0x7d9   : > { %2174 = vst [vmem:[%s4380_s23 + $0xd8] sm:$0xff] %v2162_v11  ;;  %v5785_v9 = vpop.permute.xlu1 %2196  ;;  %v5787_v41 = vpop.permute.xlu0 %2191 }
 0x7da   : > { %2175 = vst [vmem:[%s4380_s23 + $0xe0] sm:$0xff] %v2163_v17  ;;  %v5806_v43 = vpop.permute.xlu2 %2305 }
 0x7db   : > { %2176 = vst.msk [vmem:[%s4380_s23 + $0xe8] sm:$0xff] %vm447_vm0, %v2164_v54 }
 0x7e1   : > { %v5794_v58 = vpop.permute.xlu1 %2248  ;;  %v5796_v35 = vpop.permute.xlu0 %2206 }
 0x7e2   : > { %v5821_v36 = vpop.permute.xlu2 %2320 }
 0x7e9   : > { %v5800_v60 = vpop.permute.xlu0 %2258  ;;  %v5802_v18 = vpop.permute.xlu1 %2263 }
 0x7ea   : > { %v2372_v50 = vpop.permute.xlu2 %2371 }
 0x7eb   : > { %v2385_v46 = vmul.f32 %v2372_v50, %v5811_v30  ;;  %v2386_v27 = vmul.f32 %v2372_v50, %v5813_v57  ;;  %v2387_v29 = vmul.f32 %v2372_v50, %v5815_v62 }
 0x7f1   : > { %v5804_v37 = vpop.permute.xlu0 %2310  ;;  %v5809_v21 = vpop.permute.xlu1 %2315 }
 0x7f9   : > { %v2362_v19 = vpop.permute.xlu0 %2361  ;;  %v2367_v44 = vpop.permute.xlu1 %2366 }
 0x7fa   : > { %v2379_v14 = vmul.f32 %v2362_v19, %v5811_v30  ;;  %v2380_v16 = vmul.f32 %v2362_v19, %v5813_v57  ;;  %v2381_v12 = vmul.f32 %v2362_v19, %v5815_v62  ;;  %v2382_v10 = vmul.f32 %v2367_v44, %v5811_v30 }
 0x7fb   : > { %v2383_v38 = vmul.f32 %v2367_v44, %v5813_v57  ;;  %v2384_v51 = vmul.f32 %v2367_v44, %v5815_v62  ;;  %v4105_v44 = vld [vmem:[%s7038_s1 + $0x348] sm:$0xff] }
 0x7fc   : > { %2403 = vrot.lane.b32.xlu1 %v2379_v14, %s4178_s24  ;;  %2407 = vrot.lane.b32.xlu0 %v2381_v12, %s4178_s24  ;;  %v4106_v12 = vld [vmem:[%s7038_s1 + $0x350] sm:$0xff] }
 0x7fd   : > { %2405 = vrot.lane.b32.xlu2 %v2380_v16, %s4178_s24 }
 0x801   : > { %v2377_v13 = vpop.permute.xlu0 %2376 }
 0x802   : > { %v2388_v40 = vmul.f32 %v2377_v13, %v5811_v30  ;;  %v2389_v0 = vmul.f32 %v2377_v13, %v5813_v57  ;;  %v2390_v23 = vmul.f32 %v2377_v13, %v5815_v62 }
 0x804   : > { %2409 = vrot.lane.b32.xlu1 %v2382_v10, %s4178_s24  ;;  %2413 = vrot.lane.b32.xlu0 %v2384_v51, %s4178_s24  ;;  %v4104_v10 = vld [vmem:[%s7038_s1 + $0x340] sm:$0xff] }
 0x805   : > { %2411 = vrot.lane.b32.xlu2 %v2383_v38, %s4178_s24  ;;  %v4107_v38 = vld [vmem:[%s7038_s1 + $0x358] sm:$0xff] }
 0x80c   : > { %2415 = vrot.lane.b32.xlu1 %v2385_v46, %s4178_s24  ;;  %2419 = vrot.lane.b32.xlu0 %v2387_v29, %s4178_s24 }
 0x80d   : > { %2417 = vrot.lane.b32.xlu2 %v2386_v27, %s4178_s24 }
 0x814   : > { %2421 = vrot.lane.b32.xlu1 %v2388_v40, %s4178_s24  ;;  %2425 = vrot.lane.b32.xlu0 %v2390_v23, %s4178_s24  ;;  %v4095_v40 = vld [vmem:[%s4332_s20 + $0x2] ss:$4 sm:$0x7] }
 0x815   : > { %2423 = vrot.lane.b32.xlu2 %v2389_v0, %s4178_s24  ;;  %v5935_v0 = vperm.slane %v4095_v40, 0  ;;  %v5937_v23 = vperm.slane %v4095_v40, 1 }
 0x81c   : > { %2466 = vperm.xlu1 %4167, %v4100_v2   ;;  %2476 = vperm.xlu0 %4166, %v4102_v55  }
 0x81d   : > { %2471 = vperm.xlu2 %4168, %v4101_v31   ;;  %v5943_v31 = vperm.slane %v4095_v40, 2  ;;  %v4109_v40 = vld [vmem:[%s7038_s1 + $0x368] sm:$0xff] }
 0x824   : > { %2481 = vperm.xlu1 %4167, %v4103_v15  }
 0x857   : > { %v5855_v39 = vpop.permute.xlu2 %2405 }
 0x85f   : > { %v5861_v1 = vpop.permute.xlu2 %2411 }
 0x867   : > { %v5869_v24 = vpop.permute.xlu2 %2417 }
 0x868   : > { %7285 = vst [vmem:[#allocation7_spill] sm:$0xff] %v5869_v24 }
 0x86e   : > { %v5857_v8 = vpop.permute.xlu1 %2403  ;;  %v5859_v59 = vpop.permute.xlu0 %2407 }
 0x86f   : > { %v5876_v20 = vpop.permute.xlu2 %2423 }
 0x876   : > { %v5863_v47 = vpop.permute.xlu1 %2409  ;;  %v5865_v53 = vpop.permute.xlu0 %2413 }
 0x877   : > { %v2472_v63 = vpop.permute.xlu2 %2471 }
 0x878   : > { %v2488_v25 = vmul.f32 %v2472_v63, %v5880_v32  ;;  %v2489_v7 = vmul.f32 %v2472_v63, %v5882_v5  ;;  %v2487_v42 = vmul.f32 %v2472_v63, %v5878_v61 }
 0x87e   : > { %v5867_v56 = vpop.permute.xlu1 %2415  ;;  %v5873_v45 = vpop.permute.xlu0 %2419 }
 0x87f   : > { %7284 = vst [vmem:[#allocation4_spill] sm:$0xff] %v5867_v56 }
 0x880   : > { %7286 = vst [vmem:[#allocation5_spill] sm:$0xff] %v5873_v45 }
 0x886   : > { %v5871_v28 = vpop.permute.xlu1 %2421  ;;  %v5889_v52 = vpop.permute.xlu0 %2425 }
 0x88e   : > { %v2467_v48 = vpop.permute.xlu1 %2466  ;;  %v2477_v26 = vpop.permute.xlu0 %2476 }
 0x88f   : > { %v2484_v34 = vmul.f32 %v2467_v48, %v5878_v61  ;;  %v2485_v3 = vmul.f32 %v2467_v48, %v5880_v32  ;;  %v2486_v33 = vmul.f32 %v2467_v48, %v5882_v5  ;;  %v2491_v11 = vmul.f32 %v2477_v26, %v5880_v32 }
 0x890   : > { %v2492_v17 = vmul.f32 %v2477_v26, %v5882_v5  ;;  %v2490_v54 = vmul.f32 %v2477_v26, %v5878_v61 }
 0x891   : > { %2512 = vrot.lane.b32.xlu1 %v2486_v33, %s4178_s24  ;;  %2510 = vrot.lane.b32.xlu0 %v2485_v3, %s4178_s24 }
 0x892   : > { %2508 = vrot.lane.b32.xlu2 %v2484_v34, %s4178_s24 }
 0x896   : > { %v2482_v4 = vpop.permute.xlu1 %2481 }
 0x897   : > { %v2494_v19 = vmul.f32 %v2482_v4, %v5880_v32  ;;  %v2495_v14 = vmul.f32 %v2482_v4, %v5882_v5  ;;  %v2493_v16 = vmul.f32 %v2482_v4, %v5878_v61 }
 0x899   : > { %2518 = vrot.lane.b32.xlu1 %v2489_v7, %s4178_s24  ;;  %2516 = vrot.lane.b32.xlu0 %v2488_v25, %s4178_s24 }
 0x89a   : > { %2514 = vrot.lane.b32.xlu2 %v2487_v42, %s4178_s24 }
 0x8a1   : > { %2524 = vrot.lane.b32.xlu1 %v2492_v17, %s4178_s24  ;;  %2522 = vrot.lane.b32.xlu0 %v2491_v11, %s4178_s24 }
 0x8a2   : > { %2520 = vrot.lane.b32.xlu2 %v2490_v54, %s4178_s24 }
 0x8a9   : > { %2530 = vrot.lane.b32.xlu1 %v2495_v14, %s4178_s24  ;;  %2528 = vrot.lane.b32.xlu0 %v2494_v19, %s4178_s24 }
 0x8aa   : > { %2526 = vrot.lane.b32.xlu2 %v2493_v16, %s4178_s24 }
 0x8b1   : > { %2581 = vperm.xlu1 %4167, %v4106_v12   ;;  %2576 = vperm.xlu0 %4166, %v4105_v44  }
 0x8b2   : > { %2571 = vperm.xlu2 %4168, %v4104_v10   ;;  %v4108_v10 = vld [vmem:[%s7038_s1 + $0x360] sm:$0xff] }
 0x8ba   : > { %2586 = vperm.xlu2 %4168, %v4107_v38   ;;  %v4110_v38 = vld [vmem:[%s7038_s1 + $0x370] sm:$0xff] }
 0x8ec   : > { %v5922_v51 = vpop.permute.xlu2 %2508 }
 0x8f4   : > { %v5924_v50 = vpop.permute.xlu2 %2514 }
 0x8f5   : > { %7287 = vst [vmem:[#allocation3_spill] sm:$0xff] %v5924_v50  ;;  %v2341_v50 = vmul.f32 %v5943_v31, %v5821_v36 }
 0x8fc   : > { %v5926_v46 = vpop.permute.xlu2 %2520 }
 0x8fd   : > { %7288 = vst [vmem:[#allocation9_spill] sm:$0xff] %v5926_v46 }
 0x903   : > { %v5928_v27 = vpop.permute.xlu0 %2510  ;;  %v5930_v29 = vpop.permute.xlu1 %2512 }
 0x904   : > { %v5932_v13 = vpop.permute.xlu2 %2526 }
 0x90b   : > { %v5939_v2 = vpop.permute.xlu1 %2518  ;;  %v5941_v55 = vpop.permute.xlu0 %2516 }
 0x90c   : > { %7289 = vst [vmem:[#allocation8_spill] sm:$0xff] %v5939_v2  ;;  %v2572_v15 = vpop.permute.xlu2 %2571 }
 0x90d   : > { %7290 = vst [vmem:[#allocation6_spill] sm:$0xff] %v5941_v55  ;;  %v2589_v22 = vmul.f32 %v2572_v15, %v5935_v0  ;;  %v2590_v48 = vmul.f32 %v2572_v15, %v5937_v23  ;;  %v2591_v34 = vmul.f32 %v2572_v15, %v5943_v31  ;;  %v4111_v15 = vld [vmem:[%s7038_s1 + $0x378] sm:$0xff] }
 0x90f   : > { %2615 = vrot.lane.b32.xlu1 %v2590_v48, %s4178_s24  ;;  %2613 = vrot.lane.b32.xlu0 %v2589_v22, %s4178_s24 }
 0x910   : > { %2617 = vrot.lane.b32.xlu2 %v2591_v34, %s4178_s24 }
 0x913   : > { %v5951_v3 = vpop.permute.xlu0 %2522  ;;  %v5953_v33 = vpop.permute.xlu1 %2524 }
 0x914   : > { %7291 = vst [vmem:[#allocation13_spill] sm:$0xff] %v5951_v3  ;;  %v2587_v14 = vpop.permute.xlu2 %2586 }
 0x915   : > { %7292 = vst [vmem:[#allocation10_spill] sm:$0xff] %v5953_v33  ;;  %v2598_v16 = vmul.f32 %v2587_v14, %v5935_v0  ;;  %v2599_v12 = vmul.f32 %v2587_v14, %v5937_v23  ;;  %v2600_v44 = vmul.f32 %v2587_v14, %v5943_v31 }
 0x91b   : > { %v5955_v63 = vpop.permute.xlu0 %2528  ;;  %v5957_v25 = vpop.permute.xlu1 %2530 }
 0x923   : > { %v2577_v7 = vpop.permute.xlu0 %2576  ;;  %v2582_v17 = vpop.permute.xlu1 %2581 }
 0x924   : > { %v2592_v42 = vmul.f32 %v2577_v7, %v5935_v0  ;;  %v2593_v26 = vmul.f32 %v2577_v7, %v5937_v23  ;;  %v2594_v11 = vmul.f32 %v2577_v7, %v5943_v31  ;;  %v2595_v54 = vmul.f32 %v2582_v17, %v5935_v0 }
 0x925   : > { %v2596_v4 = vmul.f32 %v2582_v17, %v5937_v23  ;;  %v2597_v19 = vmul.f32 %v2582_v17, %v5943_v31 }
 0x926   : > { %2619 = vrot.lane.b32.xlu0 %v2592_v42, %s4178_s24  ;;  %2623 = vrot.lane.b32.xlu2 %v2594_v11, %s4178_s24 }
 0x927   : > { %2621 = vrot.lane.b32.xlu1 %v2593_v26, %s4178_s24 }
 0x92e   : > { %2625 = vrot.lane.b32.xlu0 %v2595_v54, %s4178_s24  ;;  %2629 = vrot.lane.b32.xlu2 %v2597_v19, %s4178_s24 }
 0x92f   : > { %2627 = vrot.lane.b32.xlu1 %v2596_v4, %s4178_s24 }
 0x936   : > { %2631 = vrot.lane.b32.xlu0 %v2598_v16, %s4178_s24  ;;  %2635 = vrot.lane.b32.xlu2 %v2600_v44, %s4178_s24 }
 0x937   : > { %2633 = vrot.lane.b32.xlu1 %v2599_v12, %s4178_s24 }
 0x93e   : > { %2676 = vperm.xlu0 %4166, %v4108_v10   ;;  %2686 = vperm.xlu2 %4168, %v4110_v38  }
 0x93f   : > { %2681 = vperm.xlu1 %4167, %v4109_v40  }
 0x946   : > { %2691 = vperm.xlu0 %4166, %v4111_v15  }
 0x96a   : > { %v5993_v34 = vpop.permute.xlu2 %2617 }
 0x980   : > { %v5999_v26 = vpop.permute.xlu2 %2623 }
 0x981   : > { %v5989_v22 = vpop.permute.xlu0 %2613  ;;  %v5991_v48 = vpop.permute.xlu1 %2615  ;;  %7295 = vst [vmem:[#allocation11_spill] sm:$0xff] %v5999_v26 }
 0x988   : > { %v6007_v4 = vpop.permute.xlu2 %2629 }
 0x989   : > { %7298 = vst [vmem:[#allocation23_spill] sm:$0xff] %v6007_v4 }
 0x990   : > { %v6016_v10 = vpop.permute.xlu2 %2635 }
 0x998   : > { %v5995_v7 = vpop.permute.xlu0 %2619 }
 0x999   : > { %7293 = vst [vmem:[#allocation14_spill] sm:$0xff] %v5995_v7  ;;  %v5997_v42 = vpop.permute.xlu1 %2621 }
 0x99a   : > { %7294 = vst [vmem:[#allocation17_spill] sm:$0xff] %v5997_v42 }
 0x9a0   : > { %v6001_v11 = vpop.permute.xlu0 %2625 }
 0x9a1   : > { %7296 = vst [vmem:[#allocation16_spill] sm:$0xff] %v6001_v11  ;;  %v6003_v17 = vpop.permute.xlu1 %2627 }
 0x9a2   : > { %7297 = vst [vmem:[#allocation24_spill] sm:$0xff] %v6003_v17 }
 0x9a8   : > { %v6005_v54 = vpop.permute.xlu0 %2631 }
 0x9a9   : > { %v6009_v19 = vpop.permute.xlu1 %2633 }
 0x9b0   : > { %v2677_v14 = vpop.permute.xlu0 %2676 }
 0x9b1   : > { %v2694_v16 = vmul.f32 %v2677_v14, %v5811_v30  ;;  %v2695_v12 = vmul.f32 %v2677_v14, %v5813_v57  ;;  %v2696_v44 = vmul.f32 %v2677_v14, %v5815_v62  ;;  %v2682_v38 = vpop.permute.xlu1 %2681  ;;  %v2687_v14 = vpop.permute.xlu2 %2686 }
 0x9b2   : > { %v2698_v40 = vmul.f32 %v2682_v38, %v5813_v57  ;;  %v2699_v15 = vmul.f32 %v2682_v38, %v5815_v62  ;;  %v2697_v11 = vmul.f32 %v2682_v38, %v5811_v30 }
 0x9b3   : > { %2722 = vrot.lane.b32.xlu0 %v2696_v44, %s4181_s16  ;;  %2720 = vrot.lane.b32.xlu2 %v2695_v12, %s4181_s16  ;;  %v2701_v12 = vmul.f32 %v2687_v14, %v5813_v57  ;;  %v2702_v44 = vmul.f32 %v2687_v14, %v5815_v62 }
 0x9b4   : > { %2718 = vrot.lane.b32.xlu1 %v2694_v16, %s4181_s16  ;;  %v2700_v16 = vmul.f32 %v2687_v14, %v5811_v30  ;;  %v4114_v14 = vld [vmem:[%s7038_s1 + $0x390] sm:$0xff] }
 0x9b8   : > { %v2692_v38 = vpop.permute.xlu0 %2691 }
 0x9bb   : > { %2728 = vrot.lane.b32.xlu0 %v2699_v15, %s4181_s16  ;;  %2726 = vrot.lane.b32.xlu2 %v2698_v40, %s4181_s16  ;;  %v2704_v15 = vmul.f32 %v2692_v38, %v5813_v57  ;;  %v2705_v40 = vmul.f32 %v2692_v38, %v5815_v62 }
 0x9bc   : > { %2724 = vrot.lane.b32.xlu1 %v2697_v11, %s4181_s16  ;;  %v2703_v11 = vmul.f32 %v2692_v38, %v5811_v30 }
 0x9c3   : > { %2734 = vrot.lane.b32.xlu0 %v2702_v44, %s4181_s16  ;;  %2732 = vrot.lane.b32.xlu2 %v2701_v12, %s4181_s16  ;;  %v4113_v12 = vld [vmem:[%s7038_s1 + $0x388] sm:$0xff]  ;;  %v4112_v44 = vld [vmem:[%s7038_s1 + $0x380] sm:$0xff] }
 0x9c4   : > { %2730 = vrot.lane.b32.xlu1 %v2700_v16, %s4181_s16  ;;  %v4115_v16 = vld [vmem:[%s7038_s1 + $0x398] sm:$0xff] }
 0x9cb   : > { %2740 = vrot.lane.b32.xlu0 %v2705_v40, %s4181_s16  ;;  %2738 = vrot.lane.b32.xlu2 %v2704_v15, %s4181_s16 }
 0x9cc   : > { %2736 = vrot.lane.b32.xlu1 %v2703_v11, %s4181_s16 }
 0x9d3   : > { %2792 = vperm.xlu0 %4166, %v4114_v14   ;;  %2787 = vperm.xlu2 %4168, %v4113_v12  }
 0x9d4   : > { %2782 = vperm.xlu1 %4167, %v4112_v44  }
 0x9dc   : > { %2797 = vperm.xlu1 %4167, %v4115_v16  }
 0xa0d   : > { %v6049_v38 = vpop.permute.xlu2 %2720 }
 0xa0e   : > { %7299 = vst [vmem:[#allocation22_spill] sm:$0xff] %v6049_v38 }
 0xa15   : > { %v6055_v11 = vpop.permute.xlu2 %2726 }
 0xa16   : > { %7301 = vst [vmem:[#allocation12_spill] sm:$0xff] %v6055_v11 }
 0xa1d   : > { %v6063_v12 = vpop.permute.xlu2 %2732 }
 0xa1e   : > { %7305 = vst [vmem:[#allocation19_spill] sm:$0xff] %v6063_v12 }
 0xa25   : > { %v6053_v40 = vpop.permute.xlu0 %2722  ;;  %v6069_v16 = vpop.permute.xlu2 %2738 }
 0xa26   : > { %v6051_v15 = vpop.permute.xlu1 %2718 }
 0xa27   : > { %7300 = vst [vmem:[#allocation18_spill] sm:$0xff] %v6051_v15 }
 0xa2d   : > { %v6059_v4 = vpop.permute.xlu0 %2728  ;;  %v2788_v12 = vpop.permute.xlu2 %2787 }
 0xa2e   : > { %v6057_v17 = vpop.permute.xlu1 %2724  ;;  %7303 = vst [vmem:[#allocation35_spill] sm:$0xff] %v6059_v4  ;;  %v2803_v4 = vmul.f32 %v2788_v12, %v5878_v61 }
 0xa2f   : > { %7302 = vst [vmem:[#allocation34_spill] sm:$0xff] %v6057_v17  ;;  %v2805_v17 = vmul.f32 %v2788_v12, %v5882_v5 }
 0xa35   : > { %v6067_v33 = vpop.permute.xlu0 %2734 }
 0xa36   : > { %v6061_v14 = vpop.permute.xlu1 %2730  ;;  %7306 = vst [vmem:[#allocation49_spill] sm:$0xff] %v6067_v33  ;;  %v2804_v33 = vmul.f32 %v2788_v12, %v5880_v32 }
 0xa37   : > { %7304 = vst [vmem:[#allocation36_spill] sm:$0xff] %v6061_v14 }
 0xa3d   : > { %v6076_v14 = vpop.permute.xlu0 %2740 }
 0xa3e   : > { %v6065_v44 = vpop.permute.xlu1 %2736 }
 0xa46   : > { %v2783_v46 = vpop.permute.xlu1 %2782 }
 0xa47   : > { %v2800_v3 = vmul.f32 %v2783_v46, %v5878_v61  ;;  %v2801_v7 = vmul.f32 %v2783_v46, %v5880_v32  ;;  %v2802_v11 = vmul.f32 %v2783_v46, %v5882_v5  ;;  %v2793_v46 = vpop.permute.xlu0 %2792 }
 0xa49   : > { %2828 = vrot.lane.b32.xlu1 %v2802_v11, %s4181_s16  ;;  %2826 = vrot.lane.b32.xlu0 %v2801_v7, %s4181_s16  ;;  %v2807_v7 = vmul.f32 %v2793_v46, %v5880_v32  ;;  %v2808_v11 = vmul.f32 %v2793_v46, %v5882_v5 }
 0xa4a   : > { %2824 = vrot.lane.b32.xlu2 %v2800_v3, %s4181_s16  ;;  %v2806_v3 = vmul.f32 %v2793_v46, %v5878_v61  ;;  %v4118_v46 = vld [vmem:[%s7038_s1 + $0x3b0] sm:$0xff] }
 0xa4e   : > { %v2798_v12 = vpop.permute.xlu1 %2797 }
 0xa51   : > { %2834 = vrot.lane.b32.xlu1 %v2805_v17, %s4181_s16  ;;  %2832 = vrot.lane.b32.xlu0 %v2804_v33, %s4181_s16  ;;  %v2810_v17 = vmul.f32 %v2798_v12, %v5880_v32  ;;  %v2811_v33 = vmul.f32 %v2798_v12, %v5882_v5 }
 0xa52   : > { %2830 = vrot.lane.b32.xlu2 %v2803_v4, %s4181_s16  ;;  %v2809_v4 = vmul.f32 %v2798_v12, %v5878_v61 }
 0xa59   : > { %2840 = vrot.lane.b32.xlu1 %v2808_v11, %s4181_s16  ;;  %2838 = vrot.lane.b32.xlu0 %v2807_v7, %s4181_s16  ;;  %v4117_v7 = vld [vmem:[%s7038_s1 + $0x3a8] sm:$0xff]  ;;  %v4116_v11 = vld [vmem:[%s7038_s1 + $0x3a0] sm:$0xff] }
 0xa5a   : > { %2836 = vrot.lane.b32.xlu2 %v2806_v3, %s4181_s16  ;;  %v4119_v3 = vld [vmem:[%s7038_s1 + $0x3b8] sm:$0xff] }
 0xa61   : > { %2846 = vrot.lane.b32.xlu1 %v2811_v33, %s4181_s16  ;;  %2844 = vrot.lane.b32.xlu0 %v2810_v17, %s4181_s16 }
 0xa62   : > { %2842 = vrot.lane.b32.xlu2 %v2809_v4, %s4181_s16 }
 0xa69   : > { %2897 = vperm.xlu1 %4167, %v4118_v46   ;;  %2892 = vperm.xlu0 %4166, %v4117_v7  }
 0xa6a   : > { %2887 = vperm.xlu2 %4168, %v4116_v11  }
 0xa72   : > { %2902 = vperm.xlu2 %4168, %v4119_v3  }
 0xaa4   : > { %v6109_v12 = vpop.permute.xlu2 %2824 }
 0xaa5   : > { %7307 = vst [vmem:[#allocation46_spill] sm:$0xff] %v6109_v12 }
 0xaac   : > { %v6111_v17 = vpop.permute.xlu2 %2830 }
 0xaad   : > { %7308 = vst [vmem:[#allocation50_spill] sm:$0xff] %v6111_v17 }
 0xab4   : > { %v6113_v33 = vpop.permute.xlu2 %2836 }
 0xab5   : > { %7309 = vst [vmem:[#allocation20_spill] sm:$0xff] %v6113_v33 }
 0xabb   : > { %v6115_v4 = vpop.permute.xlu0 %2826  ;;  %v6117_v42 = vpop.permute.xlu1 %2828 }
 0xabc   : > { %7310 = vst [vmem:[#allocation15_spill] sm:$0xff] %v6115_v4  ;;  %v2843_v26 = vpop.permute.xlu2 %2842 }
 0xabd   : > { %7311 = vst [vmem:[#allocation21_spill] sm:$0xff] %v6117_v42 }
 0xac3   : > { %v6119_v45 = vpop.permute.xlu1 %2834  ;;  %v6121_v46 = vpop.permute.xlu0 %2832 }
 0xac4   : > { %7312 = vst [vmem:[#allocation60_spill] sm:$0xff] %v6119_v45  ;;  %v2888_v7 = vpop.permute.xlu2 %2887 }
 0xac5   : > { %7313 = vst [vmem:[#allocation59_spill] sm:$0xff] %v6121_v46  ;;  %v2905_v11 = vmul.f32 %v2888_v7, %v5935_v0  ;;  %v2906_v3 = vmul.f32 %v2888_v7, %v5937_v23  ;;  %v2907_v2 = vmul.f32 %v2888_v7, %v5943_v31 }
 0xac7   : > { %2931 = vrot.lane.b32.xlu1 %v2906_v3, %s4181_s16  ;;  %2929 = vrot.lane.b32.xlu0 %v2905_v11, %s4181_s16 }
 0xac8   : > { %2933 = vrot.lane.b32.xlu2 %v2907_v2, %s4181_s16 }
 0xacb   : > { %v6129_v33 = vpop.permute.xlu1 %2840  ;;  %v6131_v17 = vpop.permute.xlu0 %2838 }
 0xacc   : > { %7314 = vst [vmem:[#allocation58_spill] sm:$0xff] %v6129_v33 }
 0xacd   : > { %7315 = vst [vmem:[#allocation70_spill] sm:$0xff] %v6131_v17 }
 0xad3   : > { %v2847_v45 = vpop.permute.xlu1 %2846  ;;  %v2845_v46 = vpop.permute.xlu0 %2844 }
 0xad4   : > { %v6134_v56 = vsel %vm2742_vm4, %v2843_v26, %v2845_v46  ;;  %v6137_v24 = vsel %vm2742_vm4, %v2845_v46, %v2847_v45 }
 0xadb   : > { %v2893_v7 = vpop.permute.xlu0 %2892  ;;  %v2898_v17 = vpop.permute.xlu1 %2897 }
 0xadc   : > { %v2908_v3 = vmul.f32 %v2893_v7, %v5935_v0  ;;  %v2909_v11 = vmul.f32 %v2893_v7, %v5937_v23  ;;  %v2910_v2 = vmul.f32 %v2893_v7, %v5943_v31  ;;  %v2911_v26 = vmul.f32 %v2898_v17, %v5935_v0  ;;  %v2903_v7 = vpop.permute.xlu2 %2902 }
 0xadd   : > { %v2912_v33 = vmul.f32 %v2898_v17, %v5937_v23  ;;  %v2913_v46 = vmul.f32 %v2898_v17, %v5943_v31  ;;  %v4120_v17 = vld [vmem:[%s7038_s1 + $0x3c0] sm:$0xff] }
 0xade   : > { %2935 = vrot.lane.b32.xlu0 %v2908_v3, %s4181_s16  ;;  %2939 = vrot.lane.b32.xlu2 %v2910_v2, %s4181_s16  ;;  %v2914_v3 = vmul.f32 %v2903_v7, %v5935_v0  ;;  %v2915_v2 = vmul.f32 %v2903_v7, %v5937_v23 }
 0xadf   : > { %2937 = vrot.lane.b32.xlu1 %v2909_v11, %s4181_s16  ;;  %v2916_v11 = vmul.f32 %v2903_v7, %v5943_v31 }
 0xae6   : > { %2941 = vrot.lane.b32.xlu0 %v2911_v26, %s4181_s16  ;;  %2945 = vrot.lane.b32.xlu2 %v2913_v46, %s4181_s16  ;;  %v4121_v26 = vld [vmem:[%s7038_s1 + $0x3c8] sm:$0xff]  ;;  %v4123_v46 = vld [vmem:[%s7038_s1 + $0x3d8] sm:$0xff] }
 0xae7   : > { %2943 = vrot.lane.b32.xlu1 %v2912_v33, %s4181_s16  ;;  %v4122_v33 = vld [vmem:[%s7038_s1 + $0x3d0] sm:$0xff] }
 0xaee   : > { %2947 = vrot.lane.b32.xlu0 %v2914_v3, %s4181_s16  ;;  %2951 = vrot.lane.b32.xlu2 %v2916_v11, %s4181_s16  ;;  %v2284_v3 = vmul.f32 %v5882_v5, %v5802_v18 }
 0xaef   : > { %2949 = vrot.lane.b32.xlu1 %v2915_v2, %s4181_s16  ;;  %v2227_v2 = vmul.f32 %v5815_v62, %v5796_v35 }
 0xaf6   : > { %2992 = vperm.xlu0 %4166, %v4120_v17   ;;  %3002 = vperm.xlu2 %4168, %v4122_v33  }
 0xaf7   : > { %2997 = vperm.xlu1 %4167, %v4121_v26  }
 0xafe   : > { %3007 = vperm.xlu0 %4166, %v4123_v46   ;;  %v2296_v46 = vadd.f32 %v2284_v3, %v2227_v2  ;;  %v2282_v3 = vmul.f32 %v5878_v61, %v5802_v18 }
 0xb00   : > { %v2353_v55 = vadd.f32 %v2341_v50, %v2296_v46  ;;  %v2283_v50 = vmul.f32 %v5880_v32, %v5802_v18  ;;  %v2339_v18 = vmul.f32 %v5935_v0, %v5821_v36  ;;  %v2340_v46 = vmul.f32 %v5937_v23, %v5821_v36 }
 0xb02   : > { %v2458_v4 = vadd.f32 %v5889_v52, %v2353_v55  ;;  %v2225_v55 = vmul.f32 %v5811_v30, %v5796_v35 }
 0xb04   : > { %v2563_v15 = vadd.f32 %v5957_v25, %v2458_v4  ;;  %v2226_v4 = vmul.f32 %v5813_v57, %v5796_v35  ;;  %v2434_v35 = vsel %vm702_vm1, %v5876_v20, %v5889_v52  ;;  %v2644_v52 = vsel %vm702_vm1, %v6009_v19, %v6016_v10 }
 0xb06   : > { %v2668_v38 = vadd.f32 %v6016_v10, %v2563_v15  ;;  %v2749_v10 = vsel %vm2742_vm4, %v6065_v44, %v6069_v16 }
 0xb22   : > { %v6169_v7 = vpop.permute.xlu2 %2933 }
 0xb23   : > { %7316 = vst [vmem:[#allocation71_spill] sm:$0xff] %v6169_v7 }
 0xb38   : > { %v6182_v26 = vpop.permute.xlu2 %2939 }
 0xb39   : > { %v2932_v11 = vpop.permute.xlu1 %2931  ;;  %v2930_v12 = vpop.permute.xlu0 %2929  ;;  %7318 = vst [vmem:[#allocation27_spill] sm:$0xff] %v6182_v26 }
 0xb3a   : > { %v6177_v17 = vsel %vm2742_vm4, %v2932_v11, %v6169_v7  ;;  %v6180_v33 = vsel %vm2742_vm4, %v2930_v12, %v2932_v11 }
 0xb3b   : > { %7317 = vst [vmem:[#allocation72_spill] sm:$0xff] %v6177_v17  ;;  %v2774_v17 = vadd.f32 %v6076_v14, %v2668_v38 }
 0xb3d   : > { %v2879_v7 = vadd.f32 %v2847_v45, %v2774_v17  ;;  %v2294_v17 = vadd.f32 %v2282_v3, %v2225_v55  ;;  %v2538_v3 = vsel %vm702_vm1, %v5932_v13, %v5955_v63 }
 0xb40   : > { %v6187_v42 = vpop.permute.xlu2 %2945 }
 0xb48   : > { %v2952_v12 = vpop.permute.xlu2 %2951 }
 0xb49   : > { %v6192_v11 = vadd.f32 %v2952_v12, %v2879_v7  ;;  %v2295_v7 = vadd.f32 %v2283_v50, %v2226_v4  ;;  %v2539_v50 = vsel %vm702_vm1, %v5955_v63, %v5957_v25 }
 0xb4b   : > { %7319 = vst [vmem:[#allocation26_spill] sm:$0xff] %v6192_v11  ;;  %v2433_v11 = vsel %vm702_vm1, %v5871_v28, %v5876_v20  ;;  %v2643_v28 = vsel %vm702_vm1, %v6005_v54, %v6009_v19 }
 0xb50   : > { %v2936_v2 = vpop.permute.xlu0 %2935 }
 0xb51   : > { %v2938_v15 = vpop.permute.xlu1 %2937 }
 0xb52   : > { %v6204_v45 = vsel %vm2742_vm4, %v2938_v15, %v6182_v26  ;;  %v6207_v38 = vsel %vm2742_vm4, %v2936_v2, %v2938_v15  ;;  %v2351_v26 = vadd.f32 %v2339_v18, %v2294_v17 }
 0xb53   : > { %7320 = vst [vmem:[#allocation25_spill] sm:$0xff] %v6204_v45  ;;  %v2352_v45 = vadd.f32 %v2340_v46, %v2295_v7 }
 0xb54   : > { %v2456_v55 = vadd.f32 %v2433_v11, %v2351_v26  ;;  %v2750_v26 = vsel %vm2742_vm4, %v6069_v16, %v6076_v14 }
 0xb55   : > { %v2457_v36 = vadd.f32 %v2434_v35, %v2352_v45 }
 0xb56   : > { %v2561_v63 = vadd.f32 %v2538_v3, %v2456_v55  ;;  %v3003_v55 = vpop.permute.xlu2 %3002 }
 0xb57   : > { %v2562_v25 = vadd.f32 %v2539_v50, %v2457_v36 }
 0xb58   : > { %v2942_v2 = vpop.permute.xlu0 %2941  ;;  %v2666_v15 = vadd.f32 %v2643_v28, %v2561_v63  ;;  %v3016_v28 = vmul.f32 %v3003_v55, %v5811_v30 }
 0xb59   : > { %v2944_v4 = vpop.permute.xlu1 %2943  ;;  %v2667_v11 = vadd.f32 %v2644_v52, %v2562_v25  ;;  %v3018_v52 = vmul.f32 %v3003_v55, %v5815_v62 }
 0xb5a   : > { %v6233_v20 = vsel %vm2742_vm4, %v2944_v4, %v6187_v42  ;;  %v6236_v13 = vsel %vm2742_vm4, %v2942_v2, %v2944_v4  ;;  %v2772_v19 = vadd.f32 %v2749_v10, %v2666_v15  ;;  %v3017_v4 = vmul.f32 %v3003_v55, %v5813_v57  ;;  %v4125_v15 = vld [vmem:[%s7038_s1 + $0x3e8] sm:$0xff] }
 0xb5b   : > { %v2773_v54 = vadd.f32 %v2750_v26, %v2667_v11  ;;  %v4126_v11 = vld [vmem:[%s7038_s1 + $0x3f0] sm:$0xff]  ;;  %v2218_v55 = vmul.f32 %v5815_v62, %v5787_v41 }
 0xb5c   : > { %v2877_v7 = vadd.f32 %v6134_v56, %v2772_v19  ;;  %v4130_v19 = vld [vmem:[%s7038_s1 + $0x410] sm:$0xff] }
 0xb5d   : > { %v2878_v17 = vadd.f32 %v6137_v24, %v2773_v54  ;;  %v4124_v54 = vld [vmem:[%s7038_s1 + $0x3e0] sm:$0xff] }
 0xb60   : > { %v2948_v45 = vpop.permute.xlu0 %2947 }
 0xb61   : > { %v2950_v18 = vpop.permute.xlu1 %2949 }
 0xb62   : > { %v2960_v46 = vsel %vm2742_vm4, %v2950_v18, %v2952_v12  ;;  %v2959_v35 = vsel %vm2742_vm4, %v2948_v45, %v2950_v18  ;;  %v4131_v45 = vld [vmem:[%s7038_s1 + $0x418] sm:$0xff]  ;;  %v4129_v18 = vld [vmem:[%s7038_s1 + $0x408] sm:$0xff] }
 0xb63   : > { %v6248_v3 = vadd.f32 %v2960_v46, %v2878_v17  ;;  %v6250_v14 = vadd.f32 %v2959_v35, %v2877_v7  ;;  %v4127_v7 = vld [vmem:[%s7038_s1 + $0x3f8] sm:$0xff]  ;;  %v4128_v17 = vld [vmem:[%s7038_s1 + $0x400] sm:$0xff]  ;;  %v2273_v46 = vmul.f32 %v5878_v61, %v5794_v58  ;;  %v2274_v35 = vmul.f32 %v5880_v32, %v5794_v58 }
 0xb68   : > { %v2993_v50 = vpop.permute.xlu0 %2992 }
 0xb69   : > { %v3010_v44 = vmul.f32 %v2993_v50, %v5811_v30  ;;  %v3011_v16 = vmul.f32 %v2993_v50, %v5813_v57  ;;  %v3012_v2 = vmul.f32 %v2993_v50, %v5815_v62  ;;  %v2998_v56 = vpop.permute.xlu1 %2997  ;;  %v2222_v50 = vmul.f32 %v5811_v30, %v5792_v6 }
 0xb6a   : > { %v3014_v24 = vmul.f32 %v2998_v56, %v5813_v57  ;;  %v3015_v12 = vmul.f32 %v2998_v56, %v5815_v62  ;;  %v3013_v36 = vmul.f32 %v2998_v56, %v5811_v30  ;;  %v2216_v56 = vmul.f32 %v5811_v30, %v5787_v41 }
 0xb6b   : > { %3038 = vrot.lane.b32.xlu0 %v3012_v2, %s4182_s22  ;;  %3036 = vrot.lane.b32.xlu2 %v3011_v16, %s4182_s22  ;;  %v2223_v16 = vmul.f32 %v5813_v57, %v5792_v6  ;;  %v2220_v2 = vmul.f32 %v5813_v57, %v5785_v9 }
 0xb6c   : > { %3034 = vrot.lane.b32.xlu1 %v3010_v44, %s4182_s22  ;;  %v2275_v44 = vmul.f32 %v5882_v5, %v5794_v58  ;;  %v2221_v58 = vmul.f32 %v5815_v62, %v5785_v9 }
 0xb70   : > { %v3008_v63 = vpop.permute.xlu0 %3007 }
 0xb71   : > { %v3020_v25 = vmul.f32 %v3008_v63, %v5813_v57  ;;  %v3021_v26 = vmul.f32 %v3008_v63, %v5815_v62  ;;  %v3019_v10 = vmul.f32 %v3008_v63, %v5811_v30  ;;  %v2287_v63 = vadd.f32 %v2275_v44, %v2218_v55 }
 0xb72   : > { %v2427_v44 = vsel %vm702_vm1, %v5857_v8, %v5855_v39  ;;  %v2532_v55 = vsel %vm702_vm1, %v5922_v51, %v5928_v27  ;;  %v2430_v51 = vsel %vm702_vm1, %v5861_v1, %v5865_v53 }
 0xb73   : > { %3044 = vrot.lane.b32.xlu0 %v3015_v12, %s4182_s22  ;;  %3042 = vrot.lane.b32.xlu2 %v3014_v24, %s4182_s22  ;;  %v2217_v24 = vmul.f32 %v5813_v57, %v5787_v41  ;;  %v2224_v12 = vmul.f32 %v5815_v62, %v5792_v6  ;;  %v2285_v57 = vadd.f32 %v2273_v46, %v2216_v56 }
 0xb74   : > { %3040 = vrot.lane.b32.xlu1 %v3013_v36, %s4182_s22  ;;  %v2219_v36 = vmul.f32 %v5811_v30, %v5785_v9  ;;  %v2278_v6 = vmul.f32 %v5882_v5, %v5798_v49  ;;  %v2279_v30 = vmul.f32 %v5878_v61, %v5800_v60  ;;  %v2280_v9 = vmul.f32 %v5880_v32, %v5800_v60 }
 0xb75   : > { %v2330_v41 = vmul.f32 %v5935_v0, %v5806_v43  ;;  %v2331_v62 = vmul.f32 %v5937_v23, %v5806_v43  ;;  %v2336_v46 = vmul.f32 %v5935_v0, %v5809_v21 }
 0xb7b   : > { %3050 = vrot.lane.b32.xlu0 %v3018_v52, %s4182_s22  ;;  %3048 = vrot.lane.b32.xlu2 %v3017_v4, %s4182_s22  ;;  %v2276_v4 = vmul.f32 %v5878_v61, %v5798_v49  ;;  %v2277_v52 = vmul.f32 %v5880_v32, %v5798_v49  ;;  %v2332_v49 = vmul.f32 %v5943_v31, %v5806_v43 }
 0xb7c   : > { %3046 = vrot.lane.b32.xlu1 %v3016_v28, %s4182_s22  ;;  %v2286_v28 = vadd.f32 %v2274_v35, %v2217_v24  ;;  %v2291_v43 = vadd.f32 %v2279_v30, %v2222_v50  ;;  %v2335_v35 = vmul.f32 %v5943_v31, %v5804_v37  ;;  %v2533_v50 = vsel %vm702_vm1, %v5928_v27, %v5930_v29 }
 0xb83   : > { %3056 = vrot.lane.b32.xlu0 %v3021_v26, %s4182_s22  ;;  %3054 = vrot.lane.b32.xlu2 %v3020_v25, %s4182_s22  ;;  %v2289_v25 = vadd.f32 %v2277_v52, %v2220_v2  ;;  %v2281_v26 = vmul.f32 %v5882_v5, %v5800_v60  ;;  %v2428_v60 = vsel %vm702_vm1, %v5855_v39, %v5859_v59 }
 0xb84   : > { %3052 = vrot.lane.b32.xlu1 %v3019_v10, %s4182_s22  ;;  %v2333_v10 = vmul.f32 %v5935_v0, %v5804_v37  ;;  %v2348_v52 = vadd.f32 %v2336_v46, %v2291_v43  ;;  %v7331_v46 = vld [vmem:[#allocation5_spill] sm:$0xff] }
 0xb85   : > { %v2293_v2 = vadd.f32 %v2281_v26, %v2224_v12  ;;  %v2638_v12 = vsel %vm702_vm1, %v5991_v48, %v5993_v34 }
 0xb8b   : > { %3108 = vperm.xlu0 %4166, %v4126_v11   ;;  %3103 = vperm.xlu2 %4168, %v4125_v15   ;;  %v2288_v11 = vadd.f32 %v2276_v4, %v2219_v36  ;;  %v2290_v15 = vadd.f32 %v2278_v6, %v2221_v58 }
 0xb8c   : > { %3098 = vperm.xlu1 %4167, %v4124_v54   ;;  %v2337_v54 = vmul.f32 %v5937_v23, %v5809_v21 }
 0xb8d   : > { %v2345_v24 = vadd.f32 %v2333_v10, %v2288_v11  ;;  %v2347_v4 = vadd.f32 %v2335_v35, %v2290_v15  ;;  %v7325_v11 = vld [vmem:[#allocation6_spill] sm:$0xff]  ;;  %v7326_v15 = vld [vmem:[#allocation3_spill] sm:$0xff] }
 0xb93   : > { %3213 = vperm.xlu0 %4166, %v4130_v19   ;;  %3218 = vperm.xlu2 %4168, %v4131_v45   ;;  %v2338_v19 = vmul.f32 %v5943_v31, %v5809_v21  ;;  %v2342_v45 = vadd.f32 %v2330_v41, %v2285_v57  ;;  %v2637_v57 = vsel %vm702_vm1, %v5989_v22, %v5991_v48  ;;  %v7322_v41 = vld [vmem:[#allocation18_spill] sm:$0xff] }
 0xb94   : > { %3113 = vperm.xlu1 %4167, %v4127_v7   ;;  %v2343_v7 = vadd.f32 %v2331_v62, %v2286_v28  ;;  %v2452_v22 = vadd.f32 %v5865_v53, %v2347_v4 }
 0xb95   : > { %v2350_v58 = vadd.f32 %v2338_v19, %v2293_v2  ;;  %v2447_v8 = vadd.f32 %v2427_v44, %v2342_v45  ;;  %v7327_v19 = vld [vmem:[#allocation46_spill] sm:$0xff] }
 0xb96   : > { %v2448_v36 = vadd.f32 %v2428_v60, %v2343_v7  ;;  %v7328_v7 = vld [vmem:[#allocation7_spill] sm:$0xff] }
 0xb97   : > { %v2552_v27 = vadd.f32 %v2532_v55, %v2447_v8  ;;  %v2432_v35 = vsel %vm702_vm1, %v7328_v7, %v7331_v46  ;;  %v7334_v55 = vld [vmem:[#allocation71_spill] sm:$0xff] }
 0xb98   : > { %v2553_v28 = vadd.f32 %v2533_v50, %v2448_v36 }
 0xb99   : > { %v2657_v48 = vadd.f32 %v2637_v57, %v2552_v27 }
 0xb9b   : > { %3203 = vperm.xlu2 %4168, %v4128_v17   ;;  %v2292_v17 = vadd.f32 %v2280_v9, %v2223_v16  ;;  %v2334_v16 = vmul.f32 %v5937_v23, %v5804_v37  ;;  %v2429_v37 = vsel %vm702_vm1, %v5863_v47, %v5861_v1  ;;  %v7323_v1 = vld [vmem:[#allocation21_spill] sm:$0xff] }
 0xb9c   : > { %3208 = vperm.xlu1 %4167, %v4129_v18   ;;  %v2344_v18 = vadd.f32 %v2332_v49, %v2287_v63  ;;  %v2450_v30 = vadd.f32 %v2429_v37, %v2345_v24  ;;  %v2658_v63 = vadd.f32 %v2638_v12, %v2553_v28  ;;  %v7324_v49 = vld [vmem:[#allocation15_spill] sm:$0xff]  ;;  %v7333_v24 = vld [vmem:[#allocation17_spill] sm:$0xff]  ;;  %v7335_v12 = vld [vmem:[#allocation14_spill] sm:$0xff] }
 0xb9d   : > { %v6364_v21 = vadd.f32 %v2337_v54, %v2292_v17  ;;  %v2346_v9 = vadd.f32 %v2334_v16, %v2289_v25  ;;  %v2534_v54 = vsel %vm702_vm1, %v7326_v15, %v7325_v11  ;;  %v2848_v45 = vsel %vm2742_vm4, %v7327_v19, %v7324_v49  ;;  %v7329_v17 = vld [vmem:[#allocation4_spill] sm:$0xff]  ;;  %v7343_v19 = vld [vmem:[#allocation9_spill] sm:$0xff] }
 0xb9e   : > { %v2449_v56 = vadd.f32 %v5859_v59, %v2344_v18  ;;  %v2431_v53 = vsel %vm702_vm1, %v7329_v17, %v7328_v7  ;;  %v7330_v18 = vld [vmem:[#allocation8_spill] sm:$0xff]  ;;  %v2555_v16 = vadd.f32 %v2534_v54, %v2450_v30  ;;  %v2639_v4 = vsel %vm702_vm1, %v7335_v12, %v7333_v24  ;;  %v7350_v12 = vld [vmem:[#allocation25_spill] sm:$0xff] }
 0xb9f   : > { %v2451_v10 = vadd.f32 %v2430_v51, %v2346_v9  ;;  %v2557_v44 = vadd.f32 %v7330_v18, %v2452_v22  ;;  %v7336_v28 = vld [vmem:[#allocation72_spill] sm:$0xff]  ;;  %v7339_v22 = vld [vmem:[#allocation34_spill] sm:$0xff]  ;;  %v2455_v54 = vadd.f32 %v7331_v46, %v2350_v58 }
 0xba0   : > { %v2554_v59 = vadd.f32 %v5930_v29, %v2449_v56  ;;  %v7321_v29 = vld [vmem:[#allocation22_spill] sm:$0xff]  ;;  %v7332_v56 = vld [vmem:[#allocation11_spill] sm:$0xff] }
 0xba1   : > { %v2744_v6 = vsel %vm2742_vm4, %v7321_v29, %v6053_v40  ;;  %v2743_v62 = vsel %vm2742_vm4, %v7322_v41, %v7321_v29  ;;  %v2640_v50 = vsel %vm702_vm1, %v7333_v24, %v7332_v56  ;;  %v7338_v29 = vld [vmem:[#allocation12_spill] sm:$0xff] }
 0xba2   : > { %v2659_v47 = vadd.f32 %v5993_v34, %v2554_v59  ;;  %v2849_v34 = vsel %vm2742_vm4, %v7324_v49, %v7323_v1  ;;  %v2764_v25 = vadd.f32 %v2744_v6, %v2658_v63  ;;  %v2763_v60 = vadd.f32 %v2743_v62, %v2657_v48  ;;  %v7347_v24 = vld [vmem:[#allocation24_spill] sm:$0xff] }
 0xba3   : > { %v2662_v59 = vadd.f32 %v7332_v56, %v2557_v44  ;;  %v2745_v48 = vsel %vm2742_vm4, %v7339_v22, %v7338_v29  ;;  %v2660_v49 = vadd.f32 %v2639_v4, %v2555_v16  ;;  %v7346_v56 = vld [vmem:[#allocation23_spill] sm:$0xff]  ;;  %v7351_v4 = vld [vmem:[#allocation49_spill] sm:$0xff] }
 0xba4   : > { %v2765_v26 = vadd.f32 %v6053_v40, %v2659_v47  ;;  %v2535_v40 = vsel %vm702_vm1, %v7325_v11, %v7330_v18  ;;  %v2869_v2 = vadd.f32 %v2849_v34, %v2764_v25  ;;  %v2868_v36 = vadd.f32 %v2848_v45, %v2763_v60  ;;  %v7337_v47 = vld [vmem:[#allocation35_spill] sm:$0xff]  ;;  %v7342_v25 = vld [vmem:[#allocation13_spill] sm:$0xff] }
 0xba5   : > { %v2556_v37 = vadd.f32 %v2535_v40, %v2451_v10  ;;  %v2746_v6 = vsel %vm2742_vm4, %v7338_v29, %v7337_v47  ;;  %v2768_v34 = vadd.f32 %v7337_v47, %v2662_v59  ;;  %v7340_v10 = vld [vmem:[#allocation60_spill] sm:$0xff]  ;;  %v7341_v11 = vld [vmem:[#allocation59_spill] sm:$0xff]  ;;  %v2536_v45 = vsel %vm702_vm1, %v7343_v19, %v7342_v25  ;;  %v7345_v40 = vld [vmem:[#allocation10_spill] sm:$0xff] }
 0xba6   : > { %v2870_v43 = vadd.f32 %v7323_v1, %v2765_v26  ;;  %v2974_v57 = vadd.f32 %v7336_v28, %v2869_v2  ;;  %v2973_v30 = vadd.f32 %v6180_v33, %v2868_v36  ;;  %v2851_v33 = vsel %vm2742_vm4, %v7341_v11, %v7340_v10  ;;  %v7352_v28 = vld [vmem:[#allocation19_spill] sm:$0xff] }
 0xba7   : > { %v2661_v62 = vadd.f32 %v2640_v50, %v2556_v37  ;;  %v2453_v18 = vadd.f32 %v2431_v53, %v2348_v52  ;;  %v2537_v60 = vsel %vm702_vm1, %v7342_v25, %v7345_v40  ;;  %v2873_v44 = vadd.f32 %v7340_v10, %v2768_v34  ;;  %v7349_v37 = vld [vmem:[#allocation16_spill] sm:$0xff]  ;;  %v7354_v34 = vld [vmem:[#allocation58_spill] sm:$0xff] }
 0xba8   : > { %v2975_v8 = vadd.f32 %v7334_v55, %v2870_v43  ;;  %v2766_v43 = vadd.f32 %v2745_v48, %v2660_v49  ;;  %v2454_v2 = vadd.f32 %v2432_v35, %v6364_v21  ;;  %v2560_v58 = vadd.f32 %v7345_v40, %v2455_v54  ;;  %v7348_v55 = vld [vmem:[#allocation27_spill] sm:$0xff]  ;;  %v7356_v54 = vld [vmem:[#allocation20_spill] sm:$0xff] }
 0xba9   : > { %v2767_v7 = vadd.f32 %v2746_v6, %v2661_v62  ;;  %v2558_v16 = vadd.f32 %v2536_v45, %v2453_v18  ;;  %v2642_v50 = vsel %vm702_vm1, %v7347_v24, %v7346_v56  ;;  %v2978_v52 = vadd.f32 %v7348_v55, %v2873_v44 }
 0xbaa   : > { %v2559_v53 = vadd.f32 %v2537_v60, %v2454_v2  ;;  %v2641_v59 = vsel %vm702_vm1, %v7349_v37, %v7347_v24  ;;  %v7357_v24 = vld [vmem:[#allocation26_spill] sm:$0xff] }
 0xbab   : > { %v2872_v46 = vadd.f32 %v2851_v33, %v2767_v7 }
 0xbad   : > { %v2977_v21 = vadd.f32 %v7350_v12, %v2872_v46 }
 0xbc5   : > { %v3037_v39 = vpop.permute.xlu2 %3036 }
 0xbcd   : > { %v3043_v51 = vpop.permute.xlu2 %3042 }
 0xbd5   : > { %v3049_v62 = vpop.permute.xlu2 %3048 }
 0xbdd   : > { %v3039_v27 = vpop.permute.xlu0 %3038 }
 0xbde   : > { %v3035_v9 = vpop.permute.xlu1 %3034  ;;  %v3060_v63 = vsel %vm3058_vm5, %v3037_v39, %v3039_v27  ;;  %v6425_v41 = vadd.f32 %v3039_v27, %v2975_v8  ;;  %v2665_v8 = vadd.f32 %v7346_v56, %v2560_v58 }
 0xbdf   : > { %v3059_v26 = vsel %vm3058_vm5, %v3035_v9, %v3037_v39  ;;  %v6431_v1 = vadd.f32 %v3060_v63, %v2974_v57  ;;  %v7344_v39 = vld [vmem:[#allocation50_spill] sm:$0xff]  ;;  %v2748_v57 = vsel %vm2742_vm4, %v7352_v28, %v7351_v4  ;;  %v7353_v9 = vld [vmem:[#allocation36_spill] sm:$0xff] }
 0xbe0   : > { %v6437_v15 = vadd.f32 %v3059_v26, %v2973_v30  ;;  %v2850_v17 = vsel %vm2742_vm4, %v7344_v39, %v7341_v11  ;;  %v2664_v30 = vadd.f32 %v2642_v50, %v2559_v53  ;;  %v2747_v63 = vsel %vm2742_vm4, %v7353_v9, %v7352_v28 }
 0xbe1   : > { %v2871_v36 = vadd.f32 %v2850_v17, %v2766_v43  ;;  %v2663_v26 = vadd.f32 %v2641_v59, %v2558_v16  ;;  %v2771_v49 = vadd.f32 %v7351_v4, %v2665_v8  ;;  %v3055_v16 = vpop.permute.xlu2 %3054 }
 0xbe2   : > { %v2770_v33 = vadd.f32 %v2748_v57, %v2664_v30 }
 0xbe3   : > { %v2976_v27 = vadd.f32 %v6207_v38, %v2871_v36  ;;  %v7355_v38 = vld [vmem:[#allocation70_spill] sm:$0xff]  ;;  %v2769_v19 = vadd.f32 %v2747_v63, %v2663_v26  ;;  %v2876_v45 = vadd.f32 %v7354_v34, %v2771_v49  ;;  %v3303_v26 = vld [vmem:[%s7039_s2 + $0x70] sm:$0xff] }
 0xbe4   : > { %v2853_v10 = vsel %vm2742_vm4, %v7355_v38, %v7354_v34  ;;  %v2852_v25 = vsel %vm2742_vm4, %v7356_v54, %v7355_v38 }
 0xbe5   : > { %v3045_v35 = vpop.permute.xlu0 %3044  ;;  %v2874_v7 = vadd.f32 %v2852_v25, %v2769_v19  ;;  %v2981_v39 = vadd.f32 %v6187_v42, %v2876_v45 }
 0xbe6   : > { %v3041_v47 = vpop.permute.xlu1 %3040  ;;  %v3062_v29 = vsel %vm3058_vm5, %v3043_v51, %v3045_v35  ;;  %v6466_v6 = vadd.f32 %v3045_v35, %v2978_v52 }
 0xbe7   : > { %v3061_v22 = vsel %vm3058_vm5, %v3041_v47, %v3043_v51  ;;  %v6472_v48 = vadd.f32 %v3062_v29, %v2977_v21  ;;  %v2875_v51 = vadd.f32 %v2853_v10, %v2770_v33  ;;  %v2979_v40 = vadd.f32 %v6236_v13, %v2874_v7  ;;  %v3304_v47 = vld [vmem:[%s7039_s2 + $0x78] sm:$0xff] }
 0xbe8   : > { %v6478_v11 = vadd.f32 %v3061_v22, %v2976_v27 }
 0xbe9   : > { %v2980_v17 = vadd.f32 %v6233_v20, %v2875_v51  ;;  %v3104_v52 = vpop.permute.xlu2 %3103 }
 0xbea   : > { %v3121_v28 = vmul.f32 %v3104_v52, %v5882_v5  ;;  %v3120_v49 = vmul.f32 %v3104_v52, %v5880_v32  ;;  %v3119_v54 = vmul.f32 %v3104_v52, %v5878_v61 }
 0xbed   : > { %v3051_v18 = vpop.permute.xlu0 %3050 }
 0xbee   : > { %v3064_v60 = vsel %vm3058_vm5, %v3049_v62, %v3051_v18  ;;  %v6488_v43 = vadd.f32 %v3051_v18, %v2981_v39  ;;  %v3047_v44 = vpop.permute.xlu1 %3046 }
 0xbef   : > { %v6490_v2 = vadd.f32 %v3064_v60, %v2980_v17  ;;  %v3063_v58 = vsel %vm3058_vm5, %v3047_v44, %v3049_v62 }
 0xbf0   : > { %v6493_v46 = vadd.f32 %v3063_v58, %v2979_v40 }
 0xbf1   : > { %v3219_v12 = vpop.permute.xlu2 %3218 }
 0xbf2   : > { %v3231_v63 = vmul.f32 %v3219_v12, %v5937_v23  ;;  %v3230_v38 = vmul.f32 %v3219_v12, %v5935_v0 }
 0xbf5   : > { %v3057_v56 = vpop.permute.xlu0 %3056 }
 0xbf6   : > { %v3066_v42 = vsel %vm3058_vm5, %v3055_v16, %v3057_v56  ;;  %v6497_v20 = vadd.f32 %v3057_v56, %v7357_v24  ;;  %v3053_v50 = vpop.permute.xlu1 %3052 }
 0xbf7   : > { %v6500_v13 = vadd.f32 %v3066_v42, %v6248_v3  ;;  %v3065_v36 = vsel %vm3058_vm5, %v3053_v50, %v3055_v16 }
 0xbf8   : > { %v6504_v55 = vadd.f32 %v3065_v36, %v6250_v14  ;;  %v3232_v14 = vmul.f32 %v3219_v12, %v5943_v31 }
 0xbfd   : > { %v3109_v59 = vpop.permute.xlu0 %3108 }
 0xbfe   : > { %v3099_v53 = vpop.permute.xlu1 %3098  ;;  %v3124_v3 = vmul.f32 %v3109_v59, %v5882_v5  ;;  %v3123_v29 = vmul.f32 %v3109_v59, %v5880_v32  ;;  %v3122_v34 = vmul.f32 %v3109_v59, %v5878_v61 }
 0xbff   : > { %v3116_v8 = vmul.f32 %v3099_v53, %v5878_v61  ;;  %v3117_v37 = vmul.f32 %v3099_v53, %v5880_v32  ;;  %v3118_v62 = vmul.f32 %v3099_v53, %v5882_v5 }
 0xc01   : > { %3142 = vrot.lane.b32.xlu1 %v3117_v37, %s4182_s22  ;;  %3140 = vrot.lane.b32.xlu0 %v3116_v8, %s4182_s22 }
 0xc05   : > { %v3214_v4 = vpop.permute.xlu0 %3213 }
 0xc06   : > { %v3114_v21 = vpop.permute.xlu1 %3113  ;;  %v3229_v27 = vmul.f32 %v3214_v4, %v5943_v31  ;;  %v3228_v10 = vmul.f32 %v3214_v4, %v5937_v23  ;;  %v3227_v19 = vmul.f32 %v3214_v4, %v5935_v0 }
 0xc07   : > { %v3127_v35 = vmul.f32 %v3114_v21, %v5882_v5  ;;  %v3126_v57 = vmul.f32 %v3114_v21, %v5880_v32  ;;  %v3125_v30 = vmul.f32 %v3114_v21, %v5878_v61  ;;  %v3204_v5 = vpop.permute.xlu2 %3203  ;;  %v3302_v32 = vld [vmem:[%s7039_s2 + $0x68] sm:$0xff] }
 0xc08   : > { %v3223_v33 = vmul.f32 %v3204_v5, %v5943_v31  ;;  %v3222_v45 = vmul.f32 %v3204_v5, %v5937_v23  ;;  %v3221_v61 = vmul.f32 %v3204_v5, %v5935_v0 }
 0xc09   : > { %3156 = vrot.lane.b32.xlu0 %v3124_v3, %s4182_s22  ;;  %3162 = vrot.lane.b32.xlu2 %v3127_v35, %s4182_s22 }
 0xc0a   : > { %3267 = vrot.lane.b32.xlu1 %v3232_v14, %s4182_s22 }
 0xc0e   : > { %v3209_v9 = vpop.permute.xlu1 %3208 }
 0xc0f   : > { %v3226_v22 = vmul.f32 %v3209_v9, %v5943_v31  ;;  %v3225_v25 = vmul.f32 %v3209_v9, %v5937_v23  ;;  %v3301_v31 = vld [vmem:[%s7039_s2 + $0x60] sm:$0xff]  ;;  %v3224_v51 = vmul.f32 %v3209_v9, %v5935_v0 }
 0xc11   : > { %3160 = vrot.lane.b32.xlu2 %v3126_v57, %s4182_s22  ;;  %3150 = vrot.lane.b32.xlu0 %v3121_v28, %s4182_s22 }
 0xc12   : > { %3261 = vrot.lane.b32.xlu1 %v3229_v27, %s4182_s22 }
 0xc19   : > { %3322 = vperm.xlu2 %4168, %v3304_v47   ;;  %3154 = vrot.lane.b32.xlu0 %v3123_v29, %s4182_s22 }
 0xc1a   : > { %3158 = vrot.lane.b32.xlu1 %v3125_v30, %s4182_s22 }
 0xc21   : > { %3144 = vrot.lane.b32.xlu0 %v3118_v62, %s4182_s22  ;;  %3265 = vrot.lane.b32.xlu2 %v3231_v63, %s4182_s22 }
 0xc22   : > { %3255 = vrot.lane.b32.xlu1 %v3226_v22, %s4182_s22 }
 0xc29   : > { %3148 = vrot.lane.b32.xlu0 %v3120_v49, %s4182_s22  ;;  %3317 = vperm.xlu2 %4168, %v3303_v26  }
 0xc2a   : > { %3152 = vrot.lane.b32.xlu1 %v3122_v34, %s4182_s22 }
 0xc31   : > { %3259 = vrot.lane.b32.xlu2 %v3228_v10, %s4182_s22  ;;  %3263 = vrot.lane.b32.xlu0 %v3230_v38, %s4182_s22 }
 0xc32   : > { %3249 = vrot.lane.b32.xlu1 %v3223_v33, %s4182_s22 }
 0xc39   : > { %3312 = vperm.xlu2 %4168, %v3302_v32   ;;  %3146 = vrot.lane.b32.xlu0 %v3119_v54, %s4182_s22 }
 0xc3a   : > { %3253 = vrot.lane.b32.xlu1 %v3225_v25, %s4182_s22 }
 0xc41   : > { %3257 = vrot.lane.b32.xlu2 %v3227_v19, %s4182_s22  ;;  %3307 = vperm.xlu0 %4166, %v3301_v31  }
 0xc42   : > { %3247 = vrot.lane.b32.xlu1 %v3222_v45, %s4182_s22 }
 0xc49   : > { %3251 = vrot.lane.b32.xlu2 %v3224_v51, %s4182_s22  ;;  %3245 = vrot.lane.b32.xlu0 %v3221_v61, %s4182_s22 }
 0xc63   : > { %v3163_v7 = vpop.permute.xlu2 %3162 }
 0xc64   : > { %v3195_v44 = vadd.f32 %v3163_v7, %v6497_v20 }
 0xc6b   : > { %v3161_v39 = vpop.permute.xlu2 %3160 }
 0xc6c   : > { %v3171_v0 = vsel %vm3058_vm5, %v3161_v39, %v3163_v7 }
 0xc6d   : > { %v3194_v16 = vadd.f32 %v3171_v0, %v6500_v13 }
 0xc73   : > { %v3141_v17 = vpop.permute.xlu0 %3140  ;;  %v6566_v18 = vpop.permute.xlu1 %3142 }
 0xc74   : > { %v3164_v23 = vsel %vm3058_vm5, %v3141_v17, %v6566_v18  ;;  %v6570_v40 = vpop.permute.xlu2 %3322 }
 0xc75   : > { %v6573_v60 = vadd.f32 %v3164_v23, %v6437_v15 }
 0xc7b   : > { %v3157_v58 = vpop.permute.xlu0 %3156 }
 0xc7c   : > { %v3268_v56 = vpop.permute.xlu1 %3267  ;;  %v3266_v42 = vpop.permute.xlu2 %3265  ;;  %v3192_v20 = vadd.f32 %v3157_v58, %v6488_v43 }
 0xc7d   : > { %v3300_v24 = vadd.f32 %v3268_v56, %v3195_v44  ;;  %v3276_v50 = vsel %vm3058_vm5, %v3266_v42, %v3268_v56 }
 0xc7e   : > { %v3299_v36 = vadd.f32 %v3276_v50, %v3194_v16 }
 0xc7f   : > { %v3336_v52 = vadd.f32 %v6570_v40, %v3300_v24 }
 0xc80   : > { %v3335_v15 = vadd.f32 %v6570_v40, %v3299_v36 }
 0xc81   : > { %v6581_v53 = vmax.f32 %v3336_v52, 0.0 }
 0xc82   : > { %v6583_v8 = vmax.f32 %v3335_v15, 0.0 }
 0xc83   : > { %3360 = vst.msk [vmem:[%s4380_s23 + $0x178] sm:$0xff] %vm447_vm0, %v6581_v53  ;;  %3451 = vrot.lane.b32.xlu0 %v6581_v53, %s4181_s16  ;;  %3395 = vrot.lane.b32.xlu1 %v6581_v53, %s4178_s24  ;;  %v3151_v13 = vpop.permute.xlu0 %3150 }
 0xc84   : > { %3359 = vst [vmem:[%s4380_s23 + $0x170] sm:$0xff] %v6583_v8  ;;  %v3262_v37 = vpop.permute.xlu1 %3261  ;;  %v3318_v59 = vpop.permute.xlu2 %3317  ;;  %v3189_v29 = vadd.f32 %v3151_v13, %v6466_v6 }
 0xc85   : > { %v3297_v12 = vadd.f32 %v3262_v37, %v3192_v20 }
 0xc87   : > { %v3333_v21 = vadd.f32 %v3318_v59, %v3297_v12 }
 0xc89   : > { %v6595_v3 = vmax.f32 %v3333_v21, 0.0 }
 0xc8b   : > { %3357 = vst.msk [vmem:[%s4380_s23 + $0x160] sm:$0xff] %vm447_vm0, %v6595_v3  ;;  %3445 = vrot.lane.b32.xlu0 %v6595_v3, %s4181_s16  ;;  %3389 = vrot.lane.b32.xlu2 %v6595_v3, %s4178_s24  ;;  %v3155_v43 = vpop.permute.xlu0 %3154 }
 0xc8c   : > { %v3169_v35 = vsel %vm3058_vm5, %v3155_v43, %v3157_v58  ;;  %v3159_v14 = vpop.permute.xlu1 %3158  ;;  %v3260_v4 = vpop.permute.xlu2 %3259 }
 0xc8d   : > { %v3191_v28 = vadd.f32 %v3169_v35, %v6490_v2  ;;  %v3274_v57 = vsel %vm3058_vm5, %v3260_v4, %v3262_v37  ;;  %v3170_v33 = vsel %vm3058_vm5, %v3159_v14, %v3161_v39 }
 0xc8e   : > { %v3193_v25 = vadd.f32 %v3170_v33, %v6504_v55 }
 0xc8f   : > { %v3296_v27 = vadd.f32 %v3274_v57, %v3191_v28 }
 0xc91   : > { %v3332_v47 = vadd.f32 %v3318_v59, %v3296_v27 }
 0xc93   : > { %v6608_v30 = vmax.f32 %v3332_v47, 0.0  ;;  %3393 = vrot.lane.b32.xlu2 %v6583_v8, %s4178_s24  ;;  %v3145_v9 = vpop.permute.xlu0 %3144 }
 0xc94   : > { %v3256_v63 = vpop.permute.xlu1 %3255  ;;  %v3313_v62 = vpop.permute.xlu2 %3312  ;;  %v3186_v24 = vadd.f32 %v3145_v9, %v6425_v41  ;;  %v3165_v50 = vsel %vm3058_vm5, %v6566_v18, %v3145_v9 }
 0xc95   : > { %3356 = vst [vmem:[%s4380_s23 + $0x158] sm:$0xff] %v6608_v30  ;;  %v3294_v22 = vadd.f32 %v3256_v63, %v3189_v29  ;;  %3387 = vrot.lane.b32.xlu0 %v6608_v30, %s4178_s24 }
 0xc97   : > { %v3330_v2 = vadd.f32 %v3313_v62, %v3294_v22 }
 0xc99   : > { %v6616_v26 = vmax.f32 %v3330_v2, 0.0 }
 0xc9b   : > { %3354 = vst.msk [vmem:[%s4380_s23 + $0x148] sm:$0xff] %vm447_vm0, %v6616_v26  ;;  %3383 = vrot.lane.b32.xlu1 %v6616_v26, %s4178_s24  ;;  %v3149_v6 = vpop.permute.xlu0 %3148 }
 0xc9c   : > { %v3153_v49 = vpop.permute.xlu1 %3152  ;;  %v3258_v34 = vpop.permute.xlu2 %3257  ;;  %v3167_v7 = vsel %vm3058_vm5, %v3149_v6, %v3151_v13  ;;  %v3185_v13 = vadd.f32 %v3165_v50, %v6431_v1 }
 0xc9d   : > { %v3168_v5 = vsel %vm3058_vm5, %v3153_v49, %v3155_v43  ;;  %3449 = vrot.lane.b32.xlu0 %v6583_v8, %s4181_s16  ;;  %v3273_v10 = vsel %vm3058_vm5, %v3258_v34, %v3260_v4  ;;  %v3188_v17 = vadd.f32 %v3167_v7, %v6472_v48 }
 0xc9e   : > { %v3190_v38 = vadd.f32 %v3168_v5, %v6493_v46 }
 0xca0   : > { %v3295_v32 = vadd.f32 %v3273_v10, %v3190_v38 }
 0xca2   : > { %v3331_v54 = vadd.f32 %v3318_v59, %v3295_v32 }
 0xca3   : > { %3507 = vrot.lane.b32.xlu1 %v6581_v53, %s4182_s22  ;;  %v3264_v31 = vpop.permute.xlu0 %3263 }
 0xca4   : > { %v6632_v19 = vmax.f32 %v3331_v54, 0.0  ;;  %v3275_v45 = vsel %vm3058_vm5, %v3264_v31, %v3266_v42  ;;  %v3250_v61 = vpop.permute.xlu1 %3249  ;;  %v3252_v44 = vpop.permute.xlu2 %3251 }
 0xca5   : > { %v3298_v51 = vadd.f32 %v3275_v45, %v3193_v25 }
 0xca6   : > { %3355 = vst [vmem:[%s4380_s23 + $0x150] sm:$0xff] %v6632_v19  ;;  %3385 = vrot.lane.b32.xlu0 %v6632_v19, %s4178_s24 }
 0xca7   : > { %v3334_v46 = vadd.f32 %v6570_v40, %v3298_v51 }
 0xca9   : > { %v6641_v55 = vmax.f32 %v3334_v46, 0.0 }
 0xcab   : > { %3358 = vst [vmem:[%s4380_s23 + $0x168] sm:$0xff] %v6641_v55  ;;  %v3147_v39 = vpop.permute.xlu0 %3146  ;;  %3391 = vrot.lane.b32.xlu1 %v6641_v55, %s4178_s24 }
 0xcac   : > { %v3166_v23 = vsel %vm3058_vm5, %v3147_v39, %v3149_v6  ;;  %v3254_v0 = vpop.permute.xlu1 %3253 }
 0xcad   : > { %v3187_v58 = vadd.f32 %v3166_v23, %v6478_v11  ;;  %v3272_v40 = vsel %vm3058_vm5, %v3254_v0, %v3256_v63  ;;  %v3271_v16 = vsel %vm3058_vm5, %v3252_v44, %v3254_v0  ;;  %v3291_v11 = vadd.f32 %v3250_v61, %v3186_v24 }
 0xcae   : > { %v3293_v56 = vadd.f32 %v3272_v40, %v3188_v17  ;;  %3447 = vrot.lane.b32.xlu0 %v6641_v55, %s4181_s16 }
 0xcaf   : > { %v3292_v42 = vadd.f32 %v3271_v16, %v3187_v58 }
 0xcb0   : > { %v3329_v48 = vadd.f32 %v3313_v62, %v3293_v56 }
 0xcb1   : > { %v3328_v36 = vadd.f32 %v3313_v62, %v3292_v42 }
 0xcb2   : > { %v6657_v52 = vmax.f32 %v3329_v48, 0.0 }
 0xcb3   : > { %v6659_v15 = vmax.f32 %v3328_v36, 0.0  ;;  %v3308_v20 = vpop.permute.xlu0 %3307  ;;  %3501 = vrot.lane.b32.xlu1 %v6595_v3, %s4182_s22 }
 0xcb4   : > { %3353 = vst [vmem:[%s4380_s23 + $0x140] sm:$0xff] %v6657_v52  ;;  %v3327_v41 = vadd.f32 %v3308_v20, %v3291_v11  ;;  %v3248_v37 = vpop.permute.xlu1 %3247 }
 0xcb5   : > { %3352 = vst [vmem:[%s4380_s23 + $0x138] sm:$0xff] %v6659_v15  ;;  %v3270_v18 = vsel %vm3058_vm5, %v3248_v37, %v3250_v61 }
 0xcb6   : > { %v6669_v59 = vmax.f32 %v3327_v41, 0.0  ;;  %v3290_v12 = vadd.f32 %v3270_v18, %v3185_v13 }
 0xcb8   : > { %3351 = vst.msk [vmem:[%s4380_s23 + $0x130] sm:$0xff] %vm447_vm0, %v6669_v59  ;;  %v3326_v21 = vadd.f32 %v3308_v20, %v3290_v12  ;;  %3377 = vrot.lane.b32.xlu2 %v6669_v59, %s4178_s24 }
 0xcba   : > { %v6676_v1 = vmax.f32 %v3326_v21, 0.0 }
 0xcbb   : > { %v3246_v43 = vpop.permute.xlu0 %3245  ;;  %3433 = vrot.lane.b32.xlu1 %v6669_v59, %s4181_s16 }
 0xcbc   : > { %3350 = vst [vmem:[%s4380_s23 + $0x128] sm:$0xff] %v6676_v1  ;;  %v3269_v35 = vsel %vm3058_vm5, %v3246_v43, %v3248_v37  ;;  %3375 = vrot.lane.b32.xlu0 %v6676_v1, %s4178_s24 }
 0xcbd   : > { %v3289_v14 = vadd.f32 %v3269_v35, %v6573_v60 }
 0xcbf   : > { %v3325_v4 = vadd.f32 %v3308_v20, %v3289_v14 }
 0xcc0   : > { %3439 = vrot.lane.b32.xlu2 %v6616_v26, %s4181_s16 }
 0xcc1   : > { %v6688_v28 = vmax.f32 %v3325_v4, 0.0 }
 0xcc3   : > { %3349 = vst [vmem:[%s4380_s23 + $0x120] sm:$0xff] %v6688_v28  ;;  %3495 = vrot.lane.b32.xlu1 %v6616_v26, %s4182_s22 }
 0xcc4   : > { %3441 = vrot.lane.b32.xlu0 %v6632_v19, %s4181_s16 }
 0xcc8   : > { %3381 = vrot.lane.b32.xlu2 %v6657_v52, %s4178_s24 }
 0xccb   : > { %3379 = vrot.lane.b32.xlu1 %v6659_v15, %s4178_s24 }
 0xccc   : > { %3503 = vrot.lane.b32.xlu0 %v6641_v55, %s4182_s22 }
 0xcd0   : > { %3443 = vrot.lane.b32.xlu2 %v6608_v30, %s4181_s16 }
 0xcd3   : > { %3489 = vrot.lane.b32.xlu1 %v6669_v59, %s4182_s22 }
 0xcd4   : > { %3435 = vrot.lane.b32.xlu0 %v6659_v15, %s4181_s16 }
 0xcd8   : > { %3505 = vrot.lane.b32.xlu2 %v6583_v8, %s4182_s22 }
 0xcdb   : > { %3373 = vrot.lane.b32.xlu1 %v6688_v28, %s4178_s24 }
 0xcdc   : > { %3429 = vrot.lane.b32.xlu0 %v6688_v28, %s4181_s16 }
 0xce0   : > { %3437 = vrot.lane.b32.xlu2 %v6657_v52, %s4181_s16 }
 0xce3   : > { %3493 = vrot.lane.b32.xlu1 %v6657_v52, %s4182_s22 }
 0xce4   : > { %3485 = vrot.lane.b32.xlu0 %v6688_v28, %s4182_s22 }
 0xce5   : > { %v3390_v57 = vpop.permute.xlu2 %3389 }
 0xce6   : > { %v3425_v10 = vmax.f32 %v6595_v3, %v3390_v57 }
 0xce8   : > { %3499 = vrot.lane.b32.xlu2 %v6608_v30, %s4182_s22 }
 0xceb   : > { %3487 = vrot.lane.b32.xlu1 %v6676_v1, %s4182_s22 }
 0xced   : > { %v3394_v9 = vpop.permute.xlu2 %3393 }
 0xcf0   : > { %3431 = vrot.lane.b32.xlu2 %v6676_v1, %s4181_s16 }
 0xcf5   : > { %v3452_v60 = vpop.permute.xlu0 %3451  ;;  %v3396_v47 = vpop.permute.xlu1 %3395 }
 0xcf6   : > { %v3428_v62 = vmax.f32 %v6581_v53, %v3396_v47  ;;  %v3404_v3 = vsel %vm702_vm1, %v3394_v9, %v3396_v47 }
 0xcf7   : > { %v3427_v7 = vmax.f32 %v6583_v8, %v3404_v3 }
 0xcf8   : > { %3497 = vrot.lane.b32.xlu2 %v6632_v19, %s4182_s22  ;;  %v3484_v6 = vmax.f32 %v3428_v62, %v3452_v60 }
 0xcfd   : > { %v3446_v27 = vpop.permute.xlu0 %3445 }
 0xcfe   : > { %v3481_v32 = vmax.f32 %v3425_v10, %v3446_v27 }
 0xd00   : > { %3491 = vrot.lane.b32.xlu2 %v6659_v15, %s4182_s22 }
 0xd07   : > { %v6730_v29 = vpop.permute.xlu0 %3387 }
 0xd08   : > { %v3402_v48 = vsel %vm702_vm1, %v6730_v29, %v3390_v57 }
 0xd09   : > { %v3424_v41 = vmax.f32 %v6608_v30, %v3402_v48  ;;  %v3801_v48 = vld [vmem:[%s7041_s4 + $0x10] sm:$0xff] }
 0xd0d   : > { %v6732_v63 = vpop.permute.xlu1 %3383 }
 0xd0e   : > { %v3422_v39 = vmax.f32 %v6616_v26, %v6732_v63 }
 0xd0f   : > { %v3450_v22 = vpop.permute.xlu0 %3449 }
 0xd10   : > { %v3460_v46 = vsel %vm2742_vm4, %v3450_v22, %v3452_v60 }
 0xd11   : > { %v3483_v17 = vmax.f32 %v3427_v7, %v3460_v46 }
 0xd12   : > { %v6735_v2 = vpop.permute.xlu2 %3377 }
 0xd15   : > { %v3508_v49 = vpop.permute.xlu1 %3507 }
 0xd16   : > { %v6737_v34 = vmax.f32 %v3484_v6, %v3508_v49 }
 0xd18   : > { %3553 = vst.msk [vmem:[%s4380_s23 + $0x1d8] sm:$0xff] %vm3543_vm6, %v6737_v34  ;;  %3713 = vrot.lane.b32.xlu1 %v6737_v34, %s4182_s22  ;;  %v3386_v5 = vpop.permute.xlu0 %3385 }
 0xd19   : > { %3566 = vst.msk [vmem:[#allocation2 + $0x58] sm:$0xff] %vm3556_vm7, %v6737_v34  ;;  %v3401_v60 = vsel %vm702_vm1, %v3386_v5, %v6730_v29 }
 0xd1a   : > { %v6746_v53 = vpop.permute.xlu2 %3439  ;;  %v3423_v47 = vmax.f32 %v6632_v19, %v3401_v60 }
 0xd1b   : > { %v3478_v44 = vmax.f32 %v3422_v39, %v6746_v53 }
 0xd1d   : > { %v3392_v38 = vpop.permute.xlu1 %3391 }
 0xd1e   : > { %v3403_v8 = vsel %vm702_vm1, %v3392_v38, %v3394_v9 }
 0xd1f   : > { %v3426_v26 = vmax.f32 %v6641_v55, %v3403_v8  ;;  %v3419_v55 = vmax.f32 %v6669_v59, %v6735_v2  ;;  %v3799_v8 = vld [vmem:[%s7041_s4] sm:$0xff] }
 0xd20   : > { %v3448_v25 = vpop.permute.xlu0 %3447 }
 0xd21   : > { %v3459_v24 = vsel %vm2742_vm4, %v3448_v25, %v3450_v22 }
 0xd22   : > { %v6749_v33 = vpop.permute.xlu2 %3381  ;;  %v3482_v36 = vmax.f32 %v3426_v26, %v3459_v24  ;;  %v3800_v26 = vld [vmem:[%s7041_s4 + $0x8] sm:$0xff]  ;;  %v3802_v24 = vld [vmem:[%s7041_s4 + $0x18] sm:$0xff] }
 0xd23   : > { %v3400_v9 = vsel %vm702_vm1, %v6749_v33, %v6732_v63 }
 0xd24   : > { %v3421_v29 = vmax.f32 %v6657_v52, %v3400_v9 }
 0xd25   : > { %v3502_v54 = vpop.permute.xlu1 %3501 }
 0xd26   : > { %v6751_v31 = vmax.f32 %v3481_v32, %v3502_v54 }
 0xd28   : > { %3550 = vst.msk [vmem:[%s4380_s23 + $0x1c0] sm:$0xff] %vm3543_vm6, %v6751_v31  ;;  %3707 = vrot.lane.b32.xlu2 %v6751_v31, %s4182_s22 }
 0xd29   : > { %3563 = vst.msk [vmem:[#allocation2 + $0x40] sm:$0xff] %vm3556_vm7, %v6751_v31 }
 0xd2a   : > { %v3444_v45 = vpop.permute.xlu2 %3443 }
 0xd2b   : > { %v3458_v20 = vsel %vm2742_vm4, %v3444_v45, %v3446_v27 }
 0xd2c   : > { %v3480_v18 = vmax.f32 %v3424_v41, %v3458_v20 }
 0xd2d   : > { %v6761_v61 = vpop.permute.xlu1 %3433 }
 0xd2e   : > { %v6763_v51 = vpop.permute.xlu0 %3375  ;;  %v3475_v43 = vmax.f32 %v3419_v55, %v6761_v61 }
 0xd2f   : > { %v3398_v25 = vsel %vm702_vm1, %v6763_v51, %v6735_v2 }
 0xd30   : > { %v3418_v2 = vmax.f32 %v6676_v1, %v3398_v25 }
 0xd32   : > { %v3506_v23 = vpop.permute.xlu2 %3505 }
 0xd33   : > { %v3516_v0 = vsel %vm3058_vm5, %v3506_v23, %v3508_v49 }
 0xd34   : > { %v6771_v58 = vmax.f32 %v3483_v17, %v3516_v0 }
 0xd35   : > { %v3496_v40 = vpop.permute.xlu1 %3495 }
 0xd36   : > { %3552 = vst [vmem:[%s4380_s23 + $0x1d0] sm:$0xff] %v6771_v58  ;;  %v6775_v16 = vmax.f32 %v3478_v44, %v3496_v40  ;;  %v3442_v56 = vpop.permute.xlu0 %3441  ;;  %3711 = vrot.lane.b32.xlu1 %v6771_v58, %s4182_s22 }
 0xd37   : > { %v3457_v27 = vsel %vm2742_vm4, %v3442_v56, %v3444_v45 }
 0xd38   : > { %3547 = vst.msk [vmem:[%s4380_s23 + $0x1a8] sm:$0xff] %vm3543_vm6, %v6775_v16  ;;  %3701 = vrot.lane.b32.xlu0 %v6775_v16, %s4182_s22  ;;  %v3479_v62 = vmax.f32 %v3423_v47, %v3457_v27 }
 0xd39   : > { %3560 = vst.msk [vmem:[#allocation2 + $0x28] sm:$0xff] %vm3556_vm7, %v6775_v16 }
 0xd3a   : > { %v3438_v42 = vpop.permute.xlu2 %3437 }
 0xd3b   : > { %v3456_v22 = vsel %vm2742_vm4, %v3438_v42, %v6746_v53 }
 0xd3c   : > { %v3477_v19 = vmax.f32 %v3421_v29, %v3456_v22 }
 0xd3d   : > { %v3380_v50 = vpop.permute.xlu1 %3379 }
 0xd3e   : > { %v3504_v11 = vpop.permute.xlu0 %3503  ;;  %v3399_v63 = vsel %vm702_vm1, %v3380_v50, %v6749_v33 }
 0xd3f   : > { %v3515_v13 = vsel %vm3058_vm5, %v3504_v11, %v3506_v23  ;;  %v3420_v33 = vmax.f32 %v6659_v15, %v3399_v63 }
 0xd40   : > { %v6794_v37 = vmax.f32 %v3482_v36, %v3515_v13 }
 0xd42   : > { %3551 = vst [vmem:[%s4380_s23 + $0x1c8] sm:$0xff] %v6794_v37  ;;  %3709 = vrot.lane.b32.xlu1 %v6794_v37, %s4182_s22  ;;  %v3500_v12 = vpop.permute.xlu2 %3499 }
 0xd43   : > { %v3514_v21 = vsel %vm3058_vm5, %v3500_v12, %v3502_v54 }
 0xd44   : > { %v6804_v35 = vmax.f32 %v3480_v18, %v3514_v21 }
 0xd45   : > { %v3490_v14 = vpop.permute.xlu1 %3489 }
 0xd46   : > { %3549 = vst [vmem:[%s4380_s23 + $0x1b8] sm:$0xff] %v6804_v35  ;;  %v6808_v30 = vmax.f32 %v3475_v43, %v3490_v14  ;;  %3705 = vrot.lane.b32.xlu0 %v6804_v35, %s4182_s22  ;;  %v3436_v59 = vpop.permute.xlu0 %3435 }
 0xd47   : > { %v3455_v52 = vsel %vm2742_vm4, %v3436_v59, %v3438_v42 }
 0xd48   : > { %3544 = vst.msk [vmem:[%s4380_s23 + $0x190] sm:$0xff] %vm3543_vm6, %v6808_v30  ;;  %3695 = vrot.lane.b32.xlu2 %v6808_v30, %s4182_s22  ;;  %v3476_v3 = vmax.f32 %v3420_v33, %v3455_v52 }
 0xd49   : > { %3557 = vst.msk [vmem:[#allocation2 + $0x10] sm:$0xff] %vm3556_vm7, %v6808_v30 }
 0xd4a   : > { %v3432_v4 = vpop.permute.xlu2 %3431 }
 0xd4b   : > { %v3454_v46 = vsel %vm2742_vm4, %v3432_v4, %v6761_v61 }
 0xd4d   : > { %v3374_v57 = vpop.permute.xlu1 %3373 }
 0xd4e   : > { %v3430_v49 = vpop.permute.xlu0 %3429  ;;  %v3397_v32 = vsel %vm702_vm1, %v3374_v57, %v6763_v51 }
 0xd4f   : > { %v3417_v45 = vmax.f32 %v6688_v28, %v3397_v32  ;;  %v3453_v51 = vsel %vm2742_vm4, %v3430_v49, %v3432_v4  ;;  %v3474_v28 = vmax.f32 %v3418_v2, %v3454_v46 }
 0xd50   : > { %3657 = vrot.lane.b32.xlu2 %v6737_v34, %s4181_s16 }
 0xd51   : > { %v3473_v0 = vmax.f32 %v3417_v45, %v3453_v51 }
 0xd52   : > { %v3498_v6 = vpop.permute.xlu2 %3497 }
 0xd53   : > { %v3513_v5 = vsel %vm3058_vm5, %v3498_v6, %v3500_v12 }
 0xd54   : > { %v6832_v38 = vmax.f32 %v3479_v62, %v3513_v5 }
 0xd55   : > { %v3494_v10 = vpop.permute.xlu1 %3493 }
 0xd56   : > { %3548 = vst [vmem:[%s4380_s23 + $0x1b0] sm:$0xff] %v6832_v38  ;;  %v3512_v53 = vsel %vm3058_vm5, %v3494_v10, %v3496_v40  ;;  %3703 = vrot.lane.b32.xlu1 %v6832_v38, %s4182_s22  ;;  %v3486_v17 = vpop.permute.xlu0 %3485 }
 0xd57   : > { %v6844_v54 = vmax.f32 %v3477_v19, %v3512_v53 }
 0xd58   : > { %3651 = vrot.lane.b32.xlu2 %v6751_v31, %s4181_s16 }
 0xd59   : > { %3546 = vst [vmem:[%s4380_s23 + $0x1a0] sm:$0xff] %v6844_v54  ;;  %3699 = vrot.lane.b32.xlu0 %v6844_v54, %s4182_s22 }
 0xd5a   : > { %v3492_v7 = vpop.permute.xlu2 %3491 }
 0xd5b   : > { %v3511_v15 = vsel %vm3058_vm5, %v3492_v7, %v3494_v10 }
 0xd5c   : > { %v6862_v39 = vmax.f32 %v3476_v3, %v3511_v15 }
 0xd5d   : > { %v3488_v23 = vpop.permute.xlu1 %3487 }
 0xd5e   : > { %3545 = vst [vmem:[%s4380_s23 + $0x198] sm:$0xff] %v6862_v39  ;;  %v3509_v44 = vsel %vm3058_vm5, %v3486_v17, %v3488_v23  ;;  %v3510_v61 = vsel %vm3058_vm5, %v3488_v23, %v3490_v14  ;;  %3697 = vrot.lane.b32.xlu1 %v6862_v39, %s4182_s22 }
 0xd5f   : > { %v6870_v1 = vmax.f32 %v3473_v0, %v3509_v44  ;;  %v6872_v40 = vmax.f32 %v3474_v28, %v3510_v61 }
 0xd60   : > { %3645 = vrot.lane.b32.xlu2 %v6775_v16, %s4181_s16 }
 0xd61   : > { %3541 = vst [vmem:[%s4380_s23 + $0x180] sm:$0xff] %v6870_v1  ;;  %3693 = vrot.lane.b32.xlu0 %v6872_v40, %s4182_s22 }
 0xd62   : > { %3542 = vst [vmem:[%s4380_s23 + $0x188] sm:$0xff] %v6872_v40 }
 0xd66   : > { %3691 = vrot.lane.b32.xlu1 %v6870_v1, %s4182_s22 }
 0xd68   : > { %3639 = vrot.lane.b32.xlu2 %v6808_v30, %s4181_s16 }
 0xd69   : > { %3655 = vrot.lane.b32.xlu0 %v6771_v58, %s4181_s16 }
 0xd6e   : > { %3653 = vrot.lane.b32.xlu1 %v6794_v37, %s4181_s16 }
 0xd70   : > { %3601 = vrot.lane.b32.xlu2 %v6737_v34, %s4178_s24 }
 0xd71   : > { %3649 = vrot.lane.b32.xlu0 %v6804_v35, %s4181_s16 }
 0xd76   : > { %3647 = vrot.lane.b32.xlu1 %v6832_v38, %s4181_s16 }
 0xd78   : > { %3595 = vrot.lane.b32.xlu2 %v6751_v31, %s4178_s24 }
 0xd79   : > { %3643 = vrot.lane.b32.xlu0 %v6844_v54, %s4181_s16 }
 0xd7e   : > { %3641 = vrot.lane.b32.xlu1 %v6862_v39, %s4181_s16 }
 0xd80   : > { %3589 = vrot.lane.b32.xlu2 %v6775_v16, %s4178_s24 }
 0xd81   : > { %3637 = vrot.lane.b32.xlu0 %v6872_v40, %s4181_s16 }
 0xd82   : > { %v3708_v34 = vpop.permute.xlu2 %3707 }
 0xd83   : > { %3743 = vst.msk [vmem:[#allocation2 + $0x160] sm:$0xff] %vm3556_vm7, %v3708_v34 }
 0xd86   : > { %3635 = vrot.lane.b32.xlu1 %v6870_v1, %s4181_s16 }
 0xd88   : > { %3583 = vrot.lane.b32.xlu2 %v6808_v30, %s4178_s24 }
 0xd89   : > { %3599 = vrot.lane.b32.xlu0 %v6771_v58, %s4178_s24 }
 0xd8a   : > { %v3714_v31 = vpop.permute.xlu1 %3713  ;;  %v3795_v56 = vld [vmem:[#allocation2 + $0x160] sm:$0xff] }
 0xd8b   : > { %3746 = vst.msk [vmem:[#allocation2 + $0x178] sm:$0xff] %vm3556_vm7, %v3714_v31 }
 0xd8e   : > { %3597 = vrot.lane.b32.xlu1 %v6794_v37, %s4178_s24 }
 0xd90   : > { %3587 = vrot.lane.b32.xlu2 %v6844_v54, %s4178_s24 }
 0xd91   : > { %3593 = vrot.lane.b32.xlu0 %v6804_v35, %s4178_s24 }
 0xd92   : > { %v3798_v16 = vld [vmem:[#allocation2 + $0x178] sm:$0xff] }
 0xd93   : > { %3881 = vmatpush.msra.mxu2 %v3798_v16 }
 0xd95   : > { %3882 = vmatpush.msra.mxu2 %v3795_v56  ;;  %v3756_v56 = vld [vmem:[#allocation2 + $0x28] sm:$0xff] }
 0xd96   : > { %3581 = vrot.lane.b32.xlu1 %v6872_v40, %s4178_s24 }
 0xd98   : > { %3585 = vrot.lane.b32.xlu2 %v6862_v39, %s4178_s24 }
 0xd99   : > { %3591 = vrot.lane.b32.xlu0 %v6832_v38, %s4178_s24 }
 0xd9e   : > { %3805 = vperm.xlu1 %4167, %v3799_v8  }
 0xda0   : > { %3810 = vperm.xlu2 %4168, %v3800_v26   ;;  %v3747_v26 = vld [vmem:[%s7040_s3] sm:$0xff] }
 0xda1   : > { %3579 = vrot.lane.b32.xlu0 %v6870_v1, %s4178_s24 }
 0xda2   : > { %v3696_v42 = vpop.permute.xlu2 %3695 }
 0xda3   : > { %3737 = vst.msk [vmem:[#allocation2 + $0x130] sm:$0xff] %vm3556_vm7, %v3696_v42 }
 0xda6   : > { %3820 = vperm.xlu1 %4167, %v3802_v24   ;;  %v3753_v24 = vld [vmem:[#allocation2 + $0x10] sm:$0xff] }
 0xda8   : > { %v3712_v50 = vpop.permute.xlu1 %3711 }
 0xda9   : > { %v3722_v36 = vsel %vm3058_vm5, %v3712_v50, %v3714_v31  ;;  %3815 = vperm.xlu0 %4166, %v3801_v48   ;;  %v3759_v31 = vld [vmem:[#allocation2 + $0x40] sm:$0xff] }
 0xdaa   : > { %v3702_v11 = vpop.permute.xlu0 %3701  ;;  %v3658_v20 = vpop.permute.xlu2 %3657  ;;  %3852 = vmatpush.msra.mxu1 %v3722_v36  ;;  %v3789_v18 = vld [vmem:[#allocation2 + $0x130] sm:$0xff] }
 0xdab   : > { %3740 = vst.msk [vmem:[#allocation2 + $0x148] sm:$0xff] %vm3556_vm7, %v3702_v11 }
 0xdac   : > { %3690 = vst.msk [vmem:[#allocation2 + $0x118] sm:$0xff] %vm3556_vm7, %v3658_v20 }
 0xdb2   : > { %v6944_v13 = vpop.permute.xlu2 %3651  ;;  %v3792_v41 = vld [vmem:[#allocation2 + $0x148] sm:$0xff] }
 0xdb3   : > { %3687 = vst.msk [vmem:[#allocation2 + $0x100] sm:$0xff] %vm3556_vm7, %v6944_v13  ;;  %3883 = vmatpush.msra.mxu2 %v3792_v41  ;;  %v3786_v21 = vld [vmem:[#allocation2 + $0x118] sm:$0xff] }
 0xdb4   : > { %v3710_v55 = vpop.permute.xlu1 %3709 }
 0xdb5   : > { %v3721_v12 = vsel %vm3058_vm5, %v3710_v55, %v3712_v50  ;;  %3884 = vmatpush.msra.mxu2 %v3789_v18 }
 0xdb6   : > { %3823 = vmatpush.msra.mxu0 %v3721_v12  ;;  %4134 = vmatpush.msra.mxu3 %v3721_v12 }
 0xdb7   : > { %3885 = vmatpush.msra.mxu2 %v3786_v21  ;;  %v3749_v21 = vld [vmem:[%s7040_s3 + $0x10] sm:$0xff] }
 0xdb8   : > { %v3706_v43 = vpop.permute.xlu0 %3705 }
 0xdb9   : > { %v3720_v14 = vsel %vm3058_vm5, %v3706_v43, %v3708_v34  ;;  %v3762_v34 = vld [vmem:[#allocation2 + $0x58] sm:$0xff] }
 0xdba   : > { %v6950_v30 = vpop.permute.xlu2 %3645  ;;  %v3783_v59 = vld [vmem:[#allocation2 + $0x100] sm:$0xff]  ;;  %3853 = vmatpush.msra.mxu1 %v3720_v14 }
 0xdbb   : > { %3684 = vst.msk [vmem:[#allocation2 + $0xe8] sm:$0xff] %vm3556_vm7, %v6950_v30  ;;  %3886 = vmatpush.msra.mxu2 %v3783_v59 }
 0xdc2   : > { %v6954_v4 = vpop.permute.xlu2 %3639  ;;  %v3780_v60 = vld [vmem:[#allocation2 + $0xe8] sm:$0xff] }
 0xdc3   : > { %3681 = vst.msk [vmem:[#allocation2 + $0xd0] sm:$0xff] %vm3556_vm7, %v6954_v4  ;;  %3887 = vmatpush.msra.mxu2 %v3780_v60 }
 0xdc8   : > { %v3704_v57 = vpop.permute.xlu1 %3703 }
 0xdc9   : > { %v3719_v27 = vsel %vm3058_vm5, %v3704_v57, %v3706_v43 }
 0xdca   : > { %v6959_v47 = vpop.permute.xlu2 %3601  ;;  %v3777_v9 = vld [vmem:[#allocation2 + $0xd0] sm:$0xff]  ;;  %3824 = vmatpush.msra.mxu0 %v3719_v27  ;;  %4135 = vmatpush.msra.mxu3 %v3719_v27 }
 0xdcb   : > { %3634 = vst.msk [vmem:[#allocation2 + $0xb8] sm:$0xff] %vm3556_vm7, %v6959_v47  ;;  %v3700_v62 = vpop.permute.xlu0 %3699  ;;  %3888 = vmatpush.msra.mxu2 %v3777_v9 }
 0xdcc   : > { %v3718_v22 = vsel %vm3058_vm5, %v3700_v62, %v3702_v11 }
 0xdcd   : > { %3854 = vmatpush.msra.mxu1 %v3718_v22 }
 0xdd0   : > { %v3698_v6 = vpop.permute.xlu1 %3697 }
 0xdd1   : > { %v3717_v29 = vsel %vm3058_vm5, %v3698_v6, %v3700_v62 }
 0xdd2   : > { %v6965_v49 = vpop.permute.xlu2 %3595  ;;  %v3774_v5 = vld [vmem:[#allocation2 + $0xb8] sm:$0xff]  ;;  %3825 = vmatpush.msra.mxu0 %v3717_v29  ;;  %4136 = vmatpush.msra.mxu3 %v3717_v29 }
 0xdd3   : > { %3631 = vst.msk [vmem:[#allocation2 + $0xa0] sm:$0xff] %vm3556_vm7, %v6965_v49  ;;  %v3694_v19 = vpop.permute.xlu0 %3693  ;;  %3889 = vmatpush.msra.mxu2 %v3774_v5 }
 0xdd4   : > { %v3716_v63 = vsel %vm3058_vm5, %v3694_v19, %v3696_v42 }
 0xdd5   : > { %3855 = vmatpush.msra.mxu1 %v3716_v63 }
 0xdd8   : > { %v3692_v10 = vpop.permute.xlu1 %3691 }
 0xdd9   : > { %v3715_v32 = vsel %vm3058_vm5, %v3692_v10, %v3694_v19 }
 0xdda   : > { %v3590_v53 = vpop.permute.xlu2 %3589  ;;  %v3771_v52 = vld [vmem:[#allocation2 + $0xa0] sm:$0xff]  ;;  %3826 = vmatpush.msra.mxu0 %v3715_v32  ;;  %4137 = vmatpush.msra.mxu3 %v3715_v32 }
 0xddb   : > { %3628 = vst.msk [vmem:[#allocation2 + $0x88] sm:$0xff] %vm3556_vm7, %v3590_v53  ;;  %v3656_v25 = vpop.permute.xlu0 %3655  ;;  %3890 = vmatpush.msra.mxu2 %v3771_v52 }
 0xddc   : > { %v3666_v33 = vsel %vm2742_vm4, %v3656_v25, %v3658_v20 }
 0xddd   : > { %3856 = vmatpush.msra.mxu1 %v3666_v33 }
 0xde0   : > { %v3654_v45 = vpop.permute.xlu1 %3653 }
 0xde1   : > { %v3665_v3 = vsel %vm2742_vm4, %v3654_v45, %v3656_v25 }
 0xde2   : > { %v3584_v46 = vpop.permute.xlu2 %3583  ;;  %v3768_v7 = vld [vmem:[#allocation2 + $0x88] sm:$0xff]  ;;  %3827 = vmatpush.msra.mxu0 %v3665_v3  ;;  %4138 = vmatpush.msra.mxu3 %v3665_v3 }
 0xde3   : > { %3625 = vst.msk [vmem:[#allocation2 + $0x70] sm:$0xff] %vm3556_vm7, %v3584_v46  ;;  %v3650_v2 = vpop.permute.xlu0 %3649  ;;  %3891 = vmatpush.msra.mxu2 %v3768_v7 }
 0xde4   : > { %v3664_v15 = vsel %vm2742_vm4, %v3650_v2, %v6944_v13  ;;  %v3748_v13 = vld [vmem:[%s7040_s3 + $0x8] sm:$0xff] }
 0xde5   : > { %3857 = vmatpush.msra.mxu1 %v3664_v15 }
 0xde8   : > { %v3648_v51 = vpop.permute.xlu1 %3647 }
 0xde9   : > { %v3663_v28 = vsel %vm2742_vm4, %v3648_v51, %v3650_v2 }
 0xdea   : > { %v3588_v17 = vpop.permute.xlu2 %3587  ;;  %v3765_v23 = vld [vmem:[#allocation2 + $0x70] sm:$0xff]  ;;  %3828 = vmatpush.msra.mxu0 %v3663_v28  ;;  %4139 = vmatpush.msra.mxu3 %v3663_v28 }
 0xdeb   : > { %v3606_v0 = vsel %vm702_vm1, %v3588_v17, %v3590_v53  ;;  %v3644_v44 = vpop.permute.xlu0 %3643  ;;  %3892 = vmatpush.msra.mxu2 %v3765_v23 }
 0xdec   : > { %v3662_v61 = vsel %vm2742_vm4, %v3644_v44, %v6950_v30 }
 0xded   : > { %3893 = vmatpush.msra.mxu2 %v3762_v34  ;;  %3858 = vmatpush.msra.mxu1 %v3662_v61 }
 0xdef   : > { %3894 = vmatpush.msra.mxu2 %v3759_v31 }
 0xdf0   : > { %v3642_v16 = vpop.permute.xlu1 %3641 }
 0xdf1   : > { %v3661_v8 = vsel %vm2742_vm4, %v3642_v16, %v3644_v44  ;;  %3895 = vmatpush.msra.mxu2 %v3756_v56 }
 0xdf2   : > { %v3586_v42 = vpop.permute.xlu2 %3585  ;;  %3829 = vmatpush.msra.mxu0 %v3661_v8  ;;  %4140 = vmatpush.msra.mxu3 %v3661_v8 }
 0xdf3   : > { %v3605_v48 = vsel %vm702_vm1, %v3586_v42, %v3588_v17  ;;  %v3638_v50 = vpop.permute.xlu0 %3637  ;;  %3896 = vmatpush.msra.mxu2 %v3753_v24 }
 0xdf4   : > { %v3660_v36 = vsel %vm2742_vm4, %v3638_v50, %v6954_v4  ;;  %3897 = vmatmul.f32.vlgmr.msra.gmra.mxu2 %v3747_v26  ;;  %v3750_v4 = vld [vmem:[%s7040_s3 + $0x18] sm:$0xff] }
 0xdf5   : > { %3859 = vmatpush.msra.mxu1 %v3660_v36 }
 0xdf8   : > { %v3636_v11 = vpop.permute.xlu1 %3635 }
 0xdf9   : > { %v3659_v20 = vsel %vm2742_vm4, %v3636_v11, %v3638_v50 }
 0xdfa   : > { %3830 = vmatpush.msra.mxu0 %v3659_v20  ;;  %4141 = vmatpush.msra.mxu3 %v3659_v20 }
 0xdfb   : > { %v3600_v41 = vpop.permute.xlu0 %3599 }
 0xdfc   : > { %v3610_v55 = vsel %vm702_vm1, %v3600_v41, %v6959_v47  ;;  %3900 = vmatmul.f32.gmra.mxu2 %v3748_v13 }
 0xdfd   : > { %3860 = vmatpush.msra.mxu1 %v3610_v55 }
 0xe00   : > { %v3598_v18 = vpop.permute.xlu1 %3597 }
 0xe01   : > { %v3609_v12 = vsel %vm702_vm1, %v3598_v18, %v3600_v41 }
 0xe02   : > { %3831 = vmatpush.msra.mxu0 %v3609_v12  ;;  %4142 = vmatpush.msra.mxu3 %v3609_v12 }
 0xe03   : > { %v3594_v43 = vpop.permute.xlu0 %3593 }
 0xe04   : > { %v3608_v14 = vsel %vm702_vm1, %v3594_v43, %v6965_v49  ;;  %3903 = vmatmul.f32.gmra.mxu2 %v3749_v21 }
 0xe05   : > { %3861 = vmatpush.msra.mxu1 %v3608_v14 }
 0xe07   : > { %3862 = vmatpush.msra.mxu1 %v3606_v0 }
 0xe08   : > { %v3582_v30 = vpop.permute.xlu1 %3581 }
 0xe09   : > { %v3604_v59 = vsel %vm702_vm1, %v3582_v30, %v3584_v46 }
 0xe0a   : > { %3863 = vmatpush.msra.mxu1 %v3604_v59 }
 0xe0b   : > { %v3592_v60 = vpop.permute.xlu0 %3591 }
 0xe0c   : > { %v3607_v57 = vsel %vm702_vm1, %v3592_v60, %v3594_v43  ;;  %3906 = vmatmul.f32.gmra.mxu2 %v3750_v4  ;;  %3864 = vmatpush.msra.mxu1 %v6771_v58 }
 0xe0d   : > { %3832 = vmatpush.msra.mxu0 %v3607_v57  ;;  %4143 = vmatpush.msra.mxu3 %v3607_v57 }
 0xe0e   : > { %3865 = vmatpush.msra.mxu1 %v6804_v35 }
 0xe0f   : > { %3833 = vmatpush.msra.mxu0 %v3605_v48  ;;  %4144 = vmatpush.msra.mxu3 %v3605_v48 }
 0xe10   : > { %3866 = vmatpush.msra.mxu1 %v6844_v54  ;;  %v3806_v58 = vpop.permute.xlu1 %3805  ;;  %v3811_v54 = vpop.permute.xlu2 %3810 }
 0xe12   : > { %3867 = vmatpush.msra.mxu1 %v6872_v40 }
 0xe13   : > { %v3580_v27 = vpop.permute.xlu0 %3579  ;;  %3868 = vmatmul.f32.vlgmr.msra.gmra.mxu1 %v3747_v26 }
 0xe14   : > { %v3603_v47 = vsel %vm702_vm1, %v3580_v27, %v3582_v30 }
 0xe15   : > { %3834 = vmatpush.msra.mxu0 %v3603_v47  ;;  %4145 = vmatpush.msra.mxu3 %v3603_v47 }
 0xe17   : > { %3835 = vmatpush.msra.mxu0 %v6794_v37  ;;  %4146 = vmatpush.msra.mxu3 %v6794_v37 }
 0xe18   : > { %v3821_v29 = vpop.permute.xlu1 %3820 }
 0xe19   : > { %3836 = vmatpush.msra.mxu0 %v6832_v38  ;;  %4147 = vmatpush.msra.mxu3 %v6832_v38 }
 0xe1b   : > { %3837 = vmatpush.msra.mxu0 %v6862_v39  ;;  %4148 = vmatpush.msra.mxu3 %v6862_v39  ;;  %v3816_v9 = vpop.permute.xlu0 %3815 }
 0xe1c   : > { %3871 = vmatmul.f32.gmra.mxu1 %v3748_v13 }
 0xe1d   : > { %3838 = vmatpush.msra.mxu0 %v6870_v1  ;;  %4149 = vmatpush.msra.mxu3 %v6870_v1 }
 0xe1e   : > { %3839 = vmatmul.f32.vlgmr.msra.gmra.mxu0 %v3747_v26  ;;  %3842 = vmatmul.f32.vlgmr.msra.gmra.mxu3 %v3748_v13 }
 0xe24   : > { %3874 = vmatmul.f32.gmra.mxu1 %v3749_v21 }
 0xe26   : > { %3845 = vmatmul.f32.gmra.mxu3 %v3749_v21 }
 0xe2c   : > { %3877 = vmatmul.f32.gmra.mxu1 %v3750_v4 }
 0xe2e   : > { %3848 = vmatmul.f32.gmra.mxu3 %v3750_v4 }
 0xe77   : > { %v3898_v37 = vpop.f32.mrf.mxu2 }
 0xe78   : > { %v3899_v35 = vadd.f32 %v3898_v37, %v3806_v58 }
 0xe7a   : > { %v3912_v38 = vmax.f32 %v3899_v35, 0.0 }
 0xe7c   : > { %3924 = vst.msk [vmem:[%s4380_s23 + $0x1f0] sm:$0xff] %vm3556_vm7, %v3912_v38 }
 0xe7f   : > { %v3901_v39 = vpop.f32.mrf.mxu2 }
 0xe80   : > { %v3902_v40 = vadd.f32 %v3901_v39, %v3811_v54 }
 0xe82   : > { %v3915_v1 = vmax.f32 %v3902_v40, 0.0 }
 0xe84   : > { %3927 = vst.msk [vmem:[%s4380_s23 + $0x208] sm:$0xff] %vm3556_vm7, %v3915_v1 }
 0xe87   : > { %v3904_v62 = vpop.f32.mrf.mxu2 }
 0xe88   : > { %v3905_v22 = vadd.f32 %v3904_v62, %v3816_v9 }
 0xe8a   : > { %v3918_v6 = vmax.f32 %v3905_v22, 0.0 }
 0xe8c   : > { %3930 = vst.msk [vmem:[%s4380_s23 + $0x220] sm:$0xff] %vm3556_vm7, %v3918_v6 }
 0xe8f   : > { %v3907_v49 = vpop.f32.mrf.mxu2 }
 0xe90   : > { %v3908_v5 = vadd.f32 %v3907_v49, %v3821_v29  ;;  %v3869_v19 = vpop.f32.mrf.mxu1 }
 0xe91   : > { %v3870_v63 = vadd.f32 %v3869_v19, %v3806_v58 }
 0xe92   : > { %v3921_v10 = vmax.f32 %v3908_v5, 0.0 }
 0xe93   : > { %v3911_v32 = vmax.f32 %v3870_v63, 0.0 }
 0xe94   : > { %3933 = vst.msk [vmem:[%s4380_s23 + $0x238] sm:$0xff] %vm3556_vm7, %v3921_v10 }
 0xe95   : > { %3923 = vst [vmem:[%s4380_s23 + $0x1e8] sm:$0xff] %v3911_v32 }
 0xe99   : > { %v3872_v53 = vpop.f32.mrf.mxu1 }
 0xe9a   : > { %v3873_v52 = vadd.f32 %v3872_v53, %v3811_v54 }
 0xe9b   : > { %v3840_v25 = vpop.f32.mrf.mxu0 }
 0xe9c   : > { %v3914_v33 = vmax.f32 %v3873_v52, 0.0  ;;  %v3841_v45 = vadd.f32 %v3840_v25, %v3806_v58 }
 0xe9e   : > { %3926 = vst [vmem:[%s4380_s23 + $0x200] sm:$0xff] %v3914_v33  ;;  %v3910_v3 = vmax.f32 %v3841_v45, 0.0 }
 0xea0   : > { %3922 = vst [vmem:[%s4380_s23 + $0x1e0] sm:$0xff] %v3910_v3 }
 0xea1   : > { %v3875_v46 = vpop.f32.mrf.mxu1  ;;  %v3843_v7 = vpop.f32.mrf.mxu3 }
 0xea2   : > { %v3876_v2 = vadd.f32 %v3875_v46, %v3816_v9  ;;  %v3844_v15 = vadd.f32 %v3843_v7, %v3811_v54 }
 0xea4   : > { %v3917_v51 = vmax.f32 %v3876_v2, 0.0  ;;  %v3913_v28 = vmax.f32 %v3844_v15, 0.0 }
 0xea6   : > { %3929 = vst [vmem:[%s4380_s23 + $0x218] sm:$0xff] %v3917_v51 }
 0xea7   : > { %3925 = vst [vmem:[%s4380_s23 + $0x1f8] sm:$0xff] %v3913_v28 }
 0xea9   : > { %v3878_v17 = vpop.f32.mrf.mxu1  ;;  %v3846_v23 = vpop.f32.mrf.mxu3 }
 0xeaa   : > { %v3879_v0 = vadd.f32 %v3878_v17, %v3821_v29  ;;  %v3847_v44 = vadd.f32 %v3846_v23, %v3816_v9 }
 0xeac   : > { %v3920_v61 = vmax.f32 %v3879_v0, 0.0  ;;  %v3916_v34 = vmax.f32 %v3847_v44, 0.0 }
 0xeae   : > { %3932 = vst [vmem:[%s4380_s23 + $0x230] sm:$0xff] %v3920_v61 }
 0xeaf   : > { %3928 = vst [vmem:[%s4380_s23 + $0x210] sm:$0xff] %v3916_v34 }
 0xeb1   : > { %v3849_v31 = vpop.f32.mrf.mxu3 }
 0xeb2   : > { %v3850_v16 = vadd.f32 %v3849_v31, %v3821_v29 }
 0xeb4   : > { %v3919_v56 = vmax.f32 %v3850_v16, 0.0 }
 0xeb6   : > { %3931 = vst [vmem:[%s4380_s23 + $0x228] sm:$0xff] %v3919_v56 }
 0xeb7 PF: > { %s15_s18 = sadd.s32 1, %s4175_s18  }
 0xeb8   : > { %p12_p4 = scmp.ge.s32.totalorder %s15_s18, 4  }
 0xeba   :  { %14 = sbr.rel (!%p12_p4) target bundleno = 1 (0x1), region = 104 }

</bundles_post_ra>
